<compile_context>
chip_gen: v5e
topology: v5e:2x2
jax: 0.10.0
libtpu: 0.0.40
codegen_flags: <defaults>
</compile_context>

<pallas_src>
import numpy as np
import jax
import jax.numpy as jnp
from jax.experimental import pallas as pl
from jax.experimental.pallas import tpu as pltpu

_LN_EPS = 1e-5

# Row layout of the packed (8, C) parameter operand.
_ROW_G1, _ROW_B1, _ROW_G2, _ROW_B2, _ROW_MASK = 0, 1, 2, 3, 4


# ---------------------------------------------------------------------------
# Fused kernel: LayerNorm(x1), LayerNorm(x2), channel swap, residual adds.
# Tile shapes: x1/x2/out1/out2 -> [TM, C];  packed params -> [8, C].
# ---------------------------------------------------------------------------
def _token_swap_kernel(x1_ref, x2_ref, p_ref, o1_ref, o2_ref):
    # Load once; compute in f32 regardless of I/O dtype.
    x1 = x1_ref[...].astype(jnp.float32)
    x2 = x2_ref[...].astype(jnp.float32)

    p = p_ref[...]                                       # (8, C) f32
    g1 = p[_ROW_G1:_ROW_G1 + 1, :]
    b1 = p[_ROW_B1:_ROW_B1 + 1, :]
    g2 = p[_ROW_G2:_ROW_G2 + 1, :]
    b2 = p[_ROW_B2:_ROW_B2 + 1, :]
    swap = p[_ROW_MASK:_ROW_MASK + 1, :] > 0.5           # (1, C) bool, bcast rows

    inv_c = 1.0 / x1.shape[-1]

    def layer_norm(x, g, b):
        # One-pass moments: var = E[x^2] - mu^2 (fewer VPU ops / temporaries).
        mu = jnp.sum(x, axis=-1, keepdims=True) * inv_c
        ex2 = jnp.sum(x * x, axis=-1, keepdims=True) * inv_c
        var = ex2 - mu * mu
        return (x - mu) * jax.lax.rsqrt(var + _LN_EPS) * g + b

    y1 = layer_norm(x1, g1, b1)
    y2 = layer_norm(x2, g2, b2)

    # Channel swap as a single vselect (no HBM concat).
    x1_swapped = jnp.where(swap, y2, y1)                 # cat([x2n[:nc], x1n[nc:]])
    # Second cat reads the *already swapped* x1 whose exchange channels equal
    # x2n's exchange channels, so x2_swapped == y2 exactly.

    # TODO(synk): Mamba encoders = identity -> only the residual adds remain.
    o1_ref[...] = (x1_swapped + x1).astype(o1_ref.dtype)   # + x1_short
    o2_ref[...] = (y2 + x2).astype(o2_ref.dtype)           # + x2_short


def _pick_tile_rows(M, C, itemsize,
                    target_block_bytes=2 << 20, max_block_bytes=3 << 20):
    """Row-tile size: ~2-3 MiB per stream block, sublane-aligned, <= M."""
    row_bytes = max(C * itemsize, 1)
    tm = max(target_block_bytes // row_bytes, 8)
    tm = min(tm, max(max_block_bytes // row_bytes, 8))
    tm = min(tm, M)
    if tm < M:
        tm = max((tm // 32) * 32, 8)   # sublane-aligned for f32/bf16/int8 I/O
    return int(tm)


def token_swap_mamba_forward(x1, x2, params, *, tile_rows=None):
    """x1, x2: [B, N, C].  Returns (out1, out2) of the same shape/dtype."""
    B, N, C = x1.shape
    assert x2.shape == (B, N, C)
    dtype = x1.dtype
    itemsize = np.dtype(dtype).itemsize
    M = B * N

    # num_chans matches the module's host-side int(C * sigmoid(ratio)).
    ratio = float(params["ratio"])
    num_chans = int(C * (1.0 / (1.0 + np.exp(-ratio))))

    # Pack LN affine params + swap mask into one (8, C) f32 operand.
    zeros = jnp.zeros((C,), jnp.float32)
    packed = jnp.stack(
        [jnp.asarray(params["gamma1"], jnp.float32),
         jnp.asarray(params["beta1"], jnp.float32),
         jnp.asarray(params["gamma2"], jnp.float32),
         jnp.asarray(params["beta2"], jnp.float32),
         (jnp.arange(C) < num_chans).astype(jnp.float32),
         zeros, zeros, zeros],
        axis=0)                                           # (8, C)

    if tile_rows is None:
        tm = _pick_tile_rows(M, C, itemsize)
    else:
        tm = min(int(tile_rows), M)
        if tm < M and tm % 8 != 0:
            tm = max((tm // 8) * 8, 8)

    # Flatten tokens (free reshape of contiguous dims; no pad, no slice).
    x1_2d = x1.reshape(M, C)
    x2_2d = x2.reshape(M, C)

    row_spec = pl.BlockSpec((tm, C), lambda i: (i, 0))
    vec_spec = pl.BlockSpec((8, C), lambda i: (0, 0))

    # VMEM budget: 4 streams x 2 buffers of the I/O dtype + f32 intermediates.
    block_bytes = tm * C * itemsize
    vmem_needed = 8 * block_bytes + 6 * tm * C * 4 + 2 * 8 * C * 4
    vmem_limit = int(min(max(vmem_needed + (8 << 20), 32 << 20), 60 << 20))

    out1, out2 = pl.pallas_call(
        _token_swap_kernel,
        out_shape=(jax.ShapeDtypeStruct((M, C), dtype),
                   jax.ShapeDtypeStruct((M, C), dtype)),
        grid_spec=pltpu.PrefetchScalarGridSpec(
            num_scalar_prefetch=0,
            grid=(pl.cdiv(M, tm),),          # ragged tail -> masked boundary stores
            in_specs=[row_spec, row_spec, vec_spec],
            out_specs=(row_spec, row_spec),
        ),
        compiler_params=pltpu.CompilerParams(
            dimension_semantics=("parallel",),   # megacore / 2-TC sharding on v7x
            vmem_limit_bytes=vmem_limit),
    )(x1_2d, x2_2d, packed)

    return out1.reshape(B, N, C), out2.reshape(B, N, C)


# ---------------------------------------------------------------------------
# Pure-JAX reference of the same forward (Mamba = identity) for verification.
# ---------------------------------------------------------------------------
def ref_forward(x1, x2, params):
    C = x1.shape[-1]
    ratio = float(params["ratio"])
    nc = int(C * (1.0 / (1.0 + np.exp(-ratio))))

    def ln(x, g, b):
        mu = jnp.mean(x, axis=-1, keepdims=True)
        var = jnp.mean((x - mu) ** 2, axis=-1, keepdims=True)
        return (x - mu) / jnp.sqrt(var + _LN_EPS) * g + b

    y1 = ln(x1, params["gamma1"], params["beta1"])
    y2 = ln(x2, params["gamma2"], params["beta2"])
    x1s = jnp.concatenate([y2[..., :nc], y1[..., nc:]], axis=-1)
    x2s = jnp.concatenate([x1s[..., :nc], y2[..., nc:]], axis=-1)
    # Mamba encoders = identity (see TODO above).
    return x1s + x1, x2s + x2


if __name__ == "__main__":
    key = jax.random.PRNGKey(0)
    B, N, C = 2, 200, 128          # M = 400 tokens, dim = 128 (lane-dense)
    k1, k2, k3, k4, k5, k6 = jax.random.split(key, 6)
    x1 = jax.random.normal(k1, (B, N, C), jnp.float32)
    x2 = jax.random.normal(k2, (B, N, C), jnp.float32)
    params = {
        "gamma1": 1.0 + 0.1 * jax.random.normal(k3, (C,), jnp.float32),
        "beta1": 0.1 * jax.random.normal(k4, (C,), jnp.float32),
        "gamma2": 1.0 + 0.1 * jax.random.normal(k5, (C,), jnp.float32),
        "beta2": 0.1 * jax.random.normal(k6, (C,), jnp.float32),
        "ratio": 0.5,              # nn.Parameter init_ratio
    }

    r1, r2 = ref_forward(x1, x2, params)

    # Auto-tiled path (single full-M block at this small size).
    out1, out2 = jax.block_until_ready(token_swap_mamba_forward(x1, x2, params))
    np.testing.assert_allclose(np.asarray(out1), np.asarray(r1), rtol=1e-4, atol=1e-4)
    np.testing.assert_allclose(np.asarray(out2), np.asarray(r2), rtol=1e-4, atol=1e-4)

    # Forced small tile: exercises the ragged last block (M=400, tm=128).
    out1s, out2s = jax.block_until_ready(
        token_swap_mamba_forward(x1, x2, params, tile_rows=128))
    np.testing.assert_allclose(np.asarray(out1s), np.asarray(r1), rtol=1e-4, atol=1e-4)
    np.testing.assert_allclose(np.asarray(out2s), np.asarray(r2), rtol=1e-4, atol=1e-4)

    print("KERNEL_OK")
</pallas_src>

<mosaic_0001>
module attributes {stable_mosaic.version = 11 : i64} {
  func.func @_token_swap_kernel(%arg0: i32, %arg1: memref<400x128xf32, #tpu.memory_space<vmem>>, %arg2: memref<400x128xf32, #tpu.memory_space<vmem>>, %arg3: memref<8x128xf32, #tpu.memory_space<vmem>>, %arg4: memref<400x128xf32, #tpu.memory_space<vmem>>, %arg5: memref<400x128xf32, #tpu.memory_space<vmem>>) attributes {dimension_semantics = [#tpu.dimension_semantics<parallel>], iteration_bounds = array<i64: 1>, scalar_prefetch = 0 : i64, scratch_operands = 0 : i64, tpu.core_type = #tpu.core_type<tc>, window_params = [{transform_indices = @transform_0, window_bounds = array<i64: 400, 128>}, {transform_indices = @transform_1, window_bounds = array<i64: 400, 128>}, {pipeline_mode = #tpu.pipeline_mode<synchronous>, transform_indices = @transform_2, window_bounds = array<i64: 8, 128>}, {transform_indices = @transform_3, window_bounds = array<i64: 400, 128>}, {transform_indices = @transform_4, window_bounds = array<i64: 400, 128>}]} {
    %c0 = arith.constant 0 : index
    %c0_0 = arith.constant 0 : index
    %0 = vector.load %arg1[%c0, %c0_0] : memref<400x128xf32, #tpu.memory_space<vmem>>, vector<400x128xf32>
    %c0_1 = arith.constant 0 : index
    %c0_2 = arith.constant 0 : index
    %1 = vector.load %arg2[%c0_1, %c0_2] : memref<400x128xf32, #tpu.memory_space<vmem>>, vector<400x128xf32>
    %c0_3 = arith.constant 0 : index
    %c0_4 = arith.constant 0 : index
    %2 = vector.load %arg3[%c0_3, %c0_4] : memref<8x128xf32, #tpu.memory_space<vmem>>, vector<8x128xf32>
    %3 = vector.extract_strided_slice %2 {offsets = [0, 0], sizes = [1, 128], strides = [1, 1]} : vector<8x128xf32> to vector<1x128xf32>
    %4 = vector.extract_strided_slice %2 {offsets = [1, 0], sizes = [1, 128], strides = [1, 1]} : vector<8x128xf32> to vector<1x128xf32>
    %5 = vector.extract_strided_slice %2 {offsets = [2, 0], sizes = [1, 128], strides = [1, 1]} : vector<8x128xf32> to vector<1x128xf32>
    %6 = vector.extract_strided_slice %2 {offsets = [3, 0], sizes = [1, 128], strides = [1, 1]} : vector<8x128xf32> to vector<1x128xf32>
    %7 = vector.extract_strided_slice %2 {offsets = [4, 0], sizes = [1, 128], strides = [1, 1]} : vector<8x128xf32> to vector<1x128xf32>
    %cst = arith.constant 5.000000e-01 : f32
    %8 = vector.broadcast %cst : f32 to vector<1x128xf32>
    %9 = arith.cmpf ogt, %7, %8 : vector<1x128xf32>
    %cst_5 = arith.constant dense<0.000000e+00> : vector<400xf32>
    %10 = vector.multi_reduction <add>, %0, %cst_5 [1] : vector<400x128xf32> to vector<400xf32>
    %11 = vector.shape_cast %10 : vector<400xf32> to vector<400x1xf32>
    %cst_6 = arith.constant 7.812500e-03 : f32
    %12 = vector.broadcast %cst_6 : f32 to vector<400x1xf32>
    %13 = arith.mulf %11, %12 : vector<400x1xf32>
    %14 = arith.mulf %0, %0 : vector<400x128xf32>
    %cst_7 = arith.constant dense<0.000000e+00> : vector<400xf32>
    %15 = vector.multi_reduction <add>, %14, %cst_7 [1] : vector<400x128xf32> to vector<400xf32>
    %16 = vector.shape_cast %15 : vector<400xf32> to vector<400x1xf32>
    %cst_8 = arith.constant 7.812500e-03 : f32
    %17 = vector.broadcast %cst_8 : f32 to vector<400x1xf32>
    %18 = arith.mulf %16, %17 : vector<400x1xf32>
    %19 = arith.mulf %13, %13 : vector<400x1xf32>
    %20 = arith.subf %18, %19 : vector<400x1xf32>
    %21 = vector.broadcast %13 : vector<400x1xf32> to vector<400x128xf32>
    %22 = arith.subf %0, %21 : vector<400x128xf32>
    %cst_9 = arith.constant 9.99999974E-6 : f32
    %23 = vector.broadcast %cst_9 : f32 to vector<400x1xf32>
    %24 = arith.addf %20, %23 : vector<400x1xf32>
    %25 = math.rsqrt %24 : vector<400x1xf32>
    %26 = vector.broadcast %25 : vector<400x1xf32> to vector<400x128xf32>
    %27 = arith.mulf %22, %26 : vector<400x128xf32>
    %28 = vector.broadcast %3 : vector<1x128xf32> to vector<400x128xf32>
    %29 = arith.mulf %27, %28 : vector<400x128xf32>
    %30 = vector.broadcast %4 : vector<1x128xf32> to vector<400x128xf32>
    %31 = arith.addf %29, %30 : vector<400x128xf32>
    %cst_10 = arith.constant dense<0.000000e+00> : vector<400xf32>
    %32 = vector.multi_reduction <add>, %1, %cst_10 [1] : vector<400x128xf32> to vector<400xf32>
    %33 = vector.shape_cast %32 : vector<400xf32> to vector<400x1xf32>
    %cst_11 = arith.constant 7.812500e-03 : f32
    %34 = vector.broadcast %cst_11 : f32 to vector<400x1xf32>
    %35 = arith.mulf %33, %34 : vector<400x1xf32>
    %36 = arith.mulf %1, %1 : vector<400x128xf32>
    %cst_12 = arith.constant dense<0.000000e+00> : vector<400xf32>
    %37 = vector.multi_reduction <add>, %36, %cst_12 [1] : vector<400x128xf32> to vector<400xf32>
    %38 = vector.shape_cast %37 : vector<400xf32> to vector<400x1xf32>
    %cst_13 = arith.constant 7.812500e-03 : f32
    %39 = vector.broadcast %cst_13 : f32 to vector<400x1xf32>
    %40 = arith.mulf %38, %39 : vector<400x1xf32>
    %41 = arith.mulf %35, %35 : vector<400x1xf32>
    %42 = arith.subf %40, %41 : vector<400x1xf32>
    %43 = vector.broadcast %35 : vector<400x1xf32> to vector<400x128xf32>
    %44 = arith.subf %1, %43 : vector<400x128xf32>
    %cst_14 = arith.constant 9.99999974E-6 : f32
    %45 = vector.broadcast %cst_14 : f32 to vector<400x1xf32>
    %46 = arith.addf %42, %45 : vector<400x1xf32>
    %47 = math.rsqrt %46 : vector<400x1xf32>
    %48 = vector.broadcast %47 : vector<400x1xf32> to vector<400x128xf32>
    %49 = arith.mulf %44, %48 : vector<400x128xf32>
    %50 = vector.broadcast %5 : vector<1x128xf32> to vector<400x128xf32>
    %51 = arith.mulf %49, %50 : vector<400x128xf32>
    %52 = vector.broadcast %6 : vector<1x128xf32> to vector<400x128xf32>
    %53 = arith.addf %51, %52 : vector<400x128xf32>
    %54 = vector.shape_cast %9 : vector<1x128xi1> to vector<1x128xi1>
    %55 = vector.broadcast %54 : vector<1x128xi1> to vector<400x128xi1>
    %56 = arith.select %55, %53, %31 : vector<400x128xi1>, vector<400x128xf32>
    %57 = arith.addf %56, %0 : vector<400x128xf32>
    %c0_15 = arith.constant 0 : index
    %c0_16 = arith.constant 0 : index
    %58 = vector.load %arg4[%c0_15, %c0_16] : memref<400x128xf32, #tpu.memory_space<vmem>>, vector<400x128xf32>
    tpu.vector_store %arg4[%c0_15, %c0_16], %57 {strides = array<i32>} : memref<400x128xf32, #tpu.memory_space<vmem>>, vector<400x128xf32>,
    %59 = arith.addf %53, %1 : vector<400x128xf32>
    %c0_17 = arith.constant 0 : index
    %c0_18 = arith.constant 0 : index
    %60 = vector.load %arg5[%c0_17, %c0_18] : memref<400x128xf32, #tpu.memory_space<vmem>>, vector<400x128xf32>
    tpu.vector_store %arg5[%c0_17, %c0_18], %59 {strides = array<i32>} : memref<400x128xf32, #tpu.memory_space<vmem>>, vector<400x128xf32>,
    return
  }
  func.func @transform_0(%arg0: i32) -> (i32, i32) {
    %c0_i32 = arith.constant 0 : i32
    %c0_i32_0 = arith.constant 0 : i32
    return %arg0, %c0_i32 : i32, i32
  }
  func.func @transform_1(%arg0: i32) -> (i32, i32) {
    %c0_i32 = arith.constant 0 : i32
    %c0_i32_0 = arith.constant 0 : i32
    return %arg0, %c0_i32 : i32, i32
  }
  func.func @transform_2(%arg0: i32) -> (i32, i32) {
    %c0_i32 = arith.constant 0 : i32
    %c0_i32_0 = arith.constant 0 : i32
    %c0_i32_1 = arith.constant 0 : i32
    return %c0_i32, %c0_i32_0 : i32, i32
  }
  func.func @transform_3(%arg0: i32) -> (i32, i32) {
    %c0_i32 = arith.constant 0 : i32
    %c0_i32_0 = arith.constant 0 : i32
    return %arg0, %c0_i32 : i32, i32
  }
  func.func @transform_4(%arg0: i32) -> (i32, i32) {
    %c0_i32 = arith.constant 0 : i32
    %c0_i32_0 = arith.constant 0 : i32
    return %arg0, %c0_i32 : i32, i32
  }
}

</mosaic_0001>

<bundles_post_ra>
// kernel: tpu_custom_call.1
= control target key start
LH: loop header
LB: loop body
LE: loop exit
PB: predicated region body
PF: predicated region fallthrough
CT: control target
= control target key end

     0   :  { %10 = vsyncpa [#allocation3], 0  ;;  %s7816_s0 = inlined_call_operand.hbm [shape: f32[400,128], index: 0, kind: input, shape index: {}]   ;;  %s7817_s1 = inlined_call_operand.hbm [shape: f32[400,128], index: 1, kind: input, shape index: {}]   ;;  %s7818_s2 = inlined_call_operand.hbm [shape: f32[8,128], index: 2, kind: input, shape index: {}]   ;;  %s7819_s3 = inlined_call_operand.hbm [shape: f32[400,128], index: 3, kind: output, shape index: {0}]   ;;  %s7820_s4 = inlined_call_operand.hbm [shape: f32[400,128], index: 4, kind: output, shape index: {1}]  }
   0x1   :  { %11 = vsyncpa [#allocation6], 0 }
   0x2   :  { %12 = vsyncpa [#allocation4], 0 }
   0x3   :  { %13 = vsyncpa [#allocation10], 0  ;;  %s31_s17 = sshll.u32 %s7817_s1, 4  ;;  %s3349_s18 = smov [#allocation5]   ;;  %s32_s17 = int_to_ptr.hbm [resolvable:$true] %s31_s17 }
   0x4   :  { %s33_s19 = sshll.u32 %s3349_s18, 4  ;;  %s18_s22 = sshll.u32 %s7816_s0, 4  ;;  %s34_s19 = int_to_ptr.vmem [resolvable:$true] %s33_s19  ;;  %s19_s22 = int_to_ptr.hbm [resolvable:$true] %s18_s22 }
   0x5   :  { %s3350_s23 = smov 128   ;;  %s3351_s24 = smov 8  }
   0x6   :  { %39 = dma.hbm_to_vmem [thread:$0]  %s32_s17, 6400, %s34_s19, [#allocation6], %s3350_s23, %s3350_s23, %s3351_s24  }
   0x7   :  { %s3352_s25 = smov [#allocation2]   ;;  %s45_s1 = sshll.u32 %s7818_s2, 4  ;;  %s46_s1 = int_to_ptr.hbm [resolvable:$true] %s45_s1 }
   0x8   :  { %s20_s26 = sshll.u32 %s3352_s25, 4  ;;  %s3353_s0 = smov [#allocation7]   ;;  %s21_s26 = int_to_ptr.vmem [resolvable:$true] %s20_s26 }
   0x9   :  { %26 = dma.hbm_to_vmem [thread:$0]  %s19_s22, 6400, %s21_s26, [#allocation3], %s3350_s23, %s3350_s23, %s3351_s24  }
   0xa   :  { %s47_s29 = sshll.u32 %s3353_s0, 4  ;;  %s48_s29 = int_to_ptr.vmem [resolvable:$true] %s47_s29 }
   0xb   :  { %50 = dma.hbm_to_vmem [thread:$0]  %s46_s1, 128, %s48_s29, [#allocation6]  }
   0xc   :  { %3341 = dma.done.wait [#allocation3], 6400  }
   0xd   :  { %3342 = vsyncadd [#allocation3], 4294960896 }
   0xe   :  { %3343 = dma.done.wait [#allocation6], 6528  }
   0xf   :  { %3344 = vsyncadd [#allocation6], 4294960768  ;;  %v3397_v0 = vld [vmem:[#allocation2 + $0x20] sm:$0xff]  ;;  %v3399_v1 = vld [vmem:[#allocation2 + $0x10] sm:$0xff]  ;;  %s3355_s2 = smov [#allocation9]   ;;  %s2841_s7 = sshll.u32 %s7820_s4, 4  ;;  %s2842_s7 = int_to_ptr.hbm [resolvable:$true] %s2841_s7 }
  0x10   :  { %8041 = vst [vmem:[#allocation15_spill] sm:$0xff] %v3397_v0  ;;  %v3401_v2 = vld [vmem:[#allocation2] sm:$0xff]  ;;  %173 = vadd.xlane.f32.xlu2 %v3397_v0  ;;  %169 = vadd.xlane.f32.xlu1 %v3399_v1  ;;  %v3406_v3 = vld [vmem:[#allocation2 + $0x28] sm:$0xff]  ;;  %v3408_v4 = vld [vmem:[#allocation2 + $0x18] sm:$0xff]  ;;  %v317_v60 = vmul.f32 %v3399_v1, %v3399_v1  ;;  %s2839_s30 = sshll.u32 %s3355_s2, 4  ;;  %s3356_s8 = smov [#allocation8]   ;;  %s2840_s30 = int_to_ptr.vmem [resolvable:$true] %s2839_s30 }
  0x11   :  { %8042 = vst [vmem:[#allocation16_spill] sm:$0xff] %v3399_v1  ;;  %165 = vadd.xlane.f32.xlu0 %v3401_v2  ;;  %v3410_v5 = vld [vmem:[#allocation2 + $0x8] sm:$0xff]  ;;  %v3415_v6 = vld [vmem:[#allocation2 + $0x40] sm:$0xff]  ;;  %v3417_v7 = vld [vmem:[#allocation2 + $0x38] sm:$0xff]  ;;  %v315_v54 = vmul.f32 %v3401_v2, %v3401_v2  ;;  %v318_v61 = vmul.f32 %v3408_v4, %v3408_v4  ;;  %s2826_s9 = sshll.u32 %s3356_s8, 4  ;;  %s2828_s12 = sshll.u32 %s7819_s3, 4  ;;  %s2827_s9 = int_to_ptr.vmem [resolvable:$true] %s2826_s9  ;;  %s2829_s12 = int_to_ptr.hbm [resolvable:$true] %s2828_s12 }
  0x12   :  { %8043 = vst [vmem:[#allocation17_spill] sm:$0xff] %v3401_v2  ;;  %v3419_v8 = vld [vmem:[#allocation2 + $0x30] sm:$0xff]  ;;  %v3424_v9 = vld [vmem:[#allocation2 + $0x58] sm:$0xff]  ;;  %v3428_v11 = vld [vmem:[#allocation2 + $0x48] sm:$0xff]  ;;  %v316_v62 = vmul.f32 %v3410_v5, %v3410_v5 }
  0x13   :  { %8044 = vst [vmem:[#allocation18_spill] sm:$0xff] %v3406_v3  ;;  %v3426_v10 = vld [vmem:[#allocation2 + $0x50] sm:$0xff]  ;;  %v3435_v13 = vld [vmem:[#allocation2 + $0x68] sm:$0xff]  ;;  %v3437_v14 = vld [vmem:[#allocation2 + $0x60] sm:$0xff] }
  0x14   :  { %8045 = vst [vmem:[#allocation19_spill] sm:$0xff] %v3408_v4  ;;  %v3433_v12 = vld [vmem:[#allocation2 + $0x70] sm:$0xff]  ;;  %v3442_v15 = vld [vmem:[#allocation2 + $0x88] sm:$0xff]  ;;  %v3444_v16 = vld [vmem:[#allocation2 + $0x80] sm:$0xff] }
  0x15   :  { %8046 = vst [vmem:[#allocation20_spill] sm:$0xff] %v3410_v5  ;;  %v3446_v17 = vld [vmem:[#allocation2 + $0x78] sm:$0xff]  ;;  %v3451_v18 = vld [vmem:[#allocation2 + $0xa0] sm:$0xff]  ;;  %v3455_v20 = vld [vmem:[#allocation2 + $0x90] sm:$0xff] }
  0x16   :  { %8047 = vst [vmem:[#allocation21_spill] sm:$0xff] %v3415_v6  ;;  %v3453_v19 = vld [vmem:[#allocation2 + $0x98] sm:$0xff]  ;;  %v3462_v22 = vld [vmem:[#allocation2 + $0xb0] sm:$0xff]  ;;  %v3464_v23 = vld [vmem:[#allocation2 + $0xa8] sm:$0xff] }
  0x17   :  { %8048 = vst [vmem:[#allocation22_spill] sm:$0xff] %v3419_v8  ;;  %v3460_v21 = vld [vmem:[#allocation2 + $0xb8] sm:$0xff]  ;;  %v3469_v24 = vld [vmem:[#allocation2 + $0xd0] sm:$0xff]  ;;  %v3471_v25 = vld [vmem:[#allocation2 + $0xc8] sm:$0xff] }
  0x18   :  { %175 = vadd.xlane.f32.xlu2 %v3406_v3  ;;  %171 = vadd.xlane.f32.xlu1 %v3408_v4  ;;  %8049 = vst [vmem:[#allocation23_spill] sm:$0xff] %v3424_v9  ;;  %v3473_v26 = vld [vmem:[#allocation2 + $0xc0] sm:$0xff]  ;;  %v3478_v27 = vld [vmem:[#allocation2 + $0xe8] sm:$0xff]  ;;  %v3482_v29 = vld [vmem:[#allocation2 + $0xd8] sm:$0xff]  ;;  %v319_v4 = vmul.f32 %v3397_v0, %v3397_v0 }
  0x19   :  { %167 = vadd.xlane.f32.xlu0 %v3410_v5  ;;  %8050 = vst [vmem:[#allocation24_spill] sm:$0xff] %v3426_v10  ;;  %v3480_v28 = vld [vmem:[#allocation2 + $0xe0] sm:$0xff]  ;;  %v3489_v31 = vld [vmem:[#allocation2 + $0xf8] sm:$0xff]  ;;  %v3491_v32 = vld [vmem:[#allocation2 + $0xf0] sm:$0xff]  ;;  %v324_v5 = vmul.f32 %v3428_v11, %v3428_v11 }
  0x1a   :  { %8051 = vst [vmem:[#allocation25_spill] sm:$0xff] %v3428_v11  ;;  %v3487_v30 = vld [vmem:[#allocation2 + $0x100] sm:$0xff]  ;;  %v3496_v33 = vld [vmem:[#allocation2 + $0x118] sm:$0xff]  ;;  %v3498_v34 = vld [vmem:[#allocation2 + $0x110] sm:$0xff] }
  0x1b   :  { %8052 = vst [vmem:[#allocation26_spill] sm:$0xff] %v3433_v12  ;;  %v3500_v35 = vld [vmem:[#allocation2 + $0x108] sm:$0xff]  ;;  %v3505_v36 = vld [vmem:[#allocation2 + $0x130] sm:$0xff]  ;;  %v3509_v38 = vld [vmem:[#allocation2 + $0x120] sm:$0xff] }
  0x1c   :  { %8053 = vst [vmem:[#allocation27_spill] sm:$0xff] %v3435_v13  ;;  %v3507_v37 = vld [vmem:[#allocation2 + $0x128] sm:$0xff]  ;;  %v3516_v40 = vld [vmem:[#allocation2 + $0x140] sm:$0xff]  ;;  %v3518_v41 = vld [vmem:[#allocation2 + $0x138] sm:$0xff] }
  0x1d   :  { %8054 = vst [vmem:[#allocation28_spill] sm:$0xff] %v3437_v14  ;;  %v3514_v39 = vld [vmem:[#allocation2 + $0x148] sm:$0xff]  ;;  %v3523_v42 = vld [vmem:[#allocation2 + $0x160] sm:$0xff]  ;;  %v3525_v43 = vld [vmem:[#allocation2 + $0x158] sm:$0xff] }
  0x1e   :  { %8055 = vst [vmem:[#allocation29_spill] sm:$0xff] %v3442_v15  ;;  %v3527_v44 = vld [vmem:[#allocation2 + $0x150] sm:$0xff]  ;;  %v3538_v48 = vld [vmem:[#allocation2 + $0x178] sm:$0xff]  ;;  %v3542_v50 = vld [vmem:[#allocation2 + $0x168] sm:$0xff] }
  0x1f   :  { %8056 = vst [vmem:[#allocation30_spill] sm:$0xff] %v3444_v16  ;;  %v3540_v49 = vld [vmem:[#allocation2 + $0x170] sm:$0xff]  ;;  %v3555_v55 = vld [vmem:[#allocation2 + $0x188] sm:$0xff]  ;;  %v3557_v56 = vld [vmem:[#allocation2 + $0x180] sm:$0xff] }
  0x20   :  { %181 = vadd.xlane.f32.xlu2 %v3415_v6  ;;  %179 = vadd.xlane.f32.xlu1 %v3417_v7  ;;  %8057 = vst [vmem:[#allocation31_spill] sm:$0xff] %v3446_v17  ;;  %v132_v1 = vld [vmem:[#allocation5 + $0x98] sm:$0xff] }
  0x21   :  { %177 = vadd.xlane.f32.xlu0 %v3419_v8  ;;  %8058 = vst [vmem:[#allocation32_spill] sm:$0xff] %v3451_v18 }
  0x22   :  { %8059 = vst [vmem:[#allocation33_spill] sm:$0xff] %v3453_v19 }
  0x23   :  { %8060 = vst [vmem:[#allocation34_spill] sm:$0xff] %v3455_v20 }
  0x24   :  { %8061 = vst [vmem:[#allocation35_spill] sm:$0xff] %v3460_v21 }
  0x25   :  { %8062 = vst [vmem:[#allocation36_spill] sm:$0xff] %v3462_v22 }
  0x26   :  { %8063 = vst [vmem:[#allocation37_spill] sm:$0xff] %v3464_v23 }
  0x27   :  { %8064 = vst [vmem:[#allocation38_spill] sm:$0xff] %v3469_v24 }
  0x28   :  { %187 = vadd.xlane.f32.xlu2 %v3424_v9  ;;  %185 = vadd.xlane.f32.xlu1 %v3426_v10  ;;  %8065 = vst [vmem:[#allocation39_spill] sm:$0xff] %v3471_v25 }
  0x29   :  { %183 = vadd.xlane.f32.xlu0 %v3428_v11  ;;  %8066 = vst [vmem:[#allocation40_spill] sm:$0xff] %v3473_v26  ;;  %v325_v11 = vmul.f32 %v3426_v10, %v3426_v10 }
  0x2a   :  { %8067 = vst [vmem:[#allocation41_spill] sm:$0xff] %v3478_v27 }
  0x2b   :  { %8068 = vst [vmem:[#allocation42_spill] sm:$0xff] %v3480_v28 }
  0x2c   :  { %8069 = vst [vmem:[#allocation43_spill] sm:$0xff] %v3482_v29 }
  0x2d   :  { %8070 = vst [vmem:[#allocation44_spill] sm:$0xff] %v3487_v30 }
  0x2e   :  { %8071 = vst [vmem:[#allocation45_spill] sm:$0xff] %v3489_v31 }
  0x2f   :  { %8072 = vst [vmem:[#allocation46_spill] sm:$0xff] %v3491_v32 }
  0x30   :  { %193 = vadd.xlane.f32.xlu2 %v3433_v12  ;;  %191 = vadd.xlane.f32.xlu1 %v3435_v13  ;;  %8073 = vst [vmem:[#allocation47_spill] sm:$0xff] %v3496_v33 }
  0x31   :  { %189 = vadd.xlane.f32.xlu0 %v3437_v14  ;;  %8074 = vst [vmem:[#allocation48_spill] sm:$0xff] %v3498_v34 }
  0x32   :  { %8075 = vst [vmem:[#allocation49_spill] sm:$0xff] %v3500_v35 }
  0x33   :  { %8076 = vst [vmem:[#allocation50_spill] sm:$0xff] %v3505_v36 }
  0x34   :  { %8077 = vst [vmem:[#allocation51_spill] sm:$0xff] %v3507_v37 }
  0x35   :  { %8078 = vst [vmem:[#allocation52_spill] sm:$0xff] %v3509_v38 }
  0x36   :  { %8079 = vst [vmem:[#allocation53_spill] sm:$0xff] %v3514_v39 }
  0x37   :  { %8080 = vst [vmem:[#allocation54_spill] sm:$0xff] %v3516_v40 }
  0x38   :  { %199 = vadd.xlane.f32.xlu2 %v3442_v15  ;;  %197 = vadd.xlane.f32.xlu1 %v3444_v16  ;;  %8081 = vst [vmem:[#allocation55_spill] sm:$0xff] %v3518_v41 }
  0x39   :  { %195 = vadd.xlane.f32.xlu0 %v3446_v17  ;;  %8082 = vst [vmem:[#allocation56_spill] sm:$0xff] %v3523_v42 }
  0x3a   :  { %8083 = vst [vmem:[#allocation57_spill] sm:$0xff] %v3525_v43 }
  0x3b   :  { %8084 = vst [vmem:[#allocation58_spill] sm:$0xff] %v3527_v44 }
  0x3c   :  { %8085 = vst [vmem:[#allocation59_spill] sm:$0xff] %v3538_v48 }
  0x3d   :  { %8086 = vst [vmem:[#allocation60_spill] sm:$0xff] %v3540_v49 }
  0x3e   :  { %8087 = vst [vmem:[#allocation61_spill] sm:$0xff] %v3542_v50 }
  0x3f   :  { %8088 = vst [vmem:[#allocation62_spill] sm:$0xff] %v3555_v55 }
  0x40   :  { %205 = vadd.xlane.f32.xlu2 %v3451_v18  ;;  %203 = vadd.xlane.f32.xlu1 %v3453_v19 }
  0x41   :  { %201 = vadd.xlane.f32.xlu0 %v3455_v20 }
  0x48   :  { %211 = vadd.xlane.f32.xlu2 %v3460_v21  ;;  %209 = vadd.xlane.f32.xlu1 %v3462_v22 }
  0x49   :  { %207 = vadd.xlane.f32.xlu0 %v3464_v23 }
  0x50   :  { %217 = vadd.xlane.f32.xlu2 %v3469_v24  ;;  %215 = vadd.xlane.f32.xlu1 %v3471_v25 }
  0x51   :  { %213 = vadd.xlane.f32.xlu0 %v3473_v26 }
  0x58   :  { %223 = vadd.xlane.f32.xlu2 %v3478_v27  ;;  %221 = vadd.xlane.f32.xlu1 %v3480_v28 }
  0x59   :  { %219 = vadd.xlane.f32.xlu0 %v3482_v29 }
  0x60   :  { %229 = vadd.xlane.f32.xlu2 %v3487_v30  ;;  %227 = vadd.xlane.f32.xlu1 %v3489_v31 }
  0x61   :  { %225 = vadd.xlane.f32.xlu0 %v3491_v32 }
  0x68   :  { %235 = vadd.xlane.f32.xlu2 %v3496_v33  ;;  %233 = vadd.xlane.f32.xlu1 %v3498_v34 }
  0x69   :  { %231 = vadd.xlane.f32.xlu0 %v3500_v35 }
  0x70   :  { %241 = vadd.xlane.f32.xlu2 %v3505_v36  ;;  %239 = vadd.xlane.f32.xlu1 %v3507_v37 }
  0x71   :  { %237 = vadd.xlane.f32.xlu0 %v3509_v38 }
  0x78   :  { %247 = vadd.xlane.f32.xlu2 %v3514_v39  ;;  %245 = vadd.xlane.f32.xlu1 %v3516_v40 }
  0x79   :  { %243 = vadd.xlane.f32.xlu0 %v3518_v41 }
  0x80   :  { %253 = vadd.xlane.f32.xlu2 %v3523_v42  ;;  %251 = vadd.xlane.f32.xlu1 %v3525_v43 }
  0x81   :  { %249 = vadd.xlane.f32.xlu0 %v3527_v44 }
  0x83   :  { %v3532_v45 = vpop.xlane.xlu2 %173  ;;  %v3534_v46 = vpop.xlane.xlu1 %169 }
  0x84   :  { %v3536_v47 = vpop.xlane.xlu0 %165 }
  0x88   :  { %259 = vadd.xlane.f32.xlu2 %v3538_v48  ;;  %257 = vadd.xlane.f32.xlu1 %v3540_v49 }
  0x89   :  { %255 = vadd.xlane.f32.xlu0 %v3542_v50 }
  0x8b   :  { %v3547_v51 = vpop.xlane.xlu2 %175  ;;  %v3549_v52 = vpop.xlane.xlu1 %171 }
  0x8c   :  { %v3551_v53 = vpop.xlane.xlu0 %167 }
  0x90   :  { %263 = vadd.xlane.f32.xlu1 %v3555_v55  ;;  %365 = vadd.xlane.f32.xlu2 %v315_v54 }
  0x91   :  { %261 = vadd.xlane.f32.xlu0 %v3557_v56 }
  0x93   :  { %v3561_v57 = vpop.xlane.xlu2 %181  ;;  %v3563_v58 = vpop.xlane.xlu1 %179 }
  0x94   :  { %8089 = vst [vmem:[#allocation63_spill] sm:$0xff] %v3563_v58  ;;  %v3565_v59 = vpop.xlane.xlu0 %177  ;;  %v321_v58 = vmul.f32 %v3419_v8, %v3419_v8  ;;  %v322_v8 = vmul.f32 %v3417_v7, %v3417_v7 }
  0x95   :  { %8090 = vst [vmem:[#allocation64_spill] sm:$0xff] %v3565_v59  ;;  %v320_v59 = vmul.f32 %v3406_v3, %v3406_v3 }
  0x98   :  { %369 = vadd.xlane.f32.xlu1 %v317_v60  ;;  %371 = vadd.xlane.f32.xlu2 %v318_v61 }
  0x99   :  { %367 = vadd.xlane.f32.xlu0 %v316_v62 }
  0x9b   :  { %v3573_v63 = vpop.xlane.xlu2 %187  ;;  %v3575_v54 = vpop.xlane.xlu1 %185 }
  0x9c   :  { %v3577_v2 = vpop.xlane.xlu0 %183 }
  0x9d   :  { %8091 = vst [vmem:[#allocation65_spill] sm:$0xff] %v3577_v2  ;;  %v323_v2 = vmul.f32 %v3415_v6, %v3415_v6 }
  0xa0   :  { %375 = vadd.xlane.f32.xlu1 %v320_v59  ;;  %377 = vadd.xlane.f32.xlu2 %v321_v58 }
  0xa1   :  { %373 = vadd.xlane.f32.xlu0 %v319_v4 }
  0xa3   :  { %v3585_v60 = vpop.xlane.xlu2 %193  ;;  %v3587_v61 = vpop.xlane.xlu1 %191 }
  0xa4   :  { %8092 = vst [vmem:[#allocation66_spill] sm:$0xff] %v3587_v61  ;;  %v3589_v62 = vpop.xlane.xlu0 %189  ;;  %v327_v61 = vmul.f32 %v3437_v14, %v3437_v14  ;;  %v328_v14 = vmul.f32 %v3435_v13, %v3435_v13  ;;  %v8150_v0 = vld [vmem:[#allocation65_spill] sm:$0xff] }
  0xa5   :  { %8093 = vst [vmem:[#allocation67_spill] sm:$0xff] %v3589_v62  ;;  %v326_v62 = vmul.f32 %v3424_v9, %v3424_v9 }
  0xa8   :  { %381 = vadd.xlane.f32.xlu1 %v323_v2  ;;  %383 = vadd.xlane.f32.xlu2 %v324_v5 }
  0xa9   :  { %379 = vadd.xlane.f32.xlu0 %v322_v8 }
  0xab   :  { %v3597_v58 = vpop.xlane.xlu2 %199  ;;  %v3599_v4 = vpop.xlane.xlu1 %197 }
  0xac   :  { %8094 = vst [vmem:[#allocation68_spill] sm:$0xff] %v3599_v4  ;;  %v3601_v59 = vpop.xlane.xlu0 %195  ;;  %v330_v4 = vmul.f32 %v3446_v17, %v3446_v17  ;;  %v331_v17 = vmul.f32 %v3444_v16, %v3444_v16 }
  0xad   :  { %8095 = vst [vmem:[#allocation69_spill] sm:$0xff] %v3601_v59  ;;  %v329_v59 = vmul.f32 %v3433_v12, %v3433_v12 }
  0xb0   :  { %387 = vadd.xlane.f32.xlu1 %v326_v62  ;;  %389 = vadd.xlane.f32.xlu2 %v327_v61 }
  0xb1   :  { %385 = vadd.xlane.f32.xlu0 %v325_v11 }
  0xb3   :  { %v3609_v2 = vpop.xlane.xlu2 %205  ;;  %v3611_v5 = vpop.xlane.xlu1 %203 }
  0xb4   :  { %8096 = vst [vmem:[#allocation70_spill] sm:$0xff] %v3611_v5  ;;  %v3613_v8 = vpop.xlane.xlu0 %201  ;;  %v333_v5 = vmul.f32 %v3455_v20, %v3455_v20  ;;  %v334_v20 = vmul.f32 %v3453_v19, %v3453_v19  ;;  %v3941_v10 = vmul.f32 0.0078125, %v3609_v2 }
  0xb5   :  { %8097 = vst [vmem:[#allocation71_spill] sm:$0xff] %v3613_v8  ;;  %v332_v8 = vmul.f32 %v3442_v15, %v3442_v15  ;;  %v135_v15 = vld [vmem:[#allocation5 + $0xb0] sm:$0xff] }
  0xb6   :  { %8167 = vst [vmem:[#allocation121_spill] sm:$0xff] %v3941_v10 }
  0xb8   :  { %393 = vadd.xlane.f32.xlu1 %v329_v59  ;;  %395 = vadd.xlane.f32.xlu2 %v330_v4 }
  0xb9   :  { %391 = vadd.xlane.f32.xlu0 %v328_v14 }
  0xbb   :  { %v3621_v61 = vpop.xlane.xlu2 %211  ;;  %v3623_v11 = vpop.xlane.xlu1 %209 }
  0xbc   :  { %8098 = vst [vmem:[#allocation72_spill] sm:$0xff] %v3623_v11  ;;  %v3625_v62 = vpop.xlane.xlu0 %207  ;;  %v336_v11 = vmul.f32 %v3464_v23, %v3464_v23  ;;  %v337_v23 = vmul.f32 %v3462_v22, %v3462_v22  ;;  %v8171_v12 = vld [vmem:[#allocation71_spill] sm:$0xff] }
  0xbd   :  { %8099 = vst [vmem:[#allocation73_spill] sm:$0xff] %v3625_v62  ;;  %v335_v62 = vmul.f32 %v3451_v18, %v3451_v18 }
  0xc0   :  { %399 = vadd.xlane.f32.xlu1 %v332_v8  ;;  %401 = vadd.xlane.f32.xlu2 %v333_v5 }
  0xc1   :  { %397 = vadd.xlane.f32.xlu0 %v331_v17 }
  0xc3   :  { %v3633_v4 = vpop.xlane.xlu2 %217  ;;  %v3635_v14 = vpop.xlane.xlu1 %215 }
  0xc4   :  { %8100 = vst [vmem:[#allocation74_spill] sm:$0xff] %v3635_v14  ;;  %v3637_v59 = vpop.xlane.xlu0 %213  ;;  %v339_v14 = vmul.f32 %v3473_v26, %v3473_v26  ;;  %v340_v26 = vmul.f32 %v3471_v25, %v3471_v25 }
  0xc5   :  { %8101 = vst [vmem:[#allocation75_spill] sm:$0xff] %v3637_v59  ;;  %v338_v59 = vmul.f32 %v3460_v21, %v3460_v21 }
  0xc8   :  { %405 = vadd.xlane.f32.xlu1 %v335_v62  ;;  %407 = vadd.xlane.f32.xlu2 %v336_v11 }
  0xc9   :  { %403 = vadd.xlane.f32.xlu0 %v334_v20 }
  0xcb   :  { %v3645_v5 = vpop.xlane.xlu2 %223  ;;  %v3647_v17 = vpop.xlane.xlu1 %221 }
  0xcc   :  { %8102 = vst [vmem:[#allocation76_spill] sm:$0xff] %v3647_v17  ;;  %v3649_v8 = vpop.xlane.xlu0 %219  ;;  %v342_v17 = vmul.f32 %v3482_v29, %v3482_v29  ;;  %v343_v29 = vmul.f32 %v3480_v28, %v3480_v28  ;;  %v8183_v19 = vld [vmem:[#allocation75_spill] sm:$0xff] }
  0xcd   :  { %8103 = vst [vmem:[#allocation77_spill] sm:$0xff] %v3649_v8  ;;  %v341_v8 = vmul.f32 %v3469_v24, %v3469_v24 }
  0xd0   :  { %411 = vadd.xlane.f32.xlu1 %v338_v59  ;;  %413 = vadd.xlane.f32.xlu2 %v339_v14 }
  0xd1   :  { %409 = vadd.xlane.f32.xlu0 %v337_v23 }
  0xd3   :  { %v3657_v11 = vpop.xlane.xlu2 %229  ;;  %v3659_v20 = vpop.xlane.xlu1 %227 }
  0xd4   :  { %8104 = vst [vmem:[#allocation78_spill] sm:$0xff] %v3659_v20  ;;  %v3661_v62 = vpop.xlane.xlu0 %225  ;;  %v345_v20 = vmul.f32 %v3491_v32, %v3491_v32  ;;  %v346_v32 = vmul.f32 %v3489_v31, %v3489_v31 }
  0xd5   :  { %8105 = vst [vmem:[#allocation79_spill] sm:$0xff] %v3661_v62  ;;  %v344_v62 = vmul.f32 %v3478_v27, %v3478_v27 }
  0xd8   :  { %417 = vadd.xlane.f32.xlu1 %v341_v8  ;;  %419 = vadd.xlane.f32.xlu2 %v342_v17 }
  0xd9   :  { %415 = vadd.xlane.f32.xlu0 %v340_v26 }
  0xdb   :  { %v3669_v14 = vpop.xlane.xlu2 %235  ;;  %v3671_v23 = vpop.xlane.xlu1 %233 }
  0xdc   :  { %8106 = vst [vmem:[#allocation80_spill] sm:$0xff] %v3671_v23  ;;  %v3673_v59 = vpop.xlane.xlu0 %231  ;;  %v348_v23 = vmul.f32 %v3500_v35, %v3500_v35  ;;  %v349_v35 = vmul.f32 %v3498_v34, %v3498_v34 }
  0xdd   :  { %8107 = vst [vmem:[#allocation81_spill] sm:$0xff] %v3673_v59  ;;  %v347_v59 = vmul.f32 %v3487_v30, %v3487_v30 }
  0xe0   :  { %423 = vadd.xlane.f32.xlu1 %v344_v62  ;;  %425 = vadd.xlane.f32.xlu2 %v345_v20 }
  0xe1   :  { %421 = vadd.xlane.f32.xlu0 %v343_v29 }
  0xe3   :  { %v3681_v17 = vpop.xlane.xlu2 %241  ;;  %v3683_v26 = vpop.xlane.xlu1 %239 }
  0xe4   :  { %8108 = vst [vmem:[#allocation82_spill] sm:$0xff] %v3683_v26  ;;  %v3685_v8 = vpop.xlane.xlu0 %237  ;;  %v351_v26 = vmul.f32 %v3509_v38, %v3509_v38  ;;  %v352_v38 = vmul.f32 %v3507_v37, %v3507_v37 }
  0xe5   :  { %8109 = vst [vmem:[#allocation83_spill] sm:$0xff] %v3685_v8  ;;  %v350_v8 = vmul.f32 %v3496_v33, %v3496_v33 }
  0xe8   :  { %429 = vadd.xlane.f32.xlu1 %v347_v59  ;;  %431 = vadd.xlane.f32.xlu2 %v348_v23 }
  0xe9   :  { %427 = vadd.xlane.f32.xlu0 %v346_v32 }
  0xeb   :  { %v3693_v20 = vpop.xlane.xlu2 %247  ;;  %v3695_v29 = vpop.xlane.xlu1 %245 }
  0xec   :  { %8110 = vst [vmem:[#allocation84_spill] sm:$0xff] %v3695_v29  ;;  %v3697_v62 = vpop.xlane.xlu0 %243  ;;  %v354_v29 = vmul.f32 %v3518_v41, %v3518_v41  ;;  %v355_v41 = vmul.f32 %v3516_v40, %v3516_v40 }
  0xed   :  { %8111 = vst [vmem:[#allocation85_spill] sm:$0xff] %v3697_v62  ;;  %v353_v62 = vmul.f32 %v3505_v36, %v3505_v36 }
  0xf0   :  { %435 = vadd.xlane.f32.xlu1 %v350_v8  ;;  %437 = vadd.xlane.f32.xlu2 %v351_v26 }
  0xf1   :  { %433 = vadd.xlane.f32.xlu0 %v349_v35 }
  0xf3   :  { %v3705_v23 = vpop.xlane.xlu2 %253  ;;  %v3707_v32 = vpop.xlane.xlu1 %251 }
  0xf4   :  { %8112 = vst [vmem:[#allocation86_spill] sm:$0xff] %v3705_v23  ;;  %v3709_v59 = vpop.xlane.xlu0 %249 }
  0xf5   :  { %8113 = vst [vmem:[#allocation87_spill] sm:$0xff] %v3707_v32  ;;  %v357_v32 = vmul.f32 %v3527_v44, %v3527_v44  ;;  %v358_v44 = vmul.f32 %v3525_v43, %v3525_v43  ;;  %v364_v43 = vmul.f32 %v3555_v55, %v3555_v55 }
  0xf6   :  { %8114 = vst [vmem:[#allocation88_spill] sm:$0xff] %v3709_v59  ;;  %v356_v59 = vmul.f32 %v3514_v39, %v3514_v39  ;;  %v3786_v39 = vmul.f32 0.0078125, %v3532_v45  ;;  %v3804_v45 = vmul.f32 0.0078125, %v3549_v52 }
  0xf8   :  { %441 = vadd.xlane.f32.xlu1 %v353_v62  ;;  %443 = vadd.xlane.f32.xlu2 %v354_v29  ;;  %8132 = vst [vmem:[#allocation106_spill] sm:$0xff] %v3786_v39 }
  0xf9   :  { %439 = vadd.xlane.f32.xlu0 %v352_v38  ;;  %8139 = vst [vmem:[#allocation113_spill] sm:$0xff] %v3804_v45 }
  0xfb   :  { %v3717_v26 = vpop.xlane.xlu2 %259  ;;  %v3719_v35 = vpop.xlane.xlu1 %257 }
  0xfc   :  { %8115 = vst [vmem:[#allocation89_spill] sm:$0xff] %v3717_v26  ;;  %v3721_v8 = vpop.xlane.xlu0 %255  ;;  %v113_v26 = vld [vmem:[#allocation5] sm:$0xff] }
  0xfd   :  { %8116 = vst [vmem:[#allocation90_spill] sm:$0xff] %v3719_v35  ;;  %v360_v35 = vmul.f32 %v3542_v50, %v3542_v50  ;;  %v361_v50 = vmul.f32 %v3540_v49, %v3540_v49 }
  0xfe   :  { %8117 = vst [vmem:[#allocation91_spill] sm:$0xff] %v3721_v8  ;;  %v359_v8 = vmul.f32 %v3523_v42, %v3523_v42  ;;  %v115_v42 = vld [vmem:[#allocation5 + $0x10] sm:$0xff] }
 0x100   :  { %447 = vadd.xlane.f32.xlu1 %v356_v59  ;;  %449 = vadd.xlane.f32.xlu2 %v357_v32 }
 0x101   :  { %445 = vadd.xlane.f32.xlu0 %v355_v41 }
 0x103   :  { %v3729_v29 = vpop.xlane.xlu1 %263  ;;  %v3731_v38 = vpop.xlane.xlu2 %365 }
 0x104   :  { %8118 = vst [vmem:[#allocation92_spill] sm:$0xff] %v3729_v29  ;;  %v3733_v62 = vpop.xlane.xlu0 %261  ;;  %v363_v29 = vmul.f32 %v3557_v56, %v3557_v56 }
 0x105   :  { %8119 = vst [vmem:[#allocation93_spill] sm:$0xff] %v3733_v62  ;;  %v362_v62 = vmul.f32 %v3538_v48, %v3538_v48  ;;  %v114_v48 = vld [vmem:[#allocation5 + $0x8] sm:$0xff] }
 0x108   :  { %453 = vadd.xlane.f32.xlu1 %v359_v8  ;;  %455 = vadd.xlane.f32.xlu2 %v360_v35 }
 0x109   :  { %451 = vadd.xlane.f32.xlu0 %v358_v44 }
 0x10b   :  { %v3741_v32 = vpop.xlane.xlu1 %369  ;;  %v3743_v41 = vpop.xlane.xlu2 %371 }
 0x10c   :  { %v3745_v59 = vpop.xlane.xlu0 %367 }
 0x110   :  { %459 = vadd.xlane.f32.xlu1 %v362_v62  ;;  %461 = vadd.xlane.f32.xlu2 %v363_v29  ;;  %v117_v62 = vld [vmem:[#allocation5 + $0x20] sm:$0xff] }
 0x111   :  { %457 = vadd.xlane.f32.xlu0 %v361_v50  ;;  %v116_v50 = vld [vmem:[#allocation5 + $0x18] sm:$0xff] }
 0x113   :  { %v3753_v35 = vpop.xlane.xlu1 %375  ;;  %v3755_v44 = vpop.xlane.xlu2 %377 }
 0x114   :  { %v3757_v8 = vpop.xlane.xlu0 %373 }
 0x118   :  { %1367 = vadd.xlane.f32.xlu1 %v113_v26  ;;  %1369 = vadd.xlane.f32.xlu2 %v114_v48  ;;  %v119_v48 = vld [vmem:[#allocation5 + $0x30] sm:$0xff]  ;;  %v118_v26 = vld [vmem:[#allocation5 + $0x28] sm:$0xff] }
 0x119   :  { %463 = vadd.xlane.f32.xlu0 %v364_v43  ;;  %v120_v43 = vld [vmem:[#allocation5 + $0x38] sm:$0xff] }
 0x11b   :  { %v3761_v56 = vpop.xlane.xlu1 %381  ;;  %v3763_v49 = vpop.xlane.xlu2 %383 }
 0x11c   :  { %8120 = vst [vmem:[#allocation94_spill] sm:$0xff] %v3761_v56  ;;  %v3765_v29 = vpop.xlane.xlu0 %379 }
 0x11d   :  { %8121 = vst [vmem:[#allocation95_spill] sm:$0xff] %v3763_v49 }
 0x11e   :  { %8122 = vst [vmem:[#allocation96_spill] sm:$0xff] %v3765_v29 }
 0x120   :  { %1373 = vadd.xlane.f32.xlu1 %v116_v50  ;;  %1375 = vadd.xlane.f32.xlu2 %v117_v62  ;;  %v122_v50 = vld [vmem:[#allocation5 + $0x48] sm:$0xff]  ;;  %v123_v62 = vld [vmem:[#allocation5 + $0x50] sm:$0xff] }
 0x121   :  { %1371 = vadd.xlane.f32.xlu0 %v115_v42  ;;  %v121_v42 = vld [vmem:[#allocation5 + $0x40] sm:$0xff] }
 0x123   :  { %v3767_v40 = vpop.xlane.xlu1 %387  ;;  %v3769_v23 = vpop.xlane.xlu2 %389 }
 0x124   :  { %8123 = vst [vmem:[#allocation97_spill] sm:$0xff] %v3767_v40  ;;  %v3771_v55 = vpop.xlane.xlu0 %385  ;;  %v125_v40 = vld [vmem:[#allocation5 + $0x60] sm:$0xff] }
 0x125   :  { %8124 = vst [vmem:[#allocation98_spill] sm:$0xff] %v3769_v23 }
 0x126   :  { %8125 = vst [vmem:[#allocation99_spill] sm:$0xff] %v3771_v55 }
 0x128   :  { %1379 = vadd.xlane.f32.xlu1 %v119_v48  ;;  %1381 = vadd.xlane.f32.xlu2 %v120_v43  ;;  %v124_v43 = vld [vmem:[#allocation5 + $0x58] sm:$0xff] }
 0x129   :  { %1377 = vadd.xlane.f32.xlu0 %v118_v26  ;;  %v126_v26 = vld [vmem:[#allocation5 + $0x68] sm:$0xff] }
 0x12b   :  { %v3773_v49 = vpop.xlane.xlu1 %393  ;;  %v3777_v56 = vpop.xlane.xlu2 %395 }
 0x12c   :  { %8126 = vst [vmem:[#allocation100_spill] sm:$0xff] %v3773_v49  ;;  %v3775_v29 = vpop.xlane.xlu0 %391  ;;  %v129_v49 = vld [vmem:[#allocation5 + $0x80] sm:$0xff] }
 0x12d   :  { %8127 = vst [vmem:[#allocation101_spill] sm:$0xff] %v3775_v29  ;;  %v128_v29 = vld [vmem:[#allocation5 + $0x78] sm:$0xff] }
 0x12e   :  { %8128 = vst [vmem:[#allocation102_spill] sm:$0xff] %v3777_v56  ;;  %v127_v56 = vld [vmem:[#allocation5 + $0x70] sm:$0xff] }
 0x130   :  { %1385 = vadd.xlane.f32.xlu1 %v122_v50  ;;  %1387 = vadd.xlane.f32.xlu2 %v123_v62  ;;  %v3793_v62 = vmul.f32 0.0078125, %v3534_v46  ;;  %v3849_v46 = vmul.f32 0.0078125, %v3573_v63 }
 0x131   :  { %1383 = vadd.xlane.f32.xlu0 %v121_v42 }
 0x132   :  { %8135 = vst [vmem:[#allocation109_spill] sm:$0xff] %v3793_v62 }
 0x133   :  { %v3779_v23 = vpop.xlane.xlu1 %399  ;;  %v3783_v48 = vpop.xlane.xlu2 %401 }
 0x134   :  { %8129 = vst [vmem:[#allocation103_spill] sm:$0xff] %v3779_v23  ;;  %v3781_v55 = vpop.xlane.xlu0 %397  ;;  %v3852_v23 = vmul.f32 0.0078125, %v3575_v54 }
 0x135   :  { %8130 = vst [vmem:[#allocation104_spill] sm:$0xff] %v3781_v55 }
 0x136   :  { %8131 = vst [vmem:[#allocation105_spill] sm:$0xff] %v3783_v48  ;;  %v3796_v48 = vmul.f32 0.0078125, %v3536_v47  ;;  %v3813_v47 = vmul.f32 0.0078125, %v3551_v53 }
 0x137   :  { %8148 = vst [vmem:[#allocation116_spill] sm:$0xff] %v3852_v23 }
 0x138   :  { %1391 = vadd.xlane.f32.xlu1 %v125_v40  ;;  %1393 = vadd.xlane.f32.xlu2 %v126_v26  ;;  %8136 = vst [vmem:[#allocation110_spill] sm:$0xff] %v3796_v48  ;;  %v3801_v40 = vmul.f32 0.0078125, %v3547_v51  ;;  %v3820_v51 = vmul.f32 %v3793_v62, %v3793_v62  ;;  %v3826_v52 = vmul.f32 %v3796_v48, %v3796_v48  ;;  %v130_v62 = vld [vmem:[#allocation5 + $0x88] sm:$0xff]  ;;  %v3876_v48 = vmul.f32 0.0078125, %v3585_v60 }
 0x139   :  { %1389 = vadd.xlane.f32.xlu0 %v124_v43  ;;  %v3808_v43 = vmul.f32 %v3786_v39, %v3786_v39  ;;  %8140 = vst [vmem:[#allocation114_spill] sm:$0xff] %v3813_v47  ;;  %v3844_v39 = vmul.f32 %v3804_v45, %v3804_v45  ;;  %v3865_v45 = vmul.f32 0.0078125, %v8150_v0  ;;  %v8153_v0 = vld [vmem:[#allocation22_spill] sm:$0xff]  ;;  %v3896_v60 = vmul.f32 %v3849_v46, %v3849_v46 }
 0x13a   :  { %8138 = vst [vmem:[#allocation112_spill] sm:$0xff] %v3801_v40 }
 0x13b   :  { %v3788_v50 = vpop.xlane.xlu1 %405  ;;  %v3798_v55 = vpop.xlane.xlu2 %407  ;;  %8151 = vst [vmem:[#allocation65_spill] sm:$0xff] %v3865_v45 }
 0x13c   :  { %8133 = vst [vmem:[#allocation107_spill] sm:$0xff] %v3788_v50  ;;  %v3790_v42 = vpop.xlane.xlu0 %403 }
 0x13d   :  { %8134 = vst [vmem:[#allocation108_spill] sm:$0xff] %v3790_v42  ;;  %v8145_v42 = vld [vmem:[#allocation64_spill] sm:$0xff] }
 0x13e   :  { %8137 = vst [vmem:[#allocation111_spill] sm:$0xff] %v3798_v55  ;;  %v3840_v50 = vmul.f32 0.0078125, %v8145_v42  ;;  %v3856_v42 = vmul.f32 %v3813_v47, %v3813_v47  ;;  %v8154_v55 = vld [vmem:[#allocation66_spill] sm:$0xff] }
 0x13f   :  { %8147 = vst [vmem:[#allocation64_spill] sm:$0xff] %v3849_v46  ;;  %v3885_v63 = vmul.f32 0.0078125, %v8154_v55  ;;  %v3902_v55 = vmul.f32 %v3852_v23, %v3852_v23  ;;  %v3949_v46 = vmul.f32 0.0078125, %v8171_v12 }
 0x140   :  { %1397 = vadd.xlane.f32.xlu1 %v128_v29  ;;  %1399 = vadd.xlane.f32.xlu2 %v129_v49  ;;  %v3816_v29 = vmul.f32 0.0078125, %v3561_v57  ;;  %v3835_v57 = vmul.f32 %v3801_v40, %v3801_v40  ;;  %v131_v49 = vld [vmem:[#allocation5 + $0x90] sm:$0xff]  ;;  %8152 = vst [vmem:[#allocation117_spill] sm:$0xff] %v3876_v48  ;;  %v3880_v40 = vmul.f32 %v3840_v50, %v3840_v50 }
 0x141   :  { %1395 = vadd.xlane.f32.xlu0 %v127_v56  ;;  %v8142_v56 = vld [vmem:[#allocation63_spill] sm:$0xff]  ;;  %8155 = vst [vmem:[#allocation22_spill] sm:$0xff] %v3885_v63 }
 0x142   :  { %8141 = vst [vmem:[#allocation115_spill] sm:$0xff] %v3816_v29  ;;  %v3829_v26 = vmul.f32 0.0078125, %v8142_v56  ;;  %v3862_v3 = vmul.f32 %v3816_v29, %v3816_v29  ;;  %v8156_v29 = vld [vmem:[#allocation67_spill] sm:$0xff] }
 0x143   :  { %v3888_v6 = vmul.f32 0.0078125, %v8156_v29  ;;  %v3890_v53 = vpop.xlane.xlu1 %411  ;;  %v465_v29 = vmul.f32 0.0078125, %v3731_v38  ;;  %v3905_v47 = vpop.xlane.xlu2 %413  ;;  %v3923_v38 = vmul.f32 %v3876_v48, %v3876_v48  ;;  %v8169_v48 = vld [vmem:[#allocation70_spill] sm:$0xff]  ;;  %8172 = vst [vmem:[#allocation71_spill] sm:$0xff] %v3949_v46 }
 0x144   :  { %8143 = vst [vmem:[#allocation63_spill] sm:$0xff] %v3829_v26  ;;  %v3871_v54 = vmul.f32 %v3829_v26, %v3829_v26  ;;  %v3892_v56 = vpop.xlane.xlu0 %409 }
 0x145   :  { %8157 = vst [vmem:[#allocation66_spill] sm:$0xff] %v3888_v6  ;;  %v3938_v9 = vmul.f32 %v3888_v6, %v3888_v6  ;;  %v565_v26 = vsub.f32 %v465_v29, %v3826_v52  ;;  %v3970_v52 = vmul.f32 0.0078125, %v3621_v61  ;;  %v8174_v29 = vld [vmem:[#allocation72_spill] sm:$0xff] }
 0x146   :  { %8158 = vst [vmem:[#allocation67_spill] sm:$0xff] %v3890_v53  ;;  %v8162_v53 = vld [vmem:[#allocation68_spill] sm:$0xff]  ;;  %v3973_v13 = vmul.f32 0.0078125, %v8174_v29 }
 0x147   :  { %8159 = vst [vmem:[#allocation118_spill] sm:$0xff] %v3892_v56  ;;  %v467_v56 = vmul.f32 0.0078125, %v3741_v32  ;;  %v3979_v32 = vmul.f32 %v3941_v10, %v3941_v10  ;;  %v466_v10 = vmul.f32 0.0078125, %v3745_v59 }
 0x148   :  { %1403 = vadd.xlane.f32.xlu1 %v131_v49  ;;  %1405 = vadd.xlane.f32.xlu2 %v132_v1  ;;  %8160 = vst [vmem:[#allocation119_spill] sm:$0xff] %v3905_v47  ;;  %v3911_v1 = vmul.f32 %v3865_v45, %v3865_v45  ;;  %v3917_v49 = vmul.f32 0.0078125, %v8162_v53  ;;  %v8165_v47 = vld [vmem:[#allocation69_spill] sm:$0xff]  ;;  %v3994_v45 = vmul.f32 %v3949_v46, %v3949_v46  ;;  %v4031_v46 = vmul.f32 0.0078125, %v8183_v19 }
 0x149   :  { %1401 = vadd.xlane.f32.xlu0 %v130_v62  ;;  %v3914_v62 = vmul.f32 0.0078125, %v3597_v58  ;;  %v3928_v23 = vmul.f32 0.0078125, %v8165_v47  ;;  %v3932_v58 = vmul.f32 %v3885_v63, %v3885_v63  ;;  %v3946_v47 = vmul.f32 0.0078125, %v8169_v48  ;;  %8173 = vst [vmem:[#allocation122_spill] sm:$0xff] %v3970_v52  ;;  %v134_v63 = vld [vmem:[#allocation5 + $0xa8] sm:$0xff]  ;;  %v8187_v48 = vld [vmem:[#allocation76_spill] sm:$0xff] }
 0x14a   :  { %8163 = vst [vmem:[#allocation68_spill] sm:$0xff] %v3917_v49  ;;  %v3960_v2 = vmul.f32 %v3917_v49, %v3917_v49  ;;  %v8177_v49 = vld [vmem:[#allocation73_spill] sm:$0xff]  ;;  %v4040_v6 = vmul.f32 0.0078125, %v8187_v48 }
 0x14b   :  { %8161 = vst [vmem:[#allocation120_spill] sm:$0xff] %v3914_v62  ;;  %v3954_v53 = vmul.f32 %v3914_v62, %v3914_v62  ;;  %v3967_v12 = vmul.f32 %v3928_v23, %v3928_v23  ;;  %v133_v62 = vld [vmem:[#allocation5 + $0xa0] sm:$0xff]  ;;  %v3984_v16 = vmul.f32 0.0078125, %v8177_v49  ;;  %v3988_v61 = vmul.f32 %v3946_v47, %v3946_v47  ;;  %v4005_v18 = vpop.xlane.xlu1 %417 }
 0x14c   :  { %8166 = vst [vmem:[#allocation69_spill] sm:$0xff] %v3928_v23  ;;  %v3996_v23 = vadd.f32 1e-05, %v565_v26  ;;  %v4007_v29 = vpop.xlane.xlu0 %415  ;;  %v4017_v26 = vmul.f32 %v3973_v13, %v3973_v13  ;;  %v4082_v21 = vmul.f32 %v4040_v6, %v4040_v6 }
 0x14d   :  { %8170 = vst [vmem:[#allocation70_spill] sm:$0xff] %v3946_v47  ;;  %v4011_v47 = vmul.f32 %v3970_v52, %v3970_v52 }
 0x14e   :  { %8175 = vst [vmem:[#allocation72_spill] sm:$0xff] %v3973_v13  ;;  %2868 = vrsqrt.f32 %v3996_v23  ;;  %v8189_v13 = vld [vmem:[#allocation77_spill] sm:$0xff]  ;;  %vm721_vm1 = vweird.f32 %v3996_v23 }
 0x14f   :  { %8178 = vst [vmem:[#allocation73_spill] sm:$0xff] %v3984_v16  ;;  %v4048_v19 = vmul.f32 0.0078125, %v8189_v13  ;;  %v4066_v13 = vmul.f32 %v4031_v46, %v4031_v46 }
 0x150   :  { %1409 = vadd.xlane.f32.xlu1 %v134_v63  ;;  %1411 = vadd.xlane.f32.xlu2 %v135_v15  ;;  %v4001_v63 = vmul.f32 0.0078125, %v3633_v4  ;;  %v8181_v4 = vld [vmem:[#allocation74_spill] sm:$0xff]  ;;  %8184 = vst [vmem:[#allocation75_spill] sm:$0xff] %v4031_v46  ;;  %v468_v15 = vmul.f32 0.0078125, %v3743_v41  ;;  %v566_v41 = vsub.f32 %v466_v10, %v3856_v42  ;;  %v137_v10 = vld [vmem:[#allocation5 + $0xc0] sm:$0xff] }
 0x151   :  { %1407 = vadd.xlane.f32.xlu0 %v133_v62  ;;  %v567_v62 = vsub.f32 %v467_v56, %v3820_v51  ;;  %v4020_v49 = vmul.f32 0.0078125, %v8181_v4  ;;  %v4022_v51 = vpop.xlane.xlu2 %419  ;;  %v4028_v56 = vmul.f32 %v3984_v16, %v3984_v16  ;;  %v4037_v4 = vmul.f32 0.0078125, %v3645_v5  ;;  %8188 = vst [vmem:[#allocation76_spill] sm:$0xff] %v4040_v6  ;;  %v8194_v42 = vld [vmem:[#allocation78_spill] sm:$0xff]  ;;  %v8204_v6 = vld [vmem:[#allocation80_spill] sm:$0xff] }
 0x152   :  { %8180 = vst [vmem:[#allocation123_spill] sm:$0xff] %v4001_v63  ;;  %v4045_v59 = vmul.f32 %v4001_v63, %v4001_v63  ;;  %v4062_v16 = vmul.f32 0.0078125, %v3657_v11  ;;  %v4071_v52 = vmul.f32 0.0078125, %v8194_v42  ;;  %v568_v5 = vsub.f32 %v468_v15, %v3844_v39  ;;  %v136_v11 = vld [vmem:[#allocation5 + $0xb8] sm:$0xff] }
 0x153   :  { %8182 = vst [vmem:[#allocation74_spill] sm:$0xff] %v4020_v49  ;;  %v4050_v22 = vadd.f32 1e-05, %v567_v62  ;;  %v4057_v48 = vmul.f32 %v4020_v49, %v4020_v49  ;;  %v4076_v63 = vmul.f32 %v4037_v4, %v4037_v4  ;;  %v8198_v49 = vld [vmem:[#allocation79_spill] sm:$0xff]  ;;  %v4091_v39 = vmul.f32 %v4048_v19, %v4048_v19 }
 0x154   :  { %8186 = vst [vmem:[#allocation124_spill] sm:$0xff] %v4037_v4  ;;  %v4085_v25 = vmul.f32 0.0078125, %v8198_v49  ;;  %v4094_v15 = vadd.f32 1e-05, %v566_v41  ;;  %v138_v4 = vld [vmem:[#allocation5 + $0xc8] sm:$0xff]  ;;  %v4096_v27 = vpop.eup %2868  ;;  %v4102_v46 = vmul.f32 %v4062_v16, %v4062_v16  ;;  %v4105_v42 = vmul.f32 0.0078125, %v3669_v14  ;;  %v4123_v14 = vpop.xlane.xlu0 %421 }
 0x155   :  { %8190 = vst [vmem:[#allocation77_spill] sm:$0xff] %v4048_v19  ;;  %2870 = vrsqrt.f32 %v4050_v22  ;;  %v4108_v28 = vmul.f32 0.0078125, %v8204_v6  ;;  %v4114_v62 = vmul.f32 %v4071_v52, %v4071_v52  ;;  %v8207_v49 = vld [vmem:[#allocation81_spill] sm:$0xff]  ;;  %v4119_v24 = vadd.f32 1e-05, %v568_v5 }
 0x156   :  { %8191 = vst [vmem:[#allocation125_spill] sm:$0xff] %v4057_v48  ;;  %v4117_v19 = vmul.f32 0.0078125, %v8207_v49  ;;  %v4134_v49 = vmul.f32 0.0078125, %v3681_v17  ;;  %2872 = vrsqrt.f32 %v4094_v15  ;;  %v470_v6 = vmul.f32 0.0078125, %v3753_v35  ;;  %v139_v17 = vld [vmem:[#allocation5 + $0xd0] sm:$0xff] }
 0x157   :  { %8192 = vst [vmem:[#allocation126_spill] sm:$0xff] %v4062_v16  ;;  %v8215_v16 = vld [vmem:[#allocation82_spill] sm:$0xff]  ;;  %v4153_v41 = vmul.f32 %v4108_v28, %v4108_v28  ;;  %2874 = vrsqrt.f32 %v4119_v24  ;;  %vm722_vm0 = vweird.f32 %v4096_v27  ;;  %vm741_vm4 = vweird.f32 %v4050_v22 }
 0x158   :  { %8195 = vst [vmem:[#allocation78_spill] sm:$0xff] %v4071_v52  ;;  %1415 = vadd.xlane.f32.xlu1 %v137_v10  ;;  %1417 = vadd.xlane.f32.xlu2 %v138_v4  ;;  %v4129_v10 = vmul.f32 %v4085_v25, %v4085_v25  ;;  %v4139_v30 = vmul.f32 0.0078125, %v8215_v16  ;;  %v716_v4 = vmul.f32 %v4096_v27, %v3996_v23  ;;  %v469_v16 = vmul.f32 0.0078125, %v3757_v8  ;;  %vm4325_vm2 = vmor %vm721_vm1, %vm722_vm0 }
 0x159   :  { %8196 = vst [vmem:[#allocation127_spill] sm:$0xff] %v4076_v63  ;;  %1413 = vadd.xlane.f32.xlu0 %v136_v11  ;;  %v4136_v5 = vpop.xlane.xlu2 %425  ;;  %v4147_v52 = vmul.f32 %v4105_v42, %v4105_v42  ;;  %v4162_v35 = vmul.f32 %v4117_v19, %v4117_v19  ;;  %v8220_v11 = vld [vmem:[#allocation83_spill] sm:$0xff]  ;;  %v4172_v8 = vmul.f32 %v4134_v49, %v4134_v49  ;;  %vm731_vm8 = vweird.f32 %v4094_v15  ;;  %v150_v63 = vld [vmem:[#allocation5 + $0x128] sm:$0xff] }
 0x15a   :  { %8197 = vst [vmem:[#allocation128_spill] sm:$0xff] %v4082_v21  ;;  %v717_v34 = vmul.f32 %v4096_v27, %v716_v4  ;;  %v569_v33 = vsub.f32 %v469_v16, %v3808_v43  ;;  %v8228_v4 = vld [vmem:[#allocation84_spill] sm:$0xff]  ;;  %v8233_v16 = vld [vmem:[#allocation85_spill] sm:$0xff]  ;;  %vm751_vm10 = vweird.f32 %v4119_v24 }
 0x15b   :  { %8199 = vst [vmem:[#allocation79_spill] sm:$0xff] %v4085_v25  ;;  %v4156_v31 = vpop.eup %2870  ;;  %v4177_v25 = vmul.f32 0.0078125, %v3693_v20 }
 0x15c   :  { %8200 = vst [vmem:[#allocation129_spill] sm:$0xff] %v4091_v39  ;;  %v736_v20 = vmul.f32 %v4156_v31, %v4050_v22  ;;  %v4191_v36 = vpop.eup %2872  ;;  %vm742_vm3 = vweird.f32 %v4156_v31 }
 0x15d   :  { %8202 = vst [vmem:[#allocation130_spill] sm:$0xff] %v4102_v46  ;;  %v4121_v46 = vpop.xlane.xlu1 %423  ;;  %v4206_v43 = vmul.f32 %v4177_v25, %v4177_v25  ;;  %vm4360_vm5 = vmor %vm741_vm4, %vm742_vm3  ;;  %vm732_vm6 = vweird.f32 %v4191_v36 }
 0x15e   :  { %8203 = vst [vmem:[#allocation131_spill] sm:$0xff] %v4105_v42  ;;  %v471_v42 = vmul.f32 0.0078125, %v3755_v44  ;;  %vm4409_vm9 = vmor %vm731_vm8, %vm732_vm6 }
 0x15f   :  { %8205 = vst [vmem:[#allocation80_spill] sm:$0xff] %v4108_v28  ;;  %v163_v28 = vld [vmem:[#allocation7] sm:$0xff] }
 0x160   :  { %8206 = vst [vmem:[#allocation132_spill] sm:$0xff] %v4114_v62  ;;  %v4213_v37 = vperm.slane %v163_v28, 1 }
 0x161   :  { %8208 = vst [vmem:[#allocation81_spill] sm:$0xff] %v4117_v19  ;;  %v140_v19 = vld [vmem:[#allocation5 + $0xd8] sm:$0xff]  ;;  %1419 = vadd.xlane.f32.xlu0 %v139_v17  ;;  %v737_v17 = vmul.f32 %v4156_v31, %v736_v20  ;;  %v8246_v20 = vld [vmem:[#allocation96_spill] sm:$0xff] }
 0x162   :  { %8209 = vst [vmem:[#allocation133_spill] sm:$0xff] %v4121_v46  ;;  %1421 = vadd.xlane.f32.xlu1 %v140_v19 }
 0x163   :  { %8210 = vst [vmem:[#allocation134_spill] sm:$0xff] %v4123_v14 }
 0x164   :  { %8211 = vst [vmem:[#allocation135_spill] sm:$0xff] %v4129_v10 }
 0x165   :  { %8213 = vst [vmem:[#allocation136_spill] sm:$0xff] %v4134_v49  ;;  %v141_v49 = vld [vmem:[#allocation5 + $0xe0] sm:$0xff] }
 0x166   :  { %8214 = vst [vmem:[#allocation137_spill] sm:$0xff] %v4136_v5  ;;  %1423 = vadd.xlane.f32.xlu2 %v141_v49  ;;  %v571_v49 = vsub.f32 %v471_v42, %v3880_v40 }
 0x167   :  { %8216 = vst [vmem:[#allocation82_spill] sm:$0xff] %v4139_v30 }
 0x168   :  { %8217 = vst [vmem:[#allocation138_spill] sm:$0xff] %v4147_v52  ;;  %v4165_v52 = vmul.f32 0.0078125, %v8220_v11  ;;  %v4181_v11 = vmul.f32 %v4139_v30, %v4139_v30  ;;  %v4211_v30 = vmul.f32 0.0078125, %v8233_v16  ;;  %v4230_v16 = vadd.f32 1e-05, %v569_v33 }
 0x169   :  { %8218 = vst [vmem:[#allocation139_spill] sm:$0xff] %v4153_v41  ;;  %v570_v41 = vsub.f32 %v470_v6, %v3835_v57  ;;  %v8236_v6 = vld [vmem:[#allocation86_spill] sm:$0xff] }
 0x16a   :  { %8219 = vst [vmem:[#allocation140_spill] sm:$0xff] %v4162_v35  ;;  %v4195_v57 = vmul.f32 %v4165_v52, %v4165_v52  ;;  %v4223_v35 = vpop.xlane.xlu1 %429  ;;  %v4247_v33 = vmul.f32 %v4211_v30, %v4211_v30  ;;  %vm761_vm14 = vweird.f32 %v4230_v16 }
 0x16b   :  { %8221 = vst [vmem:[#allocation83_spill] sm:$0xff] %v4165_v52  ;;  %v718_v52 = vmul.f32 0.5, %v717_v34  ;;  %v4220_v44 = vadd.f32 1e-05, %v570_v41  ;;  %v8244_v41 = vld [vmem:[#allocation87_spill] sm:$0xff] }
 0x16c   :  { %8223 = vst [vmem:[#allocation141_spill] sm:$0xff] %v4172_v8  ;;  %v4202_v8 = vperm.slane %v163_v28, 0  ;;  %v726_v28 = vmul.f32 %v4191_v36, %v4094_v15  ;;  %v4242_v62 = vmul.f32 0.0078125, %v8244_v41  ;;  %v8302_v15 = vld [vmem:[#allocation20_spill] sm:$0xff] }
 0x16d   :  { %8224 = vst [vmem:[#allocation142_spill] sm:$0xff] %v4177_v25  ;;  %v8240_v25 = vld [vmem:[#allocation94_spill] sm:$0xff]  ;;  %v719_v41 = vsub.f32 1.5, %v718_v52  ;;  %2876 = vrsqrt.f32 %v4220_v44  ;;  %vm771_vm12 = vweird.f32 %v4220_v44 }
 0x16e   :  { %8225 = vst [vmem:[#allocation143_spill] sm:$0xff] %v4181_v11  ;;  %v4200_v11 = vmul.f32 0.0078125, %v8228_v4  ;;  %v4218_v4 = vmul.f32 0.0078125, %v8236_v6  ;;  %v473_v19 = vmul.f32 0.0078125, %v8240_v25  ;;  %v4233_v6 = vpop.xlane.xlu2 %431  ;;  %v727_v40 = vmul.f32 %v4191_v36, %v726_v28  ;;  %v8259_v25 = vld [vmem:[#allocation90_spill] sm:$0xff]  ;;  %v8263_v28 = vld [vmem:[#allocation91_spill] sm:$0xff] }
 0x16f   :  { %8226 = vst [vmem:[#allocation144_spill] sm:$0xff] %v4195_v57  ;;  %v4215_v57 = vpop.eup %2874  ;;  %2878 = vrsqrt.f32 %v4230_v16 }
 0x170   :  { %8229 = vst [vmem:[#allocation84_spill] sm:$0xff] %v4200_v11  ;;  %v4237_v34 = vmul.f32 %v4200_v11, %v4200_v11  ;;  %v4258_v42 = vmul.f32 %v4218_v4, %v4218_v4  ;;  %v738_v11 = vmul.f32 0.5, %v737_v17  ;;  %v144_v17 = vld [vmem:[#allocation5 + $0xf8] sm:$0xff]  ;;  %v728_v21 = vmul.f32 0.5, %v727_v40 }
 0x171   :  { %8230 = vst [vmem:[#allocation145_spill] sm:$0xff] %v4202_v8  ;;  %1429 = vadd.xlane.f32.xlu2 %v144_v17  ;;  %v8268_v17 = vld [vmem:[#allocation99_spill] sm:$0xff]  ;;  %vm752_vm7 = vweird.f32 %v4215_v57 }
 0x172   :  { %8231 = vst [vmem:[#allocation146_spill] sm:$0xff] %v4206_v43  ;;  %v4225_v43 = vpop.xlane.xlu0 %427  ;;  %vm4421_vm11 = vmor %vm751_vm10, %vm752_vm7 }
 0x173   :  { %8234 = vst [vmem:[#allocation85_spill] sm:$0xff] %v4211_v30  ;;  %v142_v30 = vld [vmem:[#allocation5 + $0xe8] sm:$0xff] }
 0x174   :  { %8235 = vst [vmem:[#allocation147_spill] sm:$0xff] %v4213_v37  ;;  %1425 = vadd.xlane.f32.xlu0 %v142_v30  ;;  %v8261_v30 = vld [vmem:[#allocation97_spill] sm:$0xff] }
 0x175   :  { %8237 = vst [vmem:[#allocation86_spill] sm:$0xff] %v4218_v4 }
 0x176   :  { %8238 = vst [vmem:[#allocation148_spill] sm:$0xff] %v4223_v35  ;;  %v143_v35 = vld [vmem:[#allocation5 + $0xf0] sm:$0xff] }
 0x177   :  { %8239 = vst [vmem:[#allocation149_spill] sm:$0xff] %v4225_v43  ;;  %v472_v43 = vmul.f32 0.0078125, %v8246_v20  ;;  %v4261_v20 = vadd.f32 1e-05, %v571_v49  ;;  %v8254_v49 = vld [vmem:[#allocation95_spill] sm:$0xff]  ;;  %1427 = vadd.xlane.f32.xlu1 %v143_v35  ;;  %v720_v35 = vmul.f32 %v4096_v27, %v719_v41 }
 0x178   :  { %8241 = vst [vmem:[#allocation94_spill] sm:$0xff] %v4233_v6  ;;  %v8249_v6 = vld [vmem:[#allocation88_spill] sm:$0xff]  ;;  %v474_v5 = vmul.f32 0.0078125, %v8254_v49  ;;  %v739_v49 = vsub.f32 1.5, %v738_v11 }
 0x179   :  { %8242 = vst [vmem:[#allocation150_spill] sm:$0xff] %v4237_v34  ;;  %v4252_v10 = vmul.f32 0.0078125, %v8249_v6  ;;  %v746_v34 = vmul.f32 %v4215_v57, %v4119_v24  ;;  %v573_v6 = vsub.f32 %v473_v19, %v3862_v3  ;;  %v572_v52 = vsub.f32 %v472_v43, %v3871_v54  ;;  %v8257_v19 = vld [vmem:[#allocation89_spill] sm:$0xff]  ;;  %v147_v24 = vld [vmem:[#allocation5 + $0x110] sm:$0xff] }
 0x17a   :  { %8245 = vst [vmem:[#allocation87_spill] sm:$0xff] %v4242_v62  ;;  %v4285_v54 = vmul.f32 0.0078125, %v8259_v25  ;;  %v476_v43 = vmul.f32 0.0078125, %v8261_v30  ;;  %2880 = vrsqrt.f32 %v4261_v20  ;;  %v4298_v25 = vmul.f32 0.0078125, %v8263_v28  ;;  %v4305_v11 = vpop.xlane.xlu0 %433  ;;  %1435 = vadd.xlane.f32.xlu2 %v147_v24 }
 0x17b   :  { %8247 = vst [vmem:[#allocation96_spill] sm:$0xff] %v4247_v33  ;;  %v4278_v3 = vmul.f32 %v4252_v10, %v4252_v10  ;;  %v4281_v33 = vmul.f32 0.0078125, %v8257_v19  ;;  %v747_v4 = vmul.f32 %v4215_v57, %v746_v34  ;;  %v4293_v19 = vpop.eup %2876  ;;  %v574_v41 = vsub.f32 %v474_v5, %v3911_v1  ;;  %v8291_v34 = vld [vmem:[#allocation16_spill] sm:$0xff] }
 0x17c   :  { %8250 = vst [vmem:[#allocation88_spill] sm:$0xff] %v4252_v10  ;;  %v4307_v40 = vpop.eup %2878  ;;  %v475_v28 = vmul.f32 0.0078125, %v8268_v17  ;;  %v4315_v10 = vpop.xlane.xlu2 %437  ;;  %v4321_v5 = vmul.f32 %v4285_v54, %v4285_v54  ;;  %v576_v23 = vsub.f32 %v476_v43, %v3896_v60  ;;  %v740_v17 = vmul.f32 %v4156_v31, %v739_v49 }
 0x17d   :  { %8251 = vst [vmem:[#allocation151_spill] sm:$0xff] %v4258_v42  ;;  %v4270_v42 = vmul.f32 %v4242_v62, %v4242_v62  ;;  %v4291_v62 = vadd.f32 1e-05, %v573_v6  ;;  %v4311_v6 = vmul.f32 %v4281_v33, %v4281_v33  ;;  %v748_v30 = vmul.f32 0.5, %v747_v4 }
 0x17e   :  { %8256 = vst [vmem:[#allocation95_spill] sm:$0xff] %v4278_v3  ;;  %v4303_v3 = vpop.xlane.xlu1 %435  ;;  %v724_v4 = vsel %vm4325_vm2, %v4096_v27, %v720_v35  ;;  %v729_v1 = vsub.f32 1.5, %v728_v21  ;;  %v575_v35 = vsub.f32 %v475_v28, %v3902_v55  ;;  %v4351_v49 = vmul.f32 %v4298_v25, %v4298_v25  ;;  %v8282_v55 = vld [vmem:[#allocation110_spill] sm:$0xff] }
 0x17f   :  { %8253 = vst [vmem:[#allocation152_spill] sm:$0xff] %v4270_v42  ;;  %v4300_v42 = vadd.f32 1e-05, %v572_v52  ;;  %2882 = vrsqrt.f32 %v4291_v62  ;;  %v756_v52 = vmul.f32 %v4307_v40, %v4230_v16  ;;  %v749_v21 = vsub.f32 1.5, %v748_v30  ;;  %v8281_v30 = vld [vmem:[#allocation17_spill] sm:$0xff] }
 0x180   :  { %8258 = vst [vmem:[#allocation89_spill] sm:$0xff] %v4281_v33  ;;  %v766_v33 = vmul.f32 %v4293_v19, %v4220_v44  ;;  %v4343_v60 = vpop.eup %2880  ;;  %v4364_v22 = vadd.f32 1e-05, %v576_v23  ;;  %v8283_v28 = vsub.f32 %v8281_v30, %v8282_v55  ;;  %vm772_vm13 = vweird.f32 %v4293_v19 }
 0x181   :  { %8260 = vst [vmem:[#allocation90_spill] sm:$0xff] %v4285_v54  ;;  %2884 = vrsqrt.f32 %v4300_v42  ;;  %v744_v54 = vsel %vm4360_vm5, %v4156_v31, %v740_v17  ;;  %v757_v43 = vmul.f32 %v4307_v40, %v756_v52  ;;  %v776_v23 = vmul.f32 %v4343_v60, %v4261_v20  ;;  %v8287_v52 = vld [vmem:[#allocation98_spill] sm:$0xff]  ;;  %vm4503_vm2 = vmor %vm771_vm12, %vm772_vm13 }
 0x182   :  { %8264 = vst [vmem:[#allocation97_spill] sm:$0xff] %v4298_v25  ;;  %v1215_v27 = vmul.f32 %v724_v4, %v8283_v28  ;;  %v8284_v4 = vld [vmem:[#allocation93_spill] sm:$0xff]  ;;  %v750_v31 = vmul.f32 %v4215_v57, %v749_v21  ;;  %v477_v17 = vmul.f32 0.0078125, %v8287_v52  ;;  %v4399_v28 = vpop.xlane.xlu0 %439  ;;  %vm762_vm15 = vweird.f32 %v4307_v40  ;;  %1441 = vadd.xlane.f32.xlu2 %v150_v63 }
 0x183   :  { %8265 = vst [vmem:[#allocation91_spill] sm:$0xff] %v4303_v3  ;;  %v4382_v30 = vmul.f32 0.0078125, %v8284_v4  ;;  %vm781_vm0 = vweird.f32 %v4261_v20  ;;  %vm782_vm1 = vweird.f32 %v4343_v60  ;;  %vm801_vm3 = vweird.f32 %v4291_v62  ;;  %vm4521_vm4 = vmor %vm761_vm14, %vm762_vm15  ;;  %v8328_v20 = vld [vmem:[#allocation105_spill] sm:$0xff] }
 0x184   :  { %8266 = vst [vmem:[#allocation153_spill] sm:$0xff] %v4305_v11  ;;  %v4386_v11 = vadd.f32 1e-05, %v575_v35  ;;  %v1266_v4 = vmul.f32 %v4202_v8, %v1215_v27  ;;  %v4414_v52 = vpop.xlane.xlu2 %443  ;;  %v754_v35 = vsel %vm4421_vm11, %v4215_v57, %v750_v31  ;;  %v577_v31 = vsub.f32 %v477_v17, %v3938_v9  ;;  %v8305_v57 = vld [vmem:[#allocation19_spill] sm:$0xff]  ;;  %vm4543_vm6 = vmor %vm781_vm0, %vm782_vm1 }
 0x185   :  { %8267 = vst [vmem:[#allocation154_spill] sm:$0xff] %v4311_v6  ;;  %v730_v6 = vmul.f32 %v4191_v36, %v729_v1  ;;  %v4379_v25 = vpop.eup %2882  ;;  %vm791_vm5 = vweird.f32 %v4300_v42  ;;  %vm831_vm15 = vweird.f32 %v4364_v22 }
 0x186   :  { %8269 = vst [vmem:[#allocation99_spill] sm:$0xff] %v4315_v10  ;;  %v8277_v10 = vld [vmem:[#allocation92_spill] sm:$0xff]  ;;  %v4397_v55 = vpop.xlane.xlu1 %441  ;;  %vm802_vm7 = vweird.f32 %v4379_v25 }
 0x187   :  { %8271 = vst [vmem:[#allocation155_spill] sm:$0xff] %v4321_v5  ;;  %v4341_v5 = vadd.f32 1e-05, %v574_v41  ;;  %v4356_v41 = vmul.f32 0.0078125, %v8277_v10  ;;  %v767_v10 = vmul.f32 %v4293_v19, %v766_v33  ;;  %v4388_v1 = vpop.eup %2884  ;;  %v734_v27 = vsel %vm4409_vm9, %v4191_v36, %v730_v6  ;;  %vm4586_vm9 = vmor %vm801_vm3, %vm802_vm7 }
 0x188   :  { %8275 = vst [vmem:[#allocation156_spill] sm:$0xff] %v4351_v49  ;;  %v8292_v49 = vld [vmem:[#allocation109_spill] sm:$0xff]  ;;  %v796_v36 = vmul.f32 %v4379_v25, %v4291_v62  ;;  %v786_v6 = vmul.f32 %v4388_v1, %v4300_v42  ;;  %vm792_vm8 = vweird.f32 %v4388_v1 }
 0x189   :  { %8278 = vst [vmem:[#allocation92_spill] sm:$0xff] %v4356_v41  ;;  %2886 = vrsqrt.f32 %v4341_v5  ;;  %v4392_v33 = vmul.f32 %v4356_v41, %v4356_v41  ;;  %v8293_v3 = vsub.f32 %v8291_v34, %v8292_v49  ;;  %v758_v49 = vmul.f32 0.5, %v757_v43  ;;  %vm4600_vm10 = vmor %vm791_vm5, %vm792_vm8 }
 0x18a   :  { %8285 = vst [vmem:[#allocation17_spill] sm:$0xff] %v4382_v30  ;;  %2888 = vrsqrt.f32 %v4364_v22  ;;  %v777_v34 = vmul.f32 %v4343_v60, %v776_v23  ;;  %v4438_v43 = vmul.f32 %v4382_v30, %v4382_v30  ;;  %v4440_v23 = vld [vmem:[#allocation2 + $0x180] sm:$0xff]  ;;  %v8306_v30 = vld [vmem:[#allocation113_spill] sm:$0xff]  ;;  %vm811_vm11 = vweird.f32 %v4341_v5 }
 0x18b   :  { %8286 = vst [vmem:[#allocation110_spill] sm:$0xff] %v4392_v33  ;;  %v1217_v14 = vmul.f32 %v744_v54, %v8293_v3  ;;  %v146_v33 = vld [vmem:[#allocation5 + $0x108] sm:$0xff]  ;;  %v768_v54 = vmul.f32 0.5, %v767_v10  ;;  %2890 = vrsqrt.f32 %v4386_v11  ;;  %v8303_v3 = vld [vmem:[#allocation114_spill] sm:$0xff]  ;;  %v759_v17 = vsub.f32 1.5, %v758_v49 }
 0x18c   :  { %8288 = vst [vmem:[#allocation93_spill] sm:$0xff] %v4397_v55  ;;  %1433 = vadd.xlane.f32.xlu1 %v146_v33  ;;  %v4447_v33 = vadd.f32 %v4213_v37, %v1266_v4  ;;  %v8304_v24 = vsub.f32 %v8302_v15, %v8303_v3  ;;  %v778_v4 = vmul.f32 0.5, %v777_v34  ;;  %v8308_v15 = vld [vmem:[#allocation100_spill] sm:$0xff]  ;;  %v4485_v55 = vpop.xlane.xlu0 %445  ;;  %v4489_v48 = vpop.xlane.xlu2 %449 }
 0x18d   :  { %8289 = vst [vmem:[#allocation98_spill] sm:$0xff] %v4399_v28  ;;  %v145_v28 = vld [vmem:[#allocation5 + $0x100] sm:$0xff]  ;;  %v769_v9 = vsub.f32 1.5, %v768_v54  ;;  %v479_v3 = vmul.f32 0.0078125, %v8308_v15 }
 0x18e   :  { %8296 = vst [vmem:[#allocation16_spill] sm:$0xff] %v4414_v52  ;;  %1431 = vadd.xlane.f32.xlu0 %v145_v28  ;;  %v1268_v28 = vmul.f32 %v4202_v8, %v1217_v14  ;;  %v1216_v41 = vmul.f32 %v734_v27, %v8304_v24  ;;  %v787_v14 = vmul.f32 %v4388_v1, %v786_v6  ;;  %v779_v52 = vsub.f32 1.5, %v778_v4 }
 0x18f   :  { %v4434_v10 = vpop.eup %2886  ;;  %8299 = vst [vmem:[#allocation109_spill] sm:$0xff] %v4438_v43  ;;  %v770_v15 = vmul.f32 %v4293_v19, %v769_v9 }
 0x190   :  { %8300 = vst [vmem:[#allocation157_spill] sm:$0xff] %v4440_v23  ;;  %v4455_v21 = vpop.eup %2888  ;;  %v8307_v23 = vsub.f32 %v8305_v57, %v8306_v30  ;;  %v806_v27 = vmul.f32 %v4434_v10, %v4341_v5  ;;  %v4468_v30 = vadd.f32 1e-05, %v577_v31  ;;  %v4474_v34 = vadd.f32 %v4213_v37, %v1268_v28  ;;  %v149_v28 = vld [vmem:[#allocation5 + $0x120] sm:$0xff] }
 0x191   :  { %8301 = vst [vmem:[#allocation158_spill] sm:$0xff] %v4447_v33  ;;  %v797_v33 = vmul.f32 %v4379_v25, %v796_v36  ;;  %v4471_v49 = vpop.eup %2890  ;;  %v1267_v36 = vmul.f32 %v4202_v8, %v1216_v41  ;;  %v826_v6 = vmul.f32 %v4455_v21, %v4364_v22  ;;  %v760_v31 = vmul.f32 %v4307_v40, %v759_v17  ;;  %v8312_v17 = vld [vmem:[#allocation103_spill] sm:$0xff]  ;;  %v8346_v5 = vld [vmem:[#allocation108_spill] sm:$0xff] }
 0x192   :  { %v1218_v43 = vmul.f32 %v754_v35, %v8307_v23  ;;  %v8309_v35 = vld [vmem:[#allocation101_spill] sm:$0xff]  ;;  %8310 = vst [vmem:[#allocation20_spill] sm:$0xff] %v4474_v34  ;;  %v8311_v23 = vld [vmem:[#allocation102_spill] sm:$0xff]  ;;  %v148_v34 = vld [vmem:[#allocation5 + $0x118] sm:$0xff]  ;;  %v788_v39 = vmul.f32 0.5, %v787_v14  ;;  %v807_v46 = vmul.f32 %v4434_v10, %v806_v27  ;;  %2892 = vrsqrt.f32 %v4468_v30 }
 0x193   :  { %v478_v54 = vmul.f32 0.0078125, %v8309_v35  ;;  %v480_v57 = vmul.f32 0.0078125, %v8311_v23  ;;  %v4483_v35 = vpop.xlane.xlu1 %447  ;;  %v798_v41 = vmul.f32 0.5, %v797_v33  ;;  %v579_v23 = vsub.f32 %v479_v3, %v3923_v38  ;;  %v8316_v27 = vld [vmem:[#allocation104_spill] sm:$0xff] }
 0x194   :  { %v1269_v24 = vmul.f32 %v4202_v8, %v1218_v43  ;;  %1439 = vadd.xlane.f32.xlu1 %v149_v28  ;;  %v816_v43 = vmul.f32 %v4471_v49, %v4386_v11  ;;  %v482_v4 = vmul.f32 0.0078125, %v8312_v17  ;;  %v4497_v33 = vadd.f32 %v4213_v37, %v1267_v36  ;;  %v8320_v28 = vld [vmem:[#allocation18_spill] sm:$0xff]  ;;  %v8321_v17 = vld [vmem:[#allocation112_spill] sm:$0xff] }
 0x195   :  { %v578_v9 = vsub.f32 %v478_v54, %v3932_v58  ;;  %v827_v14 = vmul.f32 %v4455_v21, %v826_v6  ;;  %v580_v58 = vsub.f32 %v480_v57, %v3967_v12  ;;  %v481_v3 = vmul.f32 0.0078125, %v8316_v27 }
 0x196   :  { %1437 = vadd.xlane.f32.xlu0 %v148_v34  ;;  %8313 = vst [vmem:[#allocation114_spill] sm:$0xff] %v4497_v33  ;;  %v4512_v63 = vadd.f32 %v4213_v37, %v1269_v24  ;;  %v774_v54 = vsel %vm4503_vm2, %v4293_v19, %v770_v15  ;;  %v780_v34 = vmul.f32 %v4343_v60, %v779_v52  ;;  %v799_v36 = vsub.f32 1.5, %v798_v41 }
 0x197   :  { %v764_v12 = vsel %vm4521_vm4, %v4307_v40, %v760_v31  ;;  %v789_v6 = vsub.f32 1.5, %v788_v39  ;;  %v4530_v57 = vadd.f32 1e-05, %v579_v23  ;;  %v808_v19 = vmul.f32 0.5, %v807_v46  ;;  %v8326_v23 = vld [vmem:[#allocation106_spill] sm:$0xff] }
 0x198   :  { %8317 = vst [vmem:[#allocation19_spill] sm:$0xff] %v4512_v63  ;;  %v817_v24 = vmul.f32 %v4471_v49, %v816_v43  ;;  %v4533_v16 = vadd.f32 1e-05, %v578_v9  ;;  %v582_v15 = vsub.f32 %v482_v4, %v3954_v53  ;;  %v8322_v52 = vsub.f32 %v8320_v28, %v8321_v17  ;;  %v4550_v41 = vpop.eup %2892  ;;  %v8325_v53 = vld [vmem:[#allocation15_spill] sm:$0xff]  ;;  %v153_v28 = vld [vmem:[#allocation5 + $0x140] sm:$0xff] }
 0x199   :  { %v828_v39 = vmul.f32 0.5, %v827_v14  ;;  %v4547_v46 = vadd.f32 1e-05, %v580_v58  ;;  %v581_v31 = vsub.f32 %v481_v3, %v3960_v2  ;;  %v8327_v43 = vsub.f32 %v8325_v53, %v8326_v23  ;;  %1447 = vadd.xlane.f32.xlu2 %v153_v28 }
 0x19a   :  { %v1220_v38 = vmul.f32 %v774_v54, %v8322_v52  ;;  %v784_v4 = vsel %vm4543_vm6, %v4343_v60, %v780_v34  ;;  %v483_v27 = vmul.f32 0.0078125, %v8328_v20  ;;  %v800_v14 = vmul.f32 %v4379_v25, %v799_v36  ;;  %v4569_v60 = vpop.xlane.xlu0 %451 }
 0x19b   :  { %v1219_v9 = vmul.f32 %v764_v12, %v8327_v43  ;;  %v790_v58 = vmul.f32 %v4388_v1, %v789_v6  ;;  %2894 = vrsqrt.f32 %v4530_v57  ;;  %v809_v2 = vsub.f32 1.5, %v808_v19  ;;  %v4567_v44 = vpop.xlane.xlu1 %453  ;;  %v4576_v6 = vpop.xlane.xlu2 %455  ;;  %v152_v19 = vld [vmem:[#allocation5 + $0x138] sm:$0xff] }
 0x19c   :  { %v818_v3 = vmul.f32 0.5, %v817_v24  ;;  %2896 = vrsqrt.f32 %v4533_v16  ;;  %v4565_v54 = vadd.f32 1e-05, %v582_v15  ;;  %v829_v34 = vsub.f32 1.5, %v828_v39  ;;  %v151_v24 = vld [vmem:[#allocation5 + $0x130] sm:$0xff]  ;;  %1445 = vadd.xlane.f32.xlu1 %v152_v19  ;;  %v8340_v19 = vld [vmem:[#allocation63_spill] sm:$0xff] }
 0x19d   :  { %v836_v12 = vmul.f32 %v4550_v41, %v4468_v30  ;;  %2898 = vrsqrt.f32 %v4547_v46  ;;  %v4574_v36 = vadd.f32 1e-05, %v581_v31  ;;  %v1271_v15 = vmul.f32 %v4202_v8, %v1220_v38  ;;  %v8332_v31 = vld [vmem:[#allocation107_spill] sm:$0xff] }
 0x19e   :  { %v8329_v17 = vsub.f32 %v8153_v0, %v3840_v50  ;;  %v583_v39 = vsub.f32 %v483_v27, %v3994_v45  ;;  %v485_v53 = vmul.f32 0.0078125, %v8332_v31  ;;  %1443 = vadd.xlane.f32.xlu0 %v151_v24  ;;  %v1270_v38 = vmul.f32 %v4202_v8, %v1219_v9 }
 0x19f   :  { %v804_v50 = vsel %vm4586_vm9, %v4379_v25, %v800_v14  ;;  %vm812_vm12 = vweird.f32 %v4434_v10  ;;  %v794_v45 = vsel %vm4600_vm10, %v4388_v1, %v790_v58  ;;  %v810_v62 = vmul.f32 %v4434_v10, %v809_v2  ;;  %v8337_v2 = vld [vmem:[#allocation21_spill] sm:$0xff] }
 0x1a0   :  { %v1221_v52 = vmul.f32 %v784_v4, %v8329_v17  ;;  %v819_v25 = vsub.f32 1.5, %v818_v3  ;;  %2900 = vrsqrt.f32 %v4565_v54  ;;  %v830_v42 = vmul.f32 %v4455_v21, %v829_v34  ;;  %v8338_v3 = vld [vmem:[#allocation115_spill] sm:$0xff]  ;;  %vm4641_vm14 = vmor %vm811_vm11, %vm812_vm12 }
 0x1a1   :  { %v4611_v23 = vpop.eup %2894  ;;  %vm832_vm13 = vweird.f32 %v4455_v21  ;;  %v837_v43 = vmul.f32 %v4550_v41, %v836_v12  ;;  %2902 = vrsqrt.f32 %v4574_v36  ;;  %v4620_v4 = vadd.f32 %v4213_v37, %v1271_v15 }
 0x1a2   :  { %v4617_v9 = vpop.eup %2896  ;;  %v1272_v1 = vmul.f32 %v4202_v8, %v1221_v52  ;;  %v4623_v20 = vadd.f32 1e-05, %v583_v39  ;;  %v585_v27 = vsub.f32 %v485_v53, %v3979_v32  ;;  %v4629_v58 = vadd.f32 %v4213_v37, %v1270_v38  ;;  %vm4651_vm0 = vmor %vm831_vm15, %vm832_vm13 }
 0x1a3   :  { %8335 = vst [vmem:[#allocation113_spill] sm:$0xff] %v4620_v4  ;;  %v4626_v14 = vpop.eup %2898  ;;  %v8339_v34 = vsub.f32 %v8337_v2, %v8338_v3  ;;  %v8341_v24 = vsub.f32 %v3417_v7, %v8340_v19  ;;  %v814_v32 = vsel %vm4641_vm14, %v4434_v10, %v810_v62  ;;  %v820_v7 = vmul.f32 %v4471_v49, %v819_v25  ;;  %v8348_v25 = vld [vmem:[#allocation25_spill] sm:$0xff]  ;;  %v4693_v3 = vpop.xlane.xlu2 %461  ;;  %v8354_v19 = vld [vmem:[#allocation64_spill] sm:$0xff] }
 0x1a4   :  { %8336 = vst [vmem:[#allocation100_spill] sm:$0xff] %v4629_v58  ;;  %vm822_vm1 = vweird.f32 %v4471_v49  ;;  %v484_v52 = vmul.f32 0.0078125, %v8346_v5  ;;  %v834_v22 = vsel %vm4651_vm0, %v4455_v21, %v830_v42  ;;  %v838_v40 = vmul.f32 0.5, %v837_v43  ;;  %v4675_v21 = vpop.xlane.xlu0 %457  ;;  %v8349_v42 = vld [vmem:[#allocation65_spill] sm:$0xff]  ;;  %v8449_v58 = vld [vmem:[#allocation122_spill] sm:$0xff] }
 0x1a5   :  { %v1223_v12 = vmul.f32 %v804_v50, %v8339_v34  ;;  %v1222_v28 = vmul.f32 %v794_v45, %v8341_v24  ;;  %v856_v10 = vmul.f32 %v4611_v23, %v4530_v57  ;;  %v846_v39 = vmul.f32 %v4617_v9, %v4533_v16  ;;  %v4673_v50 = vpop.xlane.xlu1 %459  ;;  %v8353_v34 = vld [vmem:[#allocation23_spill] sm:$0xff] }
 0x1a6   :  { %v4665_v31 = vpop.eup %2900  ;;  %vm821_vm2 = vweird.f32 %v4386_v11  ;;  %v866_v53 = vmul.f32 %v4626_v14, %v4547_v46  ;;  %2904 = vrsqrt.f32 %v4623_v20  ;;  %v4671_v38 = vadd.f32 1e-05, %v585_v27  ;;  %v8361_v27 = vld [vmem:[#allocation116_spill] sm:$0xff] }
 0x1a7   :  { %v4677_v0 = vpop.eup %2902  ;;  %v4680_v45 = vadd.f32 %v4213_v37, %v1272_v1  ;;  %v1274_v62 = vmul.f32 %v4202_v8, %v1223_v12  ;;  %v1273_v11 = vmul.f32 %v4202_v8, %v1222_v28  ;;  %v8350_v43 = vsub.f32 %v8348_v25, %v8349_v42  ;;  %vm4689_vm3 = vmor %vm821_vm2, %vm822_vm1 }
 0x1a8   :  { %v8355_v1 = vsub.f32 %v8353_v34, %v8354_v19  ;;  %v824_v12 = vsel %vm4689_vm3, %v4471_v49, %v820_v7  ;;  %vm841_vm4 = vweird.f32 %v4468_v30  ;;  %v584_v28 = vsub.f32 %v484_v52, %v3988_v61  ;;  %v8356_v49 = vld [vmem:[#allocation111_spill] sm:$0xff] }
 0x1a9   :  { %8347 = vst [vmem:[#allocation101_spill] sm:$0xff] %v4680_v45  ;;  %v1224_v2 = vmul.f32 %v814_v32, %v8350_v43  ;;  %v839_v15 = vsub.f32 1.5, %v838_v40  ;;  %v857_v32 = vmul.f32 %v4611_v23, %v856_v10  ;;  %v847_v17 = vmul.f32 %v4617_v9, %v846_v39  ;;  %v8359_v40 = vld [vmem:[#allocation67_spill] sm:$0xff]  ;;  %v8360_v43 = vld [vmem:[#allocation24_spill] sm:$0xff] }
 0x1aa   :  { %v1226_v24 = vmul.f32 %v834_v22, %v8355_v1  ;;  %v886_v5 = vmul.f32 %v4665_v31, %v4565_v54  ;;  %v867_v25 = vmul.f32 %v4626_v14, %v866_v53  ;;  %v876_v22 = vmul.f32 %v4677_v0, %v4574_v36 }
 0x1ab   :  { %2906 = vrsqrt.f32 %v4671_v38  ;;  %v486_v7 = vmul.f32 0.0078125, %v8356_v49  ;;  %v4713_v42 = vadd.f32 %v4213_v37, %v1274_v62  ;;  %v4716_v61 = vadd.f32 %v4213_v37, %v1273_v11  ;;  %v155_v62 = vld [vmem:[#allocation5 + $0x150] sm:$0xff]  ;;  %v154_v49 = vld [vmem:[#allocation5 + $0x148] sm:$0xff]  ;;  %v156_v11 = vld [vmem:[#allocation5 + $0x158] sm:$0xff] }
 0x1ac   :  { %v1275_v52 = vmul.f32 %v4202_v8, %v1224_v2  ;;  %v488_v10 = vmul.f32 0.0078125, %v8359_v40  ;;  %v4720_v39 = vpop.eup %2904  ;;  %v1277_v53 = vmul.f32 %v4202_v8, %v1226_v24  ;;  %v8362_v34 = vsub.f32 %v8360_v43, %v8361_v27  ;;  %1451 = vadd.xlane.f32.xlu1 %v155_v62  ;;  %1449 = vadd.xlane.f32.xlu0 %v154_v49  ;;  %v8363_v43 = vld [vmem:[#allocation118_spill] sm:$0xff] }
 0x1ad   :  { %8357 = vst [vmem:[#allocation102_spill] sm:$0xff] %v4713_v42  ;;  %vm842_vm5 = vweird.f32 %v4550_v41  ;;  %v4727_v1 = vadd.f32 1e-05, %v584_v28  ;;  %v840_v42 = vmul.f32 %v4550_v41, %v839_v15  ;;  %v858_v2 = vmul.f32 0.5, %v857_v32  ;;  %1453 = vadd.xlane.f32.xlu2 %v156_v11 }
 0x1ae   :  { %8358 = vst [vmem:[#allocation103_spill] sm:$0xff] %v4716_v61  ;;  %v1225_v19 = vmul.f32 %v824_v12, %v8362_v34  ;;  %v848_v45 = vmul.f32 0.5, %v847_v17  ;;  %v887_v40 = vmul.f32 %v4665_v31, %v886_v5  ;;  %v868_v24 = vmul.f32 0.5, %v867_v25  ;;  %vm4752_vm8 = vmor %vm841_vm4, %vm842_vm5 }
 0x1af   :  { %v877_v61 = vmul.f32 %v4677_v0, %v876_v22  ;;  %v586_v12 = vsub.f32 %v486_v7, %v4028_v56  ;;  %v487_v27 = vmul.f32 0.0078125, %v8363_v43  ;;  %v4735_v28 = vadd.f32 %v4213_v37, %v1275_v52  ;;  %v4761_v22 = vpop.xlane.xlu0 %463  ;;  %v8371_v43 = vld [vmem:[#allocation66_spill] sm:$0xff] }
 0x1b0   :  { %vm861_vm6 = vweird.f32 %v4530_v57  ;;  %vm862_vm7 = vweird.f32 %v4611_v23  ;;  %v896_v15 = vmul.f32 %v4720_v39, %v4623_v20  ;;  %v588_v32 = vsub.f32 %v488_v10, %v4011_v47  ;;  %v4759_v47 = vpop.xlane.xlu1 %1367  ;;  %v162_v57 = vld [vmem:[#allocation5 + $0x188] sm:$0xff] }
 0x1b1   :  { %8364 = vst [vmem:[#allocation104_spill] sm:$0xff] %v4735_v28  ;;  %v4742_v17 = vpop.eup %2906  ;;  %v4745_v5 = vadd.f32 %v4213_v37, %v1277_v53  ;;  %v1276_v56 = vmul.f32 %v4202_v8, %v1225_v19  ;;  %vm851_vm9 = vweird.f32 %v4533_v16  ;;  %vm852_vm10 = vweird.f32 %v4617_v9  ;;  %v4767_v53 = vpop.xlane.xlu2 %1369  ;;  %vm4804_vm15 = vmor %vm861_vm6, %vm862_vm7 }
 0x1b2   :  { %2908 = vrsqrt.f32 %v4727_v1  ;;  %v844_v7 = vsel %vm4752_vm8, %v4550_v41, %v840_v42  ;;  %v859_v52 = vsub.f32 1.5, %v858_v2  ;;  %v849_v30 = vsub.f32 1.5, %v848_v45  ;;  %v8368_v45 = vld [vmem:[#allocation119_spill] sm:$0xff]  ;;  %vm4822_vm2 = vmor %vm851_vm9, %vm852_vm10 }
 0x1b3   :  { %8365 = vst [vmem:[#allocation18_spill] sm:$0xff] %v4745_v5  ;;  %vm871_vm11 = vweird.f32 %v4547_v46  ;;  %v888_v10 = vmul.f32 0.5, %v887_v40  ;;  %v869_v34 = vsub.f32 1.5, %v868_v24  ;;  %vm891_vm12 = vweird.f32 %v4565_v54  ;;  %v8370_v24 = vld [vmem:[#allocation28_spill] sm:$0xff] }
 0x1b4   :  { %v878_v19 = vmul.f32 0.5, %v877_v61  ;;  %v4770_v62 = vadd.f32 1e-05, %v586_v12  ;;  %v587_v49 = vsub.f32 %v487_v27, %v4017_v26  ;;  %v897_v11 = vmul.f32 %v4720_v39, %v896_v15  ;;  %v158_v12 = vld [vmem:[#allocation5 + $0x168] sm:$0xff]  ;;  %v157_v27 = vld [vmem:[#allocation5 + $0x160] sm:$0xff] }
 0x1b5   :  { %v916_v41 = vmul.f32 %v4742_v17, %v4671_v38  ;;  %v4776_v42 = vadd.f32 1e-05, %v588_v32  ;;  %v489_v2 = vmul.f32 0.0078125, %v8368_v45  ;;  %v4780_v40 = vadd.f32 %v4213_v37, %v1276_v56  ;;  %1457 = vadd.xlane.f32.xlu1 %v158_v12  ;;  %1455 = vadd.xlane.f32.xlu0 %v157_v27  ;;  %v159_v56 = vld [vmem:[#allocation5 + $0x170] sm:$0xff] }
 0x1b6   :  { %v8372_v25 = vsub.f32 %v8370_v24, %v8371_v43  ;;  %vm881_vm13 = vweird.f32 %v4574_v36  ;;  %v491_v26 = vmul.f32 0.0078125, %v4005_v18  ;;  %v860_v15 = vmul.f32 %v4611_v23, %v859_v52  ;;  %1459 = vadd.xlane.f32.xlu2 %v159_v56 }
 0x1b7   :  { %8369 = vst [vmem:[#allocation112_spill] sm:$0xff] %v4780_v40  ;;  %v850_v32 = vmul.f32 %v4617_v9, %v849_v30  ;;  %vm872_vm14 = vweird.f32 %v4626_v14  ;;  %v889_v45 = vsub.f32 1.5, %v888_v10  ;;  %v879_v24 = vsub.f32 1.5, %v878_v19 }
 0x1b8   :  { %v1227_v61 = vmul.f32 %v844_v7, %v8372_v25  ;;  %v4790_v5 = vpop.eup %2908  ;;  %v870_v7 = vmul.f32 %v4626_v14, %v869_v34  ;;  %2910 = vrsqrt.f32 %v4770_v62  ;;  %v4794_v18 = vadd.f32 1e-05, %v587_v49  ;;  %v4811_v49 = vpop.xlane.xlu1 %1373  ;;  %vm4839_vm4 = vmor %vm871_vm11, %vm872_vm14  ;;  %v160_v34 = vld [vmem:[#allocation5 + $0x178] sm:$0xff] }
 0x1b9   :  { %v898_v43 = vmul.f32 0.5, %v897_v11  ;;  %v917_v52 = vmul.f32 %v4742_v17, %v916_v41  ;;  %2912 = vrsqrt.f32 %v4776_v42  ;;  %v589_v30 = vsub.f32 %v489_v2, %v4066_v13  ;;  %v4813_v11 = vpop.xlane.xlu0 %1371  ;;  %v4830_v2 = vpop.xlane.xlu2 %1375 }
 0x1ba   :  { %v1278_v10 = vmul.f32 %v4202_v8, %v1227_v61  ;;  %vm892_vm0 = vweird.f32 %v4665_v31  ;;  %vm882_vm1 = vweird.f32 %v4677_v0  ;;  %v591_v19 = vsub.f32 %v491_v26, %v4045_v59 }
 0x1bb   :  { %v864_v13 = vsel %vm4804_vm15, %v4611_v23, %v860_v15  ;;  %vm901_vm3 = vweird.f32 %v4623_v20  ;;  %v906_v59 = vmul.f32 %v4790_v5, %v4727_v1  ;;  %v490_v41 = vmul.f32 0.0078125, %v4007_v29  ;;  %vm4853_vm5 = vmor %vm891_vm12, %vm892_vm0 }
 0x1bc   :  { %v854_v23 = vsel %vm4822_vm2, %v4617_v9, %v850_v32  ;;  %v890_v25 = vmul.f32 %v4665_v31, %v889_v45  ;;  %v880_v61 = vmul.f32 %v4677_v0, %v879_v24  ;;  %2914 = vrsqrt.f32 %v4794_v18  ;;  %v8382_v32 = vld [vmem:[#allocation26_spill] sm:$0xff]  ;;  %v8383_v45 = vld [vmem:[#allocation117_spill] sm:$0xff]  ;;  %v161_v24 = vld [vmem:[#allocation5 + $0x180] sm:$0xff] }
 0x1bd   :  { %v874_v29 = vsel %vm4839_vm4, %v4626_v14, %v870_v7  ;;  %v899_v9 = vsub.f32 1.5, %v898_v43  ;;  %v918_v26 = vmul.f32 0.5, %v917_v52  ;;  %v4857_v12 = vadd.f32 1e-05, %v589_v30  ;;  %v8385_v52 = vld [vmem:[#allocation27_spill] sm:$0xff]  ;;  %v8386_v30 = vld [vmem:[#allocation22_spill] sm:$0xff]  ;;  %vm4879_vm6 = vmor %vm881_vm13, %vm882_vm1  ;;  %1463 = vadd.xlane.f32.xlu1 %v161_v24  ;;  %1461 = vadd.xlane.f32.xlu0 %v160_v34 }
 0x1be   :  { %v4859_v27 = vpop.eup %2910  ;;  %v4862_v15 = vadd.f32 %v4213_v37, %v1278_v10  ;;  %v8384_v14 = vsub.f32 %v8382_v32, %v8383_v45  ;;  %v4867_v7 = vadd.f32 1e-05, %v591_v19  ;;  %v492_v54 = vmul.f32 0.0078125, %v4022_v51  ;;  %v8390_v51 = vld [vmem:[#allocation125_spill] sm:$0xff]  ;;  %1465 = vadd.xlane.f32.xlu2 %v162_v57  ;;  %v8396_v57 = vld [vmem:[#allocation127_spill] sm:$0xff] }
 0x1bf   :  { %v4870_v43 = vpop.eup %2912  ;;  %v8387_v16 = vsub.f32 %v8385_v52, %v8386_v30  ;;  %v907_v19 = vmul.f32 %v4790_v5, %v906_v59  ;;  %v8391_v32 = vld [vmem:[#allocation133_spill] sm:$0xff]  ;;  %v894_v36 = vsel %vm4853_vm5, %v4665_v31, %v890_v25  ;;  %v884_v30 = vsel %vm4879_vm6, %v4677_v0, %v880_v61 }
 0x1c0   :  { %8381 = vst [vmem:[#allocation15_spill] sm:$0xff] %v4862_v15  ;;  %v1229_v56 = vmul.f32 %v864_v13, %v8384_v14  ;;  %v590_v13 = vsub.f32 %v490_v41, %v8390_v51  ;;  %v494_v45 = vmul.f32 0.0078125, %v8391_v32  ;;  %v8392_v14 = vld [vmem:[#allocation31_spill] sm:$0xff]  ;;  %v8393_v15 = vld [vmem:[#allocation69_spill] sm:$0xff]  ;;  %vm902_vm7 = vweird.f32 %v4720_v39  ;;  %v4907_v61 = vpop.xlane.xlu1 %1379  ;;  %v8398_v32 = vld [vmem:[#allocation120_spill] sm:$0xff] }
 0x1c1   :  { %v1228_v28 = vmul.f32 %v854_v23, %v8387_v16  ;;  %v8394_v52 = vsub.f32 %v8392_v14, %v8393_v15  ;;  %v900_v59 = vmul.f32 %v4720_v39, %v899_v9  ;;  %v919_v41 = vsub.f32 1.5, %v918_v26  ;;  %v8395_v0 = vld [vmem:[#allocation129_spill] sm:$0xff]  ;;  %v4909_v9 = vpop.xlane.xlu0 %1377  ;;  %v4915_v10 = vpop.xlane.xlu2 %1381  ;;  %vm4928_vm8 = vmor %vm901_vm3, %vm902_vm7 }
 0x1c2   :  { %v926_v24 = vmul.f32 %v4859_v27, %v4770_v62  ;;  %2916 = vrsqrt.f32 %v4857_v12  ;;  %v1280_v46 = vmul.f32 %v4202_v8, %v1229_v56  ;;  %v946_v31 = vmul.f32 %v4870_v43, %v4776_v42  ;;  %v8397_v51 = vld [vmem:[#allocation29_spill] sm:$0xff] }
 0x1c3   :  { %v1230_v23 = vmul.f32 %v874_v29, %v8394_v52  ;;  %v4900_v29 = vpop.eup %2914  ;;  %2918 = vrsqrt.f32 %v4867_v7  ;;  %v592_v25 = vsub.f32 %v492_v54, %v8395_v0  ;;  %v1279_v26 = vmul.f32 %v4202_v8, %v1228_v28  ;;  %v8400_v54 = vld [vmem:[#allocation30_spill] sm:$0xff]  ;;  %v8401_v0 = vld [vmem:[#allocation68_spill] sm:$0xff] }
 0x1c4   :  { %v908_v15 = vmul.f32 0.5, %v907_v19  ;;  %v4912_v34 = vadd.f32 1e-05, %v590_v13  ;;  %v594_v16 = vsub.f32 %v494_v45, %v8396_v57  ;;  %v8399_v14 = vsub.f32 %v8397_v51, %v8398_v32  ;;  %v8410_v51 = vld [vmem:[#allocation71_spill] sm:$0xff] }
 0x1c5   :  { %v1281_v56 = vmul.f32 %v4202_v8, %v1230_v23  ;;  %v8402_v40 = vsub.f32 %v8400_v54, %v8401_v0  ;;  %vm922_vm9 = vweird.f32 %v4742_v17  ;;  %v904_v19 = vsel %vm4928_vm8, %v4720_v39, %v900_v59  ;;  %v8406_v59 = vld [vmem:[#allocation134_spill] sm:$0xff] }
 0x1c6   :  { %v1232_v52 = vmul.f32 %v894_v36, %v8399_v14  ;;  %v920_v13 = vmul.f32 %v4742_v17, %v919_v41  ;;  %v927_v45 = vmul.f32 %v4859_v27, %v926_v24  ;;  %v4941_v23 = vadd.f32 %v4213_v37, %v1280_v46 }
 0x1c7   :  { %v1231_v4 = vmul.f32 %v884_v30, %v8402_v40  ;;  %v936_v40 = vmul.f32 %v4900_v29, %v4794_v18  ;;  %vm921_vm10 = vweird.f32 %v4671_v38  ;;  %v947_v20 = vmul.f32 %v4870_v43, %v946_v31 }
 0x1c8   :  { %8405 = vst [vmem:[#allocation106_spill] sm:$0xff] %v4941_v23  ;;  %v4945_v36 = vadd.f32 1e-05, %v592_v25  ;;  %v4947_v30 = vpop.eup %2916  ;;  %v909_v57 = vsub.f32 1.5, %v908_v15  ;;  %2920 = vrsqrt.f32 %v4912_v34  ;;  %v4950_v39 = vadd.f32 1e-05, %v594_v16  ;;  %vm4967_vm11 = vmor %vm921_vm10, %vm922_vm9  ;;  %v4980_v28 = vpop.xlane.xlu1 %1385 }
 0x1c9   :  { %v493_v41 = vmul.f32 0.0078125, %v8406_v59  ;;  %v4953_v24 = vpop.eup %2918  ;;  %v4956_v46 = vadd.f32 %v4213_v37, %v1279_v26  ;;  %v4959_v38 = vadd.f32 %v4213_v37, %v1281_v56  ;;  %v1283_v31 = vmul.f32 %v4202_v8, %v1232_v52  ;;  %v8409_v25 = vld [vmem:[#allocation34_spill] sm:$0xff]  ;;  %8414 = vst [vmem:[#allocation21_spill] sm:$0xff] %v4980_v28 }
 0x1ca   :  { %v8411_v32 = vsub.f32 %v8409_v25, %v8410_v51  ;;  %v1282_v14 = vmul.f32 %v4202_v8, %v1231_v4  ;;  %v924_v26 = vsel %vm4967_vm11, %v4742_v17, %v920_v13  ;;  %v928_v56 = vmul.f32 0.5, %v927_v45  ;;  %v8416_v13 = vld [vmem:[#allocation128_spill] sm:$0xff]  ;;  %v8420_v51 = vld [vmem:[#allocation121_spill] sm:$0xff] }
 0x1cb   :  { %8407 = vst [vmem:[#allocation105_spill] sm:$0xff] %v4956_v46  ;;  %v937_v54 = vmul.f32 %v4900_v29, %v936_v40  ;;  %vm912_vm12 = vweird.f32 %v4790_v5  ;;  %v948_v52 = vmul.f32 0.5, %v947_v20  ;;  %v956_v0 = vmul.f32 %v4947_v30, %v4857_v12  ;;  %v4989_v40 = vpop.xlane.xlu2 %1387  ;;  %v8419_v25 = vld [vmem:[#allocation32_spill] sm:$0xff] }
 0x1cc   :  { %8408 = vst [vmem:[#allocation107_spill] sm:$0xff] %v4959_v38  ;;  %v1233_v15 = vmul.f32 %v904_v19, %v8411_v32  ;;  %2922 = vrsqrt.f32 %v4945_v36  ;;  %v4982_v19 = vpop.xlane.xlu0 %1383  ;;  %v910_v4 = vmul.f32 %v4790_v5, %v909_v57  ;;  %v976_v17 = vmul.f32 %v4953_v24, %v4867_v7  ;;  %v8422_v38 = vld [vmem:[#allocation137_spill] sm:$0xff] }
 0x1cd   :  { %8415 = vst [vmem:[#allocation115_spill] sm:$0xff] %v4982_v19  ;;  %2924 = vrsqrt.f32 %v4950_v39  ;;  %v593_v45 = vsub.f32 %v493_v41, %v8416_v13  ;;  %v4992_v20 = vadd.f32 %v4213_v37, %v1283_v31  ;;  %v8421_v32 = vsub.f32 %v8419_v25, %v8420_v51  ;;  %v8427_v25 = vld [vmem:[#allocation135_spill] sm:$0xff] }
 0x1ce   :  { %8417 = vst [vmem:[#allocation63_spill] sm:$0xff] %v4989_v40  ;;  %v1284_v59 = vmul.f32 %v4202_v8, %v1233_v15  ;;  %v495_v57 = vmul.f32 0.0078125, %v8422_v38  ;;  %v4999_v23 = vpop.eup %2920  ;;  %v5002_v46 = vadd.f32 %v4213_v37, %v1282_v14  ;;  %vm911_vm13 = vweird.f32 %v4727_v1  ;;  %v8475_v40 = vld [vmem:[#allocation123_spill] sm:$0xff] }
 0x1cf   :  { %8418 = vst [vmem:[#allocation108_spill] sm:$0xff] %v4992_v20  ;;  %v1235_v16 = vmul.f32 %v924_v26, %v8421_v32  ;;  %v929_v41 = vsub.f32 1.5, %v928_v56  ;;  %v938_v13 = vmul.f32 0.5, %v937_v54  ;;  %vm5007_vm14 = vmor %vm911_vm13, %vm912_vm12  ;;  %vm931_vm15 = vweird.f32 %v4770_v62 }
 0x1d0   :  { %8423 = vst [vmem:[#allocation25_spill] sm:$0xff] %v5002_v46  ;;  %v949_v15 = vsub.f32 1.5, %v948_v52  ;;  %vm951_vm0 = vweird.f32 %v4776_v42  ;;  %v957_v38 = vmul.f32 %v4947_v30, %v956_v0  ;;  %v914_v14 = vsel %vm5007_vm14, %v4790_v5, %v910_v4  ;;  %v5040_v20 = vpop.xlane.xlu1 %1391 }
 0x1d1   :  { %vm941_vm1 = vweird.f32 %v4794_v18  ;;  %v977_v1 = vmul.f32 %v4953_v24, %v976_v17  ;;  %v5019_v26 = vadd.f32 1e-05, %v593_v45  ;;  %v5024_v54 = vadd.f32 %v4213_v37, %v1284_v59  ;;  %v8428_v17 = vld [vmem:[#allocation33_spill] sm:$0xff]  ;;  %v8429_v45 = vld [vmem:[#allocation70_spill] sm:$0xff]  ;;  %8431 = vst [vmem:[#allocation23_spill] sm:$0xff] %v5040_v20  ;;  %v8453_v20 = vld [vmem:[#allocation132_spill] sm:$0xff] }
 0x1d2   :  { %v5021_v56 = vpop.eup %2922  ;;  %v1286_v52 = vmul.f32 %v4202_v8, %v1235_v16  ;;  %v966_v0 = vmul.f32 %v4999_v23, %v4912_v34  ;;  %v595_v51 = vsub.f32 %v495_v57, %v8427_v25  ;;  %v930_v5 = vmul.f32 %v4859_v27, %v929_v41 }
 0x1d3   :  { %8426 = vst [vmem:[#allocation65_spill] sm:$0xff] %v5024_v54  ;;  %v5030_v32 = vpop.eup %2924  ;;  %vm932_vm2 = vweird.f32 %v4859_v27  ;;  %vm952_vm3 = vweird.f32 %v4870_v43  ;;  %v939_v4 = vsub.f32 1.5, %v938_v13  ;;  %v8430_v59 = vsub.f32 %v8428_v17, %v8429_v45  ;;  %v8433_v13 = vld [vmem:[#allocation148_spill] sm:$0xff]  ;;  %v5048_v63 = vpop.xlane.xlu2 %1393 }
 0x1d4   :  { %v950_v16 = vmul.f32 %v4870_v43, %v949_v15  ;;  %vm942_vm4 = vweird.f32 %v4900_v29  ;;  %v958_v54 = vmul.f32 0.5, %v957_v38  ;;  %v5042_v57 = vpop.xlane.xlu0 %1389  ;;  %v978_v25 = vmul.f32 0.5, %v977_v1  ;;  %8434 = vst [vmem:[#allocation111_spill] sm:$0xff] %v5048_v63  ;;  %vm5057_vm5 = vmor %vm931_vm15, %vm932_vm2  ;;  %v8441_v15 = vld [vmem:[#allocation130_spill] sm:$0xff]  ;;  %v8451_v63 = vld [vmem:[#allocation91_spill] sm:$0xff] }
 0x1d5   :  { %v1234_v31 = vmul.f32 %v914_v14, %v8430_v59  ;;  %8432 = vst [vmem:[#allocation64_spill] sm:$0xff] %v5042_v57  ;;  %v986_v41 = vmul.f32 %v5021_v56, %v4945_v36  ;;  %2926 = vrsqrt.f32 %v5019_v26  ;;  %v497_v46 = vmul.f32 0.0078125, %v8433_v13  ;;  %vm5074_vm7 = vmor %vm951_vm0, %vm952_vm3 }
 0x1d6   :  { %v5051_v14 = vadd.f32 %v4213_v37, %v1286_v52  ;;  %vm961_vm6 = vweird.f32 %v4857_v12  ;;  %v967_v38 = vmul.f32 %v4999_v23, %v966_v0  ;;  %v1006_v1 = vmul.f32 %v5030_v32, %v4950_v39  ;;  %vm5093_vm11 = vmor %vm941_vm1, %vm942_vm4 }
 0x1d7   :  { %v5065_v17 = vadd.f32 1e-05, %v595_v51  ;;  %v934_v52 = vsel %vm5057_vm5, %v4859_v27, %v930_v5  ;;  %v940_v45 = vmul.f32 %v4900_v29, %v939_v4  ;;  %vm962_vm8 = vweird.f32 %v4947_v30  ;;  %v8440_v5 = vld [vmem:[#allocation149_spill] sm:$0xff] }
 0x1d8   :  { %8435 = vst [vmem:[#allocation67_spill] sm:$0xff] %v5051_v14  ;;  %vm981_vm9 = vweird.f32 %v4867_v7  ;;  %v1285_v0 = vmul.f32 %v4202_v8, %v1234_v31  ;;  %v954_v27 = vsel %vm5074_vm7, %v4870_v43, %v950_v16  ;;  %v959_v51 = vsub.f32 1.5, %v958_v54  ;;  %v8444_v54 = vld [vmem:[#allocation94_spill] sm:$0xff]  ;;  %v8448_v14 = vld [vmem:[#allocation35_spill] sm:$0xff]  ;;  %vm5146_vm13 = vmor %vm961_vm6, %vm962_vm8 }
 0x1d9   :  { %v496_v59 = vmul.f32 0.0078125, %v8440_v5  ;;  %v979_v42 = vsub.f32 1.5, %v978_v25  ;;  %vm982_vm10 = vweird.f32 %v4953_v24  ;;  %v987_v13 = vmul.f32 %v5021_v56, %v986_v41  ;;  %v8445_v41 = vld [vmem:[#allocation37_spill] sm:$0xff] }
 0x1da   :  { %v597_v4 = vsub.f32 %v497_v46, %v8441_v15  ;;  %v968_v62 = vmul.f32 0.5, %v967_v38  ;;  %v1007_v43 = vmul.f32 %v5030_v32, %v1006_v1  ;;  %2928 = vrsqrt.f32 %v5065_v17  ;;  %v8446_v5 = vld [vmem:[#allocation73_spill] sm:$0xff]  ;;  %vm5162_vm14 = vmor %vm981_vm9, %vm982_vm10 }
 0x1db   :  { %v498_v16 = vmul.f32 0.0078125, %v8444_v54  ;;  %v5100_v25 = vpop.eup %2926  ;;  %v8447_v46 = vsub.f32 %v8445_v41, %v8446_v5  ;;  %v8450_v18 = vsub.f32 %v8448_v14, %v8449_v58  ;;  %v944_v38 = vsel %vm5093_vm11, %v4900_v29, %v940_v45  ;;  %v5122_v14 = vpop.xlane.xlu1 %1397 }
 0x1dc   :  { %v500_v1 = vmul.f32 0.0078125, %v8451_v63  ;;  %v5113_v57 = vadd.f32 %v4213_v37, %v1285_v0  ;;  %v960_v54 = vmul.f32 %v4947_v30, %v959_v51  ;;  %vm971_vm12 = vweird.f32 %v4912_v34  ;;  %8454 = vst [vmem:[#allocation116_spill] sm:$0xff] %v5122_v14  ;;  %v5129_v0 = vld [vmem:[#allocation5] sm:$0xff]  ;;  %v5151_v14 = vld [vmem:[#allocation5 + $0x10] sm:$0xff] }
 0x1dd   :  { %v1236_v15 = vmul.f32 %v934_v52, %v8447_v46  ;;  %v1238_v33 = vmul.f32 %v954_v27, %v8450_v18  ;;  %v596_v41 = vsub.f32 %v496_v59, %v8453_v20  ;;  %v5118_v52 = vld [vmem:[#allocation5 + $0x8] sm:$0xff]  ;;  %v5124_v27 = vpop.xlane.xlu0 %1395  ;;  %v980_v63 = vmul.f32 %v4953_v24, %v979_v42  ;;  %v5133_v20 = vpop.xlane.xlu2 %1399  ;;  %v8457_v46 = vld [vmem:[#allocation140_spill] sm:$0xff] }
 0x1de   :  { %8452 = vst [vmem:[#allocation24_spill] sm:$0xff] %v5113_v57  ;;  %v1518_v58 = vmul.f32 %v5118_v52, %v5118_v52  ;;  %v988_v29 = vmul.f32 0.5, %v987_v13  ;;  %v5127_v45 = vadd.f32 1e-05, %v597_v4  ;;  %v1517_v51 = vmul.f32 %v5129_v0, %v5129_v0  ;;  %v8458_v13 = vld [vmem:[#allocation36_spill] sm:$0xff] }
 0x1df   :  { %8455 = vst [vmem:[#allocation118_spill] sm:$0xff] %v5124_v27  ;;  %v969_v59 = vsub.f32 1.5, %v968_v62  ;;  %v1008_v31 = vmul.f32 0.5, %v1007_v43  ;;  %v996_v5 = vmul.f32 %v5100_v25, %v5019_v26  ;;  %v598_v18 = vsub.f32 %v498_v16, %v8457_v46  ;;  %v8459_v4 = vld [vmem:[#allocation72_spill] sm:$0xff]  ;;  %v8463_v62 = vld [vmem:[#allocation138_spill] sm:$0xff] }
 0x1e0   :  { %8456 = vst [vmem:[#allocation119_spill] sm:$0xff] %v5133_v20  ;;  %1569 = vadd.xlane.f32.xlu1 %v1518_v58  ;;  %v1287_v42 = vmul.f32 %v4202_v8, %v1236_v15  ;;  %v8460_v57 = vsub.f32 %v8458_v13, %v8459_v4  ;;  %v600_v43 = vsub.f32 %v500_v1, %v8463_v62  ;;  %v5155_v15 = vpop.eup %2928  ;;  %vm972_vm15 = vweird.f32 %v4999_v23  ;;  %v5186_v4 = vld [vmem:[#allocation5 + $0x20] sm:$0xff]  ;;  %v5195_v62 = vld [vmem:[#allocation5 + $0x18] sm:$0xff] }
 0x1e1   :  { %1567 = vadd.xlane.f32.xlu0 %v1517_v51  ;;  %v1519_v16 = vmul.f32 %v5151_v14, %v5151_v14  ;;  %vm991_vm0 = vweird.f32 %v4945_v36  ;;  %v964_v1 = vsel %vm5146_vm13, %v4947_v30, %v960_v54  ;;  %v989_v58 = vsub.f32 1.5, %v988_v29  ;;  %v8466_v30 = vld [vmem:[#allocation153_spill] sm:$0xff]  ;;  %v8468_v29 = vld [vmem:[#allocation75_spill] sm:$0xff]  ;;  %8471 = vst [vmem:[#allocation28_spill] sm:$0xff] %v5195_v62  ;;  %vm5210_vm1 = vmor %vm971_vm12, %vm972_vm15 }
 0x1e2   :  { %v1237_v27 = vmul.f32 %v944_v38, %v8460_v57  ;;  %v1289_v57 = vmul.f32 %v4202_v8, %v1238_v33  ;;  %v5168_v38 = vadd.f32 1e-05, %v596_v41  ;;  %v984_v33 = vsel %vm5162_vm14, %v4953_v24, %v980_v63  ;;  %v8467_v63 = vld [vmem:[#allocation40_spill] sm:$0xff] }
 0x1e3   :  { %2930 = vrsqrt.f32 %v5127_v45  ;;  %1571 = vadd.xlane.f32.xlu2 %v1519_v16  ;;  %v970_v7 = vmul.f32 %v4999_v23, %v969_v59  ;;  %v1009_v51 = vsub.f32 1.5, %v1008_v31  ;;  %v997_v46 = vmul.f32 %v5100_v25, %v996_v5  ;;  %v8470_v5 = vld [vmem:[#allocation99_spill] sm:$0xff]  ;;  %v5199_v16 = vpop.xlane.xlu1 %1403 }
 0x1e4   :  { %v5179_v13 = vadd.f32 1e-05, %v598_v18  ;;  %v1016_v41 = vmul.f32 %v5155_v15, %v5065_v17  ;;  %v5183_v20 = vadd.f32 1e-05, %v600_v43  ;;  %v499_v54 = vmul.f32 0.0078125, %v8466_v30  ;;  %8472 = vst [vmem:[#allocation66_spill] sm:$0xff] %v5199_v16 }
 0x1e5   :  { %v1521_v24 = vmul.f32 %v5186_v4, %v5186_v4  ;;  %v8469_v59 = vsub.f32 %v8467_v63, %v8468_v29  ;;  %2932 = vrsqrt.f32 %v5168_v38  ;;  %v501_v18 = vmul.f32 0.0078125, %v8470_v5  ;;  %v5201_v12 = vpop.xlane.xlu0 %1401  ;;  %v8474_v30 = vld [vmem:[#allocation38_spill] sm:$0xff]  ;;  %v5216_v29 = vld [vmem:[#allocation5 + $0x28] sm:$0xff] }
 0x1e6   :  { %v1520_v43 = vmul.f32 %v5195_v62, %v5195_v62  ;;  %8473 = vst [vmem:[#allocation26_spill] sm:$0xff] %v5201_v12  ;;  %v8476_v19 = vsub.f32 %v8474_v30, %v8475_v40  ;;  %v990_v63 = vmul.f32 %v5021_v56, %v989_v58  ;;  %vm992_vm2 = vweird.f32 %v5021_v56  ;;  %v5225_v40 = vpop.xlane.xlu2 %1405  ;;  %v8481_v30 = vld [vmem:[#allocation139_spill] sm:$0xff] }
 0x1e7   :  { %v1239_v31 = vmul.f32 %v964_v1, %v8469_v59  ;;  %8479 = vst [vmem:[#allocation117_spill] sm:$0xff] %v5216_v29  ;;  %v1522_v59 = vmul.f32 %v5216_v29, %v5216_v29  ;;  %vm1012_vm3 = vweird.f32 %v5030_v32  ;;  %v998_v34 = vmul.f32 0.5, %v997_v46  ;;  %vm5242_vm4 = vmor %vm991_vm0, %vm992_vm2  ;;  %v5654_v29 = vld [vmem:[#allocation5 + $0xb0] sm:$0xff] }
 0x1e8   :  { %v1241_v28 = vmul.f32 %v984_v33, %v8476_v19  ;;  %v974_v19 = vsel %vm5210_vm1, %v4999_v23, %v970_v7  ;;  %2934 = vrsqrt.f32 %v5179_v13  ;;  %1575 = vadd.xlane.f32.xlu1 %v1521_v24  ;;  %8480 = vst [vmem:[#allocation27_spill] sm:$0xff] %v5225_v40  ;;  %v1010_v58 = vmul.f32 %v5030_v32, %v1009_v51 }
 0x1e9   :  { %v5227_v33 = vpop.eup %2930  ;;  %v1017_v5 = vmul.f32 %v5155_v15, %v1016_v41  ;;  %2936 = vrsqrt.f32 %v5183_v20  ;;  %v599_v12 = vsub.f32 %v499_v54, %v8481_v30  ;;  %1573 = vadd.xlane.f32.xlu0 %v1520_v43  ;;  %v5234_v23 = vadd.f32 %v4213_v37, %v1287_v42  ;;  %v8485_v41 = vld [vmem:[#allocation144_spill] sm:$0xff]  ;;  %v8487_v43 = vld [vmem:[#allocation39_spill] sm:$0xff]  ;;  %v8488_v42 = vld [vmem:[#allocation74_spill] sm:$0xff]  ;;  %8591 = vst [vmem:[#allocation139_spill] sm:$0xff] %v5654_v29 }
 0x1ea   :  { %v1288_v7 = vmul.f32 %v4202_v8, %v1237_v27  ;;  %v1290_v46 = vmul.f32 %v4202_v8, %v1239_v31  ;;  %v601_v24 = vsub.f32 %v501_v18, %v8485_v41  ;;  %v5248_v54 = vadd.f32 %v4213_v37, %v1289_v57  ;;  %v5268_v41 = vld [vmem:[#allocation5 + $0x38] sm:$0xff] }
 0x1eb   :  { %8482 = vst [vmem:[#allocation22_spill] sm:$0xff] %v5234_v23  ;;  %v8489_v1 = vsub.f32 %v8487_v43, %v8488_v42  ;;  %v994_v27 = vsel %vm5242_vm4, %v5021_v56, %v990_v63  ;;  %vm1011_vm5 = vweird.f32 %v4950_v39  ;;  %1577 = vadd.xlane.f32.xlu2 %v1522_v59  ;;  %v5257_v36 = vpop.eup %2932  ;;  %v1292_v31 = vmul.f32 %v4202_v8, %v1241_v28  ;;  %v5277_v59 = vld [vmem:[#allocation5 + $0x30] sm:$0xff] }
 0x1ec   :  { %8486 = vst [vmem:[#allocation125_spill] sm:$0xff] %v5248_v54  ;;  %vm5262_vm6 = vmor %vm1011_vm5, %vm1012_vm3  ;;  %v999_v18 = vsub.f32 1.5, %v998_v34  ;;  %v1524_v39 = vmul.f32 %v5268_v41, %v5268_v41  ;;  %v1018_v28 = vmul.f32 0.5, %v1017_v5  ;;  %v5275_v63 = vadd.f32 1e-05, %v599_v12  ;;  %v8497_v54 = vld [vmem:[#allocation77_spill] sm:$0xff] }
 0x1ed   :  { %v1240_v30 = vmul.f32 %v974_v19, %v8489_v1  ;;  %v1036_v19 = vmul.f32 %v5227_v33, %v5127_v45  ;;  %8492 = vst [vmem:[#allocation133_spill] sm:$0xff] %v5268_v41  ;;  %v1014_v56 = vsel %vm5262_vm6, %v5030_v32, %v1010_v58  ;;  %v1523_v34 = vmul.f32 %v5277_v59, %v5277_v59  ;;  %v8496_v1 = vld [vmem:[#allocation43_spill] sm:$0xff] }
 0x1ee   :  { %8493 = vst [vmem:[#allocation31_spill] sm:$0xff] %v5277_v59  ;;  %v5281_v51 = vpop.eup %2934  ;;  %v5284_v43 = vadd.f32 %v4213_v37, %v1288_v7  ;;  %v5287_v42 = vadd.f32 %v4213_v37, %v1290_v46  ;;  %v8498_v57 = vsub.f32 %v8496_v1, %v8497_v54  ;;  %v5292_v58 = vadd.f32 1e-05, %v601_v24  ;;  %v5300_v7 = vld [vmem:[#allocation5 + $0x40] sm:$0xff]  ;;  %v8501_v54 = vld [vmem:[#allocation41_spill] sm:$0xff] }
 0x1ef   :  { %v5294_v12 = vpop.eup %2936  ;;  %v1291_v5 = vmul.f32 %v4202_v8, %v1240_v30  ;;  %vm1001_vm7 = vweird.f32 %v5019_v26  ;;  %v1026_v23 = vmul.f32 %v5257_v36, %v5168_v38  ;;  %8499 = vst [vmem:[#allocation127_spill] sm:$0xff] %v5300_v7  ;;  %v1525_v46 = vmul.f32 %v5300_v7, %v5300_v7 }
 0x1f0   :  { %8494 = vst [vmem:[#allocation69_spill] sm:$0xff] %v5284_v43  ;;  %v1242_v32 = vmul.f32 %v994_v27, %v8498_v57  ;;  %v8502_v27 = vld [vmem:[#allocation124_spill] sm:$0xff]  ;;  %v1000_v57 = vmul.f32 %v5100_v25, %v999_v18  ;;  %vm1002_vm8 = vweird.f32 %v5100_v25  ;;  %v1037_v30 = vmul.f32 %v5227_v33, %v1036_v19  ;;  %1581 = vadd.xlane.f32.xlu1 %v1524_v39  ;;  %v5312_v43 = vpop.xlane.xlu0 %1407  ;;  %v8506_v19 = vld [vmem:[#allocation93_spill] sm:$0xff] }
 0x1f1   :  { %8495 = vst [vmem:[#allocation129_spill] sm:$0xff] %v5287_v42  ;;  %v5304_v42 = vpop.xlane.xlu1 %1409  ;;  %v8503_v24 = vsub.f32 %v8501_v54, %v8502_v27  ;;  %v5315_v40 = vadd.f32 %v4213_v37, %v1292_v31  ;;  %v1019_v16 = vsub.f32 1.5, %v1018_v28  ;;  %2938 = vrsqrt.f32 %v5275_v63  ;;  %1579 = vadd.xlane.f32.xlu0 %v1523_v34  ;;  %v5325_v54 = vpop.xlane.xlu2 %1411  ;;  %vm5334_vm9 = vmor %vm1001_vm7, %vm1002_vm8  ;;  %v8516_v28 = vld [vmem:[#allocation16_spill] sm:$0xff] }
 0x1f2   :  { %8500 = vst [vmem:[#allocation29_spill] sm:$0xff] %v5304_v42  ;;  %v1046_v42 = vmul.f32 %v5281_v51, %v5179_v13  ;;  %v1066_v18 = vmul.f32 %v5294_v12, %v5183_v20  ;;  %2940 = vrsqrt.f32 %v5292_v58  ;;  %v503_v39 = vmul.f32 0.0078125, %v8506_v19 }
 0x1f3   :  { %v1244_v1 = vmul.f32 %v1014_v56, %v8503_v24  ;;  %8504 = vst [vmem:[#allocation120_spill] sm:$0xff] %v5312_v43  ;;  %v1293_v56 = vmul.f32 %v4202_v8, %v1242_v32  ;;  %v5328_v31 = vadd.f32 %v4213_v37, %v1291_v5  ;;  %vm1021_vm10 = vweird.f32 %v5065_v17  ;;  %1583 = vadd.xlane.f32.xlu2 %v1525_v46  ;;  %v5345_v24 = vld [vmem:[#allocation5 + $0x50] sm:$0xff] }
 0x1f4   :  { %8505 = vst [vmem:[#allocation30_spill] sm:$0xff] %v5315_v40  ;;  %vm1022_vm11 = vweird.f32 %v5155_v15  ;;  %v1027_v34 = vmul.f32 %v5257_v36, %v1026_v23  ;;  %v1004_v5 = vsel %vm5334_vm9, %v5100_v25, %v1000_v57  ;;  %v1038_v27 = vmul.f32 0.5, %v1037_v30  ;;  %v5352_v23 = vld [vmem:[#allocation5 + $0x48] sm:$0xff] }
 0x1f5   :  { %8507 = vst [vmem:[#allocation68_spill] sm:$0xff] %v5325_v54  ;;  %v1295_v32 = vmul.f32 %v4202_v8, %v1244_v1  ;;  %v1527_v26 = vmul.f32 %v5345_v24, %v5345_v24  ;;  %v1020_v19 = vmul.f32 %v5155_v15, %v1019_v16  ;;  %v1047_v40 = vmul.f32 %v5281_v51, %v1046_v42  ;;  %v8515_v57 = vld [vmem:[#allocation141_spill] sm:$0xff]  ;;  %vm5383_vm14 = vmor %vm1021_vm10, %vm1022_vm11 }
 0x1f6   :  { %8508 = vst [vmem:[#allocation134_spill] sm:$0xff] %v5328_v31  ;;  %v8512_v31 = vld [vmem:[#allocation98_spill] sm:$0xff]  ;;  %v1526_v46 = vmul.f32 %v5352_v23, %v5352_v23  ;;  %v5357_v1 = vadd.f32 %v4213_v37, %v1293_v56  ;;  %v1067_v25 = vmul.f32 %v5294_v12, %v1066_v18  ;;  %v603_v30 = vsub.f32 %v503_v39, %v8515_v57  ;;  %v8520_v57 = vld [vmem:[#allocation76_spill] sm:$0xff] }
 0x1f7   :  { %8511 = vst [vmem:[#allocation34_spill] sm:$0xff] %v5345_v24  ;;  %v502_v54 = vmul.f32 0.0078125, %v8512_v31  ;;  %v504_v43 = vmul.f32 0.0078125, %v8516_v28  ;;  %v5362_v24 = vpop.eup %2938  ;;  %vm1041_vm12 = vweird.f32 %v5127_v45  ;;  %vm1042_vm13 = vweird.f32 %v5227_v33  ;;  %v5367_v31 = vld [vmem:[#allocation5 + $0x58] sm:$0xff]  ;;  %v8519_v39 = vld [vmem:[#allocation42_spill] sm:$0xff] }
 0x1f8   :  { %8513 = vst [vmem:[#allocation71_spill] sm:$0xff] %v5352_v23  ;;  %v1028_v16 = vmul.f32 0.5, %v1027_v34  ;;  %v506_v42 = vmul.f32 0.0078125, %v4483_v35  ;;  %v1528_v56 = vmul.f32 %v5367_v31, %v5367_v31  ;;  %v5374_v18 = vadd.f32 %v4213_v37, %v1295_v32  ;;  %1587 = vadd.xlane.f32.xlu1 %v1527_v26  ;;  %v8526_v26 = vld [vmem:[#allocation96_spill] sm:$0xff]  ;;  %v5401_v35 = vpop.xlane.xlu0 %1413  ;;  %vm5444_vm4 = vmor %vm1041_vm12, %vm1042_vm13 }
 0x1f9   :  { %8514 = vst [vmem:[#allocation128_spill] sm:$0xff] %v5357_v1  ;;  %v5371_v1 = vpop.eup %2940  ;;  %v8521_v28 = vsub.f32 %v8519_v39, %v8520_v57  ;;  %v1039_v34 = vsub.f32 1.5, %v1038_v27  ;;  %vm1032_vm15 = vweird.f32 %v5257_v36  ;;  %v1024_v32 = vsel %vm5383_vm14, %v5155_v15, %v1020_v19  ;;  %1585 = vadd.xlane.f32.xlu0 %v1526_v46  ;;  %v5393_v57 = vpop.xlane.xlu1 %1415 }
 0x1fa   :  { %8517 = vst [vmem:[#allocation32_spill] sm:$0xff] %v5367_v31  ;;  %vm1052_vm0 = vweird.f32 %v5281_v51  ;;  %vm1031_vm1 = vweird.f32 %v5168_v38  ;;  %v1068_v17 = vmul.f32 0.5, %v1067_v25  ;;  %v1056_v27 = vmul.f32 %v5362_v24, %v5275_v63  ;;  %v8529_v25 = vld [vmem:[#allocation46_spill] sm:$0xff] }
 0x1fb   :  { %8518 = vst [vmem:[#allocation121_spill] sm:$0xff] %v5374_v18  ;;  %v1243_v7 = vmul.f32 %v1004_v5, %v8521_v28  ;;  %v1048_v18 = vmul.f32 0.5, %v1047_v40  ;;  %v8524_v5 = vld [vmem:[#allocation143_spill] sm:$0xff]  ;;  %v5398_v28 = vadd.f32 1e-05, %v603_v30  ;;  %v604_v31 = vsub.f32 %v504_v43, %v8526_v26  ;;  %1589 = vadd.xlane.f32.xlu2 %v1528_v56  ;;  %vm5465_vm6 = vmor %vm1031_vm1, %vm1032_vm15 }
 0x1fc   :  { %v602_v39 = vsub.f32 %v502_v54, %v8524_v5  ;;  %8525 = vst [vmem:[#allocation137_spill] sm:$0xff] %v5393_v57  ;;  %v1029_v15 = vsub.f32 1.5, %v1028_v16  ;;  %vm1051_vm2 = vweird.f32 %v5179_v13  ;;  %v1076_v40 = vmul.f32 %v5371_v1, %v5292_v58  ;;  %v8528_v54 = vld [vmem:[#allocation146_spill] sm:$0xff]  ;;  %v8530_v5 = vld [vmem:[#allocation79_spill] sm:$0xff]  ;;  %v5414_v16 = vld [vmem:[#allocation5 + $0x68] sm:$0xff] }
 0x1fd   :  { %8527 = vst [vmem:[#allocation135_spill] sm:$0xff] %v5401_v35  ;;  %v606_v19 = vsub.f32 %v506_v42, %v8528_v54  ;;  %v505_v46 = vmul.f32 0.0078125, %v4485_v55  ;;  %v8531_v57 = vsub.f32 %v8529_v25, %v8530_v5  ;;  %v1040_v23 = vmul.f32 %v5227_v33, %v1039_v34  ;;  %v5418_v35 = vpop.xlane.xlu2 %1417  ;;  %v5423_v54 = vld [vmem:[#allocation5 + $0x60] sm:$0xff]  ;;  %vm5483_vm7 = vmor %vm1051_vm2, %vm1052_vm0 }
 0x1fe   :  { %vm1071_vm3 = vweird.f32 %v5183_v20  ;;  %v507_v43 = vmul.f32 0.0078125, %v4489_v48  ;;  %8532 = vst [vmem:[#allocation33_spill] sm:$0xff] %v5414_v16  ;;  %v1530_v26 = vmul.f32 %v5414_v16, %v5414_v16  ;;  %v1049_v42 = vsub.f32 1.5, %v1048_v18  ;;  %v8535_v18 = vld [vmem:[#allocation150_spill] sm:$0xff] }
 0x1ff   :  { %v1245_v30 = vmul.f32 %v1024_v32, %v8531_v57  ;;  %8533 = vst [vmem:[#allocation70_spill] sm:$0xff] %v5418_v35  ;;  %v5420_v55 = vadd.f32 1e-05, %v602_v39  ;;  %v509_v56 = vmul.f32 0.0078125, %v4567_v44  ;;  %v1529_v34 = vmul.f32 %v5423_v54, %v5423_v54  ;;  %v5435_v35 = vld [vmem:[#allocation5 + $0x70] sm:$0xff] }
 0x200   :  { %8534 = vst [vmem:[#allocation148_spill] sm:$0xff] %v5423_v54  ;;  %v1069_v32 = vsub.f32 1.5, %v1068_v17  ;;  %v1057_v48 = vmul.f32 %v5362_v24, %v1056_v27  ;;  %2942 = vrsqrt.f32 %v5398_v28  ;;  %v5429_v57 = vadd.f32 1e-05, %v604_v31  ;;  %v8539_v27 = vld [vmem:[#allocation95_spill] sm:$0xff]  ;;  %1593 = vadd.xlane.f32.xlu1 %v1530_v26  ;;  %v5495_v31 = vpop.xlane.xlu0 %1419 }
 0x201   :  { %v1077_v25 = vmul.f32 %v5371_v1, %v1076_v40  ;;  %v5432_v5 = vadd.f32 1e-05, %v606_v19  ;;  %v605_v39 = vsub.f32 %v505_v46, %v8535_v18  ;;  %8536 = vst [vmem:[#allocation149_spill] sm:$0xff] %v5435_v35  ;;  %v1531_v44 = vmul.f32 %v5435_v35, %v5435_v35  ;;  %1591 = vadd.xlane.f32.xlu0 %v1529_v34  ;;  %v5472_v26 = vpop.xlane.xlu1 %1421 }
 0x202   :  { %v1294_v16 = vmul.f32 %v4202_v8, %v1243_v7  ;;  %v1030_v17 = vmul.f32 %v5257_v36, %v1029_v15  ;;  %vm1072_vm5 = vweird.f32 %v5294_v12  ;;  %v607_v40 = vsub.f32 %v507_v43, %v8539_v27  ;;  %v8540_v7 = vld [vmem:[#allocation151_spill] sm:$0xff]  ;;  %8543 = vst [vmem:[#allocation130_spill] sm:$0xff] %v5472_v26 }
 0x203   :  { %v1044_v19 = vsel %vm5444_vm4, %v5227_v33, %v1040_v23  ;;  %2944 = vrsqrt.f32 %v5420_v55  ;;  %v609_v46 = vsub.f32 %v509_v56, %v8540_v7  ;;  %v508_v45 = vmul.f32 0.0078125, %v4569_v60  ;;  %1595 = vadd.xlane.f32.xlu2 %v1531_v44  ;;  %v8544_v56 = vld [vmem:[#allocation44_spill] sm:$0xff]  ;;  %8550 = vst [vmem:[#allocation37_spill] sm:$0xff] %v5495_v31  ;;  %vm5504_vm9 = vmor %vm1071_vm3, %vm1072_vm5  ;;  %v5511_v7 = vld [vmem:[#allocation5 + $0x78] sm:$0xff] }
 0x204   :  { %v1050_v18 = vmul.f32 %v5281_v51, %v1049_v42  ;;  %v1070_v15 = vmul.f32 %v5294_v12, %v1069_v32  ;;  %v1058_v35 = vmul.f32 0.5, %v1057_v48  ;;  %2946 = vrsqrt.f32 %v5429_v57  ;;  %8554 = vst [vmem:[#allocation73_spill] sm:$0xff] %v5511_v7 }
 0x205   :  { %v1296_v43 = vmul.f32 %v4202_v8, %v1245_v30  ;;  %v1078_v23 = vmul.f32 0.5, %v1077_v25  ;;  %2948 = vrsqrt.f32 %v5432_v5  ;;  %v5470_v60 = vadd.f32 1e-05, %v605_v39  ;;  %v8545_v30 = vld [vmem:[#allocation126_spill] sm:$0xff]  ;;  %v5491_v39 = vld [vmem:[#allocation5 + $0x80] sm:$0xff] }
 0x206   :  { %v5474_v42 = vpop.eup %2942  ;;  %v8546_v34 = vsub.f32 %v8544_v56, %v8545_v30  ;;  %vm1061_vm8 = vweird.f32 %v5275_v63  ;;  %v5488_v48 = vadd.f32 1e-05, %v607_v40  ;;  %v510_v25 = vmul.f32 0.0078125, %v4576_v6  ;;  %8549 = vst [vmem:[#allocation94_spill] sm:$0xff] %v5491_v39  ;;  %v8553_v40 = vld [vmem:[#allocation152_spill] sm:$0xff] }
 0x207   :  { %v1533_v44 = vmul.f32 %v5491_v39, %v5491_v39  ;;  %v1034_v13 = vsel %vm5465_vm6, %v5257_v36, %v1030_v17  ;;  %v5508_v6 = vadd.f32 1e-05, %v609_v46  ;;  %v1532_v56 = vmul.f32 %v5511_v7, %v5511_v7  ;;  %v5522_v46 = vpop.xlane.xlu2 %1423 }
 0x208   :  { %v1247_v32 = vmul.f32 %v1044_v19, %v8546_v34  ;;  %v608_v19 = vsub.f32 %v508_v45, %v8553_v40  ;;  %v1054_v36 = vsel %vm5483_vm7, %v5281_v51, %v1050_v18  ;;  %v1074_v20 = vsel %vm5504_vm9, %v5294_v12, %v1070_v15  ;;  %8555 = vst [vmem:[#allocation35_spill] sm:$0xff] %v5522_v46  ;;  %v5529_v34 = vld [vmem:[#allocation5 + $0x88] sm:$0xff]  ;;  %v8559_v15 = vld [vmem:[#allocation78_spill] sm:$0xff] }
 0x209   :  { %v1059_v17 = vsub.f32 1.5, %v1058_v35  ;;  %vm1081_vm10 = vweird.f32 %v5292_v58  ;;  %v5524_v33 = vpop.eup %2944  ;;  %v1079_v45 = vsub.f32 1.5, %v1078_v23  ;;  %v1096_v30 = vmul.f32 %v5474_v42, %v5398_v28  ;;  %8556 = vst [vmem:[#allocation122_spill] sm:$0xff] %v5529_v34  ;;  %v8558_v35 = vld [vmem:[#allocation45_spill] sm:$0xff]  ;;  %v8561_v23 = vld [vmem:[#allocation156_spill] sm:$0xff]  ;;  %1599 = vadd.xlane.f32.xlu1 %v1533_v44  ;;  %1597 = vadd.xlane.f32.xlu0 %v1532_v56 }
 0x20a   :  { %2950 = vrsqrt.f32 %v5470_v60  ;;  %v1534_v51 = vmul.f32 %v5529_v34, %v5529_v34  ;;  %v5533_v18 = vpop.eup %2946  ;;  %v5536_v12 = vadd.f32 %v4213_v37, %v1294_v16  ;;  %v8560_v38 = vsub.f32 %v8558_v35, %v8559_v15  ;;  %v8564_v35 = vld [vmem:[#allocation81_spill] sm:$0xff]  ;;  %v8567_v34 = vld [vmem:[#allocation131_spill] sm:$0xff]  ;;  %v5618_v58 = vld [vmem:[#allocation5 + $0xa0] sm:$0xff] }
 0x20b   :  { %2952 = vrsqrt.f32 %v5488_v48  ;;  %v610_v40 = vsub.f32 %v510_v25, %v8561_v23  ;;  %v5543_v46 = vpop.eup %2948  ;;  %v5546_v31 = vadd.f32 %v4213_v37, %v1296_v43  ;;  %v1298_v26 = vmul.f32 %v4202_v8, %v1247_v32  ;;  %8578 = vst [vmem:[#allocation40_spill] sm:$0xff] %v5618_v58 }
 0x20c   :  { %8557 = vst [vmem:[#allocation91_spill] sm:$0xff] %v5536_v12  ;;  %v1246_v27 = vmul.f32 %v1034_v13, %v8560_v38  ;;  %2954 = vrsqrt.f32 %v5508_v6  ;;  %v5550_v16 = vadd.f32 1e-05, %v608_v19  ;;  %v8563_v12 = vld [vmem:[#allocation49_spill] sm:$0xff]  ;;  %v8566_v38 = vld [vmem:[#allocation47_spill] sm:$0xff]  ;;  %vm1062_vm11 = vweird.f32 %v5362_v24  ;;  %1601 = vadd.xlane.f32.xlu2 %v1534_v51 }
 0x20d   :  { %8562 = vst [vmem:[#allocation132_spill] sm:$0xff] %v5546_v31  ;;  %v8565_v13 = vsub.f32 %v8563_v12, %v8564_v35  ;;  %v8568_v25 = vsub.f32 %v8566_v38, %v8567_v34  ;;  %vm1082_vm12 = vweird.f32 %v5371_v1  ;;  %v1060_v43 = vmul.f32 %v5362_v24, %v1059_v17  ;;  %v5571_v12 = vld [vmem:[#allocation5 + $0x98] sm:$0xff]  ;;  %vm5580_vm13 = vmor %vm1061_vm8, %vm1062_vm11 }
 0x20e   :  { %v1080_v32 = vmul.f32 %v5371_v1, %v1079_v45  ;;  %v1097_v19 = vmul.f32 %v5474_v42, %v1096_v30  ;;  %v1086_v56 = vmul.f32 %v5524_v33, %v5420_v55  ;;  %v5569_v34 = vadd.f32 1e-05, %v610_v40  ;;  %8569 = vst [vmem:[#allocation140_spill] sm:$0xff] %v5571_v12  ;;  %v5586_v40 = vld [vmem:[#allocation5 + $0x90] sm:$0xff]  ;;  %vm5603_vm14 = vmor %vm1081_vm10, %vm1082_vm12 }
 0x20f   :  { %v1248_v15 = vmul.f32 %v1054_v36, %v8565_v13  ;;  %v1250_v44 = vmul.f32 %v1074_v20, %v8568_v25  ;;  %v1106_v36 = vmul.f32 %v5533_v18, %v5429_v57  ;;  %v1126_v20 = vmul.f32 %v5543_v46, %v5432_v5  ;;  %8572 = vst [vmem:[#allocation36_spill] sm:$0xff] %v5586_v40  ;;  %v5590_v13 = vpop.xlane.xlu1 %1427 }
 0x210   :  { %v1536_v17 = vmul.f32 %v5571_v12, %v5571_v12  ;;  %v5575_v45 = vpop.eup %2950  ;;  %v1297_v30 = vmul.f32 %v4202_v8, %v1246_v27  ;;  %2956 = vrsqrt.f32 %v5550_v16  ;;  %v512_v23 = vmul.f32 0.0078125, %v4673_v50  ;;  %8573 = vst [vmem:[#allocation72_spill] sm:$0xff] %v5590_v13  ;;  %v5608_v13 = vpop.xlane.xlu0 %1425 }
 0x211   :  { %v1535_v35 = vmul.f32 %v5586_v40, %v5586_v40  ;;  %v5592_v38 = vpop.eup %2952  ;;  %v5595_v27 = vadd.f32 %v4213_v37, %v1298_v26  ;;  %v1299_v63 = vmul.f32 %v4202_v8, %v1248_v15  ;;  %v1301_v25 = vmul.f32 %v4202_v8, %v1250_v44  ;;  %8577 = vst [vmem:[#allocation153_spill] sm:$0xff] %v5608_v13 }
 0x212   :  { %v511_v31 = vmul.f32 0.0078125, %v4675_v21  ;;  %v5610_v12 = vpop.eup %2954  ;;  %v1064_v26 = vsel %vm5580_vm13, %v5362_v24, %v1060_v43  ;;  %v1084_v15 = vsel %vm5603_vm14, %v5371_v1, %v1080_v32  ;;  %v1098_v44 = vmul.f32 0.5, %v1097_v19  ;;  %1605 = vadd.xlane.f32.xlu1 %v1536_v17  ;;  %v5626_v24 = vpop.xlane.xlu2 %1429  ;;  %v8581_v32 = vld [vmem:[#allocation154_spill] sm:$0xff]  ;;  %v8583_v17 = vld [vmem:[#allocation155_spill] sm:$0xff] }
 0x213   :  { %8574 = vst [vmem:[#allocation138_spill] sm:$0xff] %v5595_v27  ;;  %v1537_v27 = vmul.f32 %v5618_v58, %v5618_v58  ;;  %v1087_v21 = vmul.f32 %v5524_v33, %v1086_v56  ;;  %v1107_v13 = vmul.f32 %v5533_v18, %v1106_v36  ;;  %v1127_v40 = vmul.f32 %v5543_v46, %v1126_v20 }
 0x214   :  { %2958 = vrsqrt.f32 %v5569_v34  ;;  %8579 = vst [vmem:[#allocation75_spill] sm:$0xff] %v5626_v24  ;;  %v5629_v43 = vadd.f32 %v4213_v37, %v1297_v30  ;;  %vm1101_vm15 = vweird.f32 %v5398_v28  ;;  %v1116_v1 = vmul.f32 %v5575_v45, %v5470_v60  ;;  %1603 = vadd.xlane.f32.xlu0 %v1535_v35  ;;  %v8586_v24 = vld [vmem:[#allocation80_spill] sm:$0xff] }
 0x215   :  { %v612_v19 = vsub.f32 %v512_v23, %v8581_v32  ;;  %v5636_v56 = vadd.f32 %v4213_v37, %v1299_v63  ;;  %v1136_v36 = vmul.f32 %v5592_v38, %v5488_v48  ;;  %v1156_v20 = vmul.f32 %v5610_v12, %v5508_v6  ;;  %v8588_v32 = vld [vmem:[#allocation52_spill] sm:$0xff]  ;;  %v8589_v63 = vld [vmem:[#allocation83_spill] sm:$0xff]  ;;  %1607 = vadd.xlane.f32.xlu2 %v1537_v27 }
 0x216   :  { %8580 = vst [vmem:[#allocation99_spill] sm:$0xff] %v5629_v43  ;;  %v611_v30 = vsub.f32 %v511_v31, %v8583_v17  ;;  %v5643_v51 = vpop.eup %2956  ;;  %v5646_v50 = vadd.f32 %v4213_v37, %v1301_v25  ;;  %v8585_v43 = vld [vmem:[#allocation48_spill] sm:$0xff]  ;;  %v1099_v39 = vsub.f32 1.5, %v1098_v44  ;;  %v1088_v7 = vmul.f32 0.5, %v1087_v21 }
 0x217   :  { %8582 = vst [vmem:[#allocation38_spill] sm:$0xff] %v5636_v56  ;;  %v8587_v23 = vsub.f32 %v8585_v43, %v8586_v24  ;;  %v8590_v56 = vsub.f32 %v8588_v32, %v8589_v63  ;;  %v1108_v54 = vmul.f32 0.5, %v1107_v13  ;;  %v1128_v41 = vmul.f32 0.5, %v1127_v40  ;;  %v5663_v24 = vld [vmem:[#allocation5 + $0xa8] sm:$0xff] }
 0x218   :  { %8584 = vst [vmem:[#allocation123_spill] sm:$0xff] %v5646_v50  ;;  %v1539_v31 = vmul.f32 %v5654_v29, %v5654_v29  ;;  %vm1102_vm0 = vweird.f32 %v5474_v42  ;;  %vm1091_vm1 = vweird.f32 %v5420_v55  ;;  %v1117_v25 = vmul.f32 %v5575_v45, %v1116_v1  ;;  %v8622_v55 = vld [vmem:[#allocation53_spill] sm:$0xff] }
 0x219   :  { %v1249_v35 = vmul.f32 %v1064_v26, %v8587_v23  ;;  %v1251_v58 = vmul.f32 %v1084_v15, %v8590_v56  ;;  %v5661_v26 = vadd.f32 1e-05, %v612_v19  ;;  %8592 = vst [vmem:[#allocation144_spill] sm:$0xff] %v5663_v24  ;;  %v1538_v27 = vmul.f32 %v5663_v24, %v5663_v24  ;;  %v5684_v56 = vld [vmem:[#allocation5 + $0xb8] sm:$0xff]  ;;  %vm5701_vm5 = vmor %vm1101_vm15, %vm1102_vm0 }
 0x21a   :  { %v5667_v13 = vpop.eup %2958  ;;  %vm1111_vm2 = vweird.f32 %v5429_v57  ;;  %v1137_v40 = vmul.f32 %v5592_v38, %v1136_v36  ;;  %v1157_v15 = vmul.f32 %v5610_v12, %v1156_v20  ;;  %v1146_v44 = vmul.f32 %v5643_v51, %v5550_v16  ;;  %8593 = vst [vmem:[#allocation39_spill] sm:$0xff] %v5684_v56  ;;  %v5688_v20 = vpop.xlane.xlu1 %1433  ;;  %1611 = vadd.xlane.f32.xlu1 %v1539_v31 }
 0x21b   :  { %v5674_v21 = vadd.f32 1e-05, %v611_v30  ;;  %v5677_v43 = vmul.f32 %v4202_v8, %v1249_v35  ;;  %v5680_v1 = vmul.f32 %v4202_v8, %v1251_v58  ;;  %v1100_v19 = vmul.f32 %v5474_v42, %v1099_v39  ;;  %8594 = vst [vmem:[#allocation74_spill] sm:$0xff] %v5688_v20  ;;  %v5691_v35 = vpop.xlane.xlu0 %1431  ;;  %v5707_v31 = vpop.xlane.xlu2 %1435 }
 0x21c   :  { %vm1131_vm3 = vweird.f32 %v5432_v5  ;;  %v1540_v36 = vmul.f32 %v5684_v56, %v5684_v56  ;;  %v1089_v17 = vsub.f32 1.5, %v1088_v7  ;;  %vm1092_vm4 = vweird.f32 %v5524_v33  ;;  %8595 = vst [vmem:[#allocation43_spill] sm:$0xff] %v5691_v35  ;;  %1609 = vadd.xlane.f32.xlu0 %v1538_v27 }
 0x21d   :  { %v1109_v30 = vsub.f32 1.5, %v1108_v54  ;;  %v1129_v23 = vsub.f32 1.5, %v1128_v41  ;;  %v1118_v58 = vmul.f32 0.5, %v1117_v25  ;;  %v1166_v39 = vmul.f32 %v5667_v13, %v5569_v34  ;;  %8598 = vst [vmem:[#allocation77_spill] sm:$0xff] %v5707_v31  ;;  %v5724_v31 = vld [vmem:[#allocation5 + $0xc0] sm:$0xff]  ;;  %vm5732_vm8 = vmor %vm1091_vm1, %vm1092_vm4 }
 0x21e   :  { %2960 = vrsqrt.f32 %v5661_v26  ;;  %v514_v32 = vmul.f32 0.0078125, %v4761_v22  ;;  %v1138_v41 = vmul.f32 0.5, %v1137_v40  ;;  %v1158_v54 = vmul.f32 0.5, %v1157_v15  ;;  %1613 = vadd.xlane.f32.xlu2 %v1540_v36  ;;  %v5718_v15 = vld [vmem:[#allocation5 + $0xc8] sm:$0xff]  ;;  %8601 = vst [vmem:[#allocation124_spill] sm:$0xff] %v5724_v31 }
 0x21f   :  { %v1147_v63 = vmul.f32 %v5643_v51, %v1146_v44  ;;  %2962 = vrsqrt.f32 %v5674_v21  ;;  %v1104_v22 = vsel %vm5701_vm5, %v5474_v42, %v1100_v19  ;;  %vm1112_vm6 = vweird.f32 %v5533_v18  ;;  %8599 = vst [vmem:[#allocation41_spill] sm:$0xff] %v5718_v15  ;;  %v8600_v19 = vld [vmem:[#allocation110_spill] sm:$0xff] }
 0x220   :  { %vm1132_vm7 = vweird.f32 %v5543_v46  ;;  %v513_v28 = vmul.f32 0.0078125, %v4693_v3  ;;  %v1090_v25 = vmul.f32 %v5524_v33, %v1089_v17  ;;  %v1110_v27 = vmul.f32 %v5533_v18, %v1109_v30  ;;  %vm5746_vm10 = vmor %vm1111_vm2, %vm1112_vm6 }
 0x221   :  { %v1130_v40 = vmul.f32 %v5543_v46, %v1129_v23  ;;  %v1542_v44 = vmul.f32 %v5718_v15, %v5718_v15  ;;  %v1119_v7 = vsub.f32 1.5, %v1118_v58  ;;  %v1167_v42 = vmul.f32 %v5667_v13, %v1166_v39  ;;  %v8604_v39 = vld [vmem:[#allocation50_spill] sm:$0xff]  ;;  %v8609_v15 = vld [vmem:[#allocation109_spill] sm:$0xff]  ;;  %vm5768_vm12 = vmor %vm1131_vm3, %vm1132_vm7 }
 0x222   :  { %v614_v50 = vsub.f32 %v514_v32, %v8600_v19  ;;  %v1541_v3 = vmul.f32 %v5724_v31, %v5724_v31  ;;  %vm1121_vm9 = vweird.f32 %v5470_v60  ;;  %v1139_v17 = vsub.f32 1.5, %v1138_v41  ;;  %v8605_v32 = vld [vmem:[#allocation136_spill] sm:$0xff]  ;;  %v5780_v5 = vpop.xlane.xlu1 %1439  ;;  %v8619_v60 = vld [vmem:[#allocation55_spill] sm:$0xff] }
 0x223   :  { %v1159_v30 = vsub.f32 1.5, %v1158_v54  ;;  %v1148_v23 = vmul.f32 0.5, %v1147_v63  ;;  %v8606_v19 = vsub.f32 %v8604_v39, %v8605_v32  ;;  %vm1141_vm11 = vweird.f32 %v5488_v48  ;;  %v5752_v54 = vld [vmem:[#allocation5 + $0xd0] sm:$0xff]  ;;  %1617 = vadd.xlane.f32.xlu1 %v1542_v44  ;;  %v5785_v44 = vpop.xlane.xlu0 %1437 }
 0x224   :  { %v5737_v58 = vpop.eup %2960  ;;  %v613_v41 = vsub.f32 %v513_v28, %v8609_v15  ;;  %v1543_v63 = vmul.f32 %v5752_v54, %v5752_v54  ;;  %v1114_v57 = vsel %vm5746_vm10, %v5533_v18, %v1110_v27  ;;  %vm1122_vm13 = vweird.f32 %v5575_v45  ;;  %1615 = vadd.xlane.f32.xlu0 %v1541_v3  ;;  %8612 = vst [vmem:[#allocation93_spill] sm:$0xff] %v5785_v44  ;;  %v8617_v3 = vld [vmem:[#allocation82_spill] sm:$0xff] }
 0x225   :  { %v1253_v35 = vmul.f32 %v1104_v22, %v8606_v19  ;;  %v5756_v20 = vpop.eup %2962  ;;  %v1094_v22 = vsel %vm5732_vm8, %v5524_v33, %v1090_v25  ;;  %vm1142_vm14 = vweird.f32 %v5592_v38  ;;  %v1134_v33 = vsel %vm5768_vm12, %v5543_v46, %v1130_v40  ;;  %vm5789_vm0 = vmor %vm1121_vm9, %vm1122_vm13  ;;  %v8623_v28 = vld [vmem:[#allocation142_spill] sm:$0xff] }
 0x226   :  { %v1120_v25 = vmul.f32 %v5575_v45, %v1119_v7  ;;  %v1168_v18 = vmul.f32 0.5, %v1167_v42  ;;  %v5778_v27 = vadd.f32 1e-05, %v614_v50  ;;  %v1140_v15 = vmul.f32 %v5592_v38, %v1139_v17  ;;  %1619 = vadd.xlane.f32.xlu2 %v1543_v63  ;;  %v8616_v42 = vld [vmem:[#allocation51_spill] sm:$0xff]  ;;  %vm5813_vm2 = vmor %vm1141_vm11, %vm1142_vm14  ;;  %v5817_v63 = vld [vmem:[#allocation5 + $0xe0] sm:$0xff] }
 0x227   :  { %v1160_v36 = vmul.f32 %v5610_v12, %v1159_v30  ;;  %vm1162_vm15 = vweird.f32 %v5610_v12  ;;  %v1149_v39 = vsub.f32 1.5, %v1148_v23  ;;  %vm1161_vm1 = vweird.f32 %v5508_v6  ;;  %v8620_v23 = vld [vmem:[#allocation85_spill] sm:$0xff]  ;;  %8627 = vst [vmem:[#allocation141_spill] sm:$0xff] %v5817_v63 }
 0x228   :  { %v1186_v50 = vmul.f32 %v5737_v58, %v5661_v26  ;;  %v1176_v40 = vmul.f32 %v5756_v20, %v5674_v21  ;;  %v5798_v7 = vadd.f32 1e-05, %v613_v41  ;;  %v8618_v17 = vsub.f32 %v8616_v42, %v8617_v3  ;;  %v5821_v42 = vpop.xlane.xlu2 %1441  ;;  %vm5828_vm3 = vmor %vm1161_vm1, %vm1162_vm15  ;;  %v5833_v3 = vld [vmem:[#allocation5 + $0xd8] sm:$0xff]  ;;  %v8780_v29 = vld [vmem:[#allocation41_spill] sm:$0xff] }
 0x229   :  { %v8621_v32 = vsub.f32 %v8619_v60, %v8620_v23  ;;  %v8624_v6 = vsub.f32 %v8622_v55, %v8623_v28  ;;  %v1169_v48 = vsub.f32 1.5, %v1168_v18  ;;  %2964 = vrsqrt.f32 %v5778_v27  ;;  %8630 = vst [vmem:[#allocation16_spill] sm:$0xff] %v5833_v3  ;;  %v5848_v23 = vld [vmem:[#allocation5 + $0xe8] sm:$0xff]  ;;  %v8638_v28 = vld [vmem:[#allocation88_spill] sm:$0xff] }
 0x22a   :  { %8615 = vst [vmem:[#allocation98_spill] sm:$0xff] %v5798_v7  ;;  %v1252_v30 = vmul.f32 %v1094_v22, %v8618_v17  ;;  %v1545_v22 = vmul.f32 %v5817_v63, %v5817_v63  ;;  %v1544_v17 = vmul.f32 %v5833_v3, %v5833_v3  ;;  %v1144_v60 = vsel %vm5813_vm2, %v5592_v38, %v1140_v15  ;;  %v8633_v15 = vld [vmem:[#allocation54_spill] sm:$0xff] }
 0x22b   :  { %v1254_v19 = vmul.f32 %v1114_v57, %v8621_v32  ;;  %v1256_v44 = vmul.f32 %v1134_v33, %v8624_v6  ;;  %v1124_v57 = vsel %vm5789_vm0, %v5575_v45, %v1120_v25  ;;  %v1164_v45 = vsel %vm5828_vm3, %v5610_v12, %v1160_v36  ;;  %8631 = vst [vmem:[#allocation42_spill] sm:$0xff] %v5848_v23  ;;  %v8634_v36 = vld [vmem:[#allocation84_spill] sm:$0xff] }
 0x22c   :  { %v1150_v25 = vmul.f32 %v5643_v51, %v1149_v39  ;;  %vm1152_vm4 = vweird.f32 %v5643_v51  ;;  %v1187_v18 = vmul.f32 %v5737_v58, %v1186_v50  ;;  %v1177_v46 = vmul.f32 %v5756_v20, %v1176_v40  ;;  %1623 = vadd.xlane.f32.xlu1 %v1545_v22  ;;  %v8637_v40 = vld [vmem:[#allocation58_spill] sm:$0xff]  ;;  %1621 = vadd.xlane.f32.xlu0 %v1544_v17 }
 0x22d   :  { %2966 = vrsqrt.f32 %v5798_v7  ;;  %v1546_v32 = vmul.f32 %v5848_v23, %v5848_v23  ;;  %v5854_v38 = vadd.f32 %v4213_v37, %v5677_v43  ;;  %v1304_v12 = vmul.f32 %v4202_v8, %v1253_v35  ;;  %v3114_v23 = vld [vmem:[#allocation5 + $0x170] sm:$0xff] }
 0x22e   :  { %v8635_v39 = vsub.f32 %v8633_v15, %v8634_v36  ;;  %vm1151_vm5 = vweird.f32 %v5550_v16  ;;  %v5863_v50 = vadd.f32 %v4213_v37, %v5680_v1  ;;  %v8639_v6 = vsub.f32 %v8637_v40, %v8638_v28  ;;  %v8643_v1 = vld [vmem:[#allocation86_spill] sm:$0xff] }
 0x22f   :  { %8632 = vst [vmem:[#allocation76_spill] sm:$0xff] %v5854_v38  ;;  %vm5868_vm6 = vmor %vm1151_vm5, %vm1152_vm4  ;;  %v1170_v35 = vmul.f32 %v5667_v13, %v1169_v48  ;;  %vm1172_vm7 = vweird.f32 %v5667_v13  ;;  %v1303_v16 = vmul.f32 %v4202_v8, %v1252_v30  ;;  %v1305_v22 = vmul.f32 %v4202_v8, %v1254_v19  ;;  %v5882_v36 = vpop.eup %2964  ;;  %1625 = vadd.xlane.f32.xlu2 %v1546_v32  ;;  %v5886_v30 = vpop.xlane.xlu1 %1445 }
 0x230   :  { %v1255_v55 = vmul.f32 %v1124_v57, %v8635_v39  ;;  %8636 = vst [vmem:[#allocation143_spill] sm:$0xff] %v5863_v50  ;;  %v1257_v41 = vmul.f32 %v1144_v60, %v8639_v6  ;;  %v8642_v57 = vld [vmem:[#allocation56_spill] sm:$0xff]  ;;  %v1154_v60 = vsel %vm5868_vm6, %v5643_v51, %v1150_v25  ;;  %v1307_v39 = vmul.f32 %v4202_v8, %v1256_v44  ;;  %v5916_v6 = vld [vmem:[#allocation5 + $0xf0] sm:$0xff] }
 0x231   :  { %v8644_v33 = vsub.f32 %v8642_v57, %v8643_v1  ;;  %8645 = vst [vmem:[#allocation96_spill] sm:$0xff] %v5882_v36  ;;  %vm1171_vm8 = vweird.f32 %v5569_v34  ;;  %v1188_v48 = vmul.f32 0.5, %v1187_v18  ;;  %v1178_v17 = vmul.f32 0.5, %v1177_v46  ;;  %v5901_v34 = vld [vmem:[#allocation5 + $0xf8] sm:$0xff]  ;;  %v5905_v18 = vpop.xlane.xlu0 %1443 }
 0x232   :  { %v5889_v19 = vadd.f32 %v4213_v37, %v1304_v12  ;;  %vm5894_vm9 = vmor %vm1171_vm8, %vm1172_vm7  ;;  %v5899_v44 = vmul.f32 0.0078125, %v4759_v47  ;;  %8649 = vst [vmem:[#allocation46_spill] sm:$0xff] %v5901_v34  ;;  %v1548_v25 = vmul.f32 %v5901_v34, %v5901_v34  ;;  %v1308_v32 = vmul.f32 %v4202_v8, %v1257_v41  ;;  %v8651_v12 = vld [vmem:[#allocation57_spill] sm:$0xff] }
 0x233   :  { %v1259_v15 = vmul.f32 %v1164_v45, %v8644_v33  ;;  %v1306_v45 = vmul.f32 %v4202_v8, %v1255_v55  ;;  %v5907_v46 = vpop.eup %2966  ;;  %v8652_v55 = vld [vmem:[#allocation87_spill] sm:$0xff]  ;;  %v1174_v47 = vsel %vm5894_vm9, %v5667_v13, %v1170_v35  ;;  %8654 = vst [vmem:[#allocation150_spill] sm:$0xff] %v5916_v6  ;;  %v1547_v43 = vmul.f32 %v5916_v6, %v5916_v6 }
 0x234   :  { %8646 = vst [vmem:[#allocation146_spill] sm:$0xff] %v5889_v19  ;;  %v8653_v40 = vsub.f32 %v8651_v12, %v8652_v55  ;;  %v5921_v57 = vadd.f32 %v4213_v37, %v1303_v16  ;;  %v5924_v1 = vadd.f32 %v4213_v37, %v1305_v22  ;;  %v1206_v33 = vmul.f32 %v5882_v36, %v5778_v27  ;;  %v5934_v12 = vld [vmem:[#allocation5 + $0x100] sm:$0xff]  ;;  %v8659_v55 = vld [vmem:[#allocation61_spill] sm:$0xff] }
 0x235   :  { %8650 = vst [vmem:[#allocation79_spill] sm:$0xff] %v5907_v46  ;;  %v1310_v41 = vmul.f32 %v4202_v8, %v1259_v15  ;;  %v5932_v13 = vadd.f32 %v4213_v37, %v1307_v39  ;;  %v1189_v35 = vsub.f32 1.5, %v1188_v48  ;;  %v1179_v51 = vsub.f32 1.5, %v1178_v17  ;;  %v8660_v15 = vld [vmem:[#allocation97_spill] sm:$0xff]  ;;  %1629 = vadd.xlane.f32.xlu1 %v1548_v25  ;;  %1627 = vadd.xlane.f32.xlu0 %v1547_v43 }
 0x236   :  { %v1258_v28 = vmul.f32 %v1154_v60, %v8653_v40  ;;  %8655 = vst [vmem:[#allocation95_spill] sm:$0xff] %v5921_v57  ;;  %v5929_v60 = vpop.xlane.xlu2 %1447  ;;  %v1549_v16 = vmul.f32 %v5934_v12, %v5934_v12  ;;  %v5939_v22 = vadd.f32 %v4213_v37, %v1306_v45  ;;  %v8661_v40 = vsub.f32 %v8659_v55, %v8660_v15 }
 0x237   :  { %8656 = vst [vmem:[#allocation151_spill] sm:$0xff] %v5924_v1  ;;  %vm1191_vm10 = vweird.f32 %v5661_v26  ;;  %v1196_v39 = vmul.f32 %v5907_v46, %v5798_v7  ;;  %v5948_v48 = vadd.f32 %v4213_v37, %v1308_v32  ;;  %vm1192_vm11 = vweird.f32 %v5737_v58  ;;  %v6025_v7 = vld [vmem:[#allocation5 + $0x118] sm:$0xff] }
 0x238   :  { %8657 = vst [vmem:[#allocation44_spill] sm:$0xff] %v5932_v13  ;;  %v1260_v1 = vmul.f32 %v1174_v47, %v8661_v40  ;;  %v1309_v17 = vmul.f32 %v4202_v8, %v1258_v28  ;;  %v5953_v13 = vmul.f32 %v5899_v44, %v5899_v44  ;;  %v5958_v47 = vadd.f32 %v4213_v37, %v1310_v41  ;;  %vm5983_vm14 = vmor %vm1191_vm10, %vm1192_vm11 }
 0x239   :  { %8658 = vst [vmem:[#allocation126_spill] sm:$0xff] %v5939_v22  ;;  %v1207_v25 = vmul.f32 %v5882_v36, %v1206_v33  ;;  %v5963_v32 = vmul.f32 0.0078125, %v4767_v53  ;;  %v1190_v28 = vmul.f32 %v5737_v58, %v1189_v35  ;;  %v1180_v55 = vmul.f32 %v5756_v20, %v1179_v51  ;;  %1631 = vadd.xlane.f32.xlu2 %v1549_v16  ;;  %v5974_v33 = vld [vmem:[#allocation5 + $0x110] sm:$0xff]  ;;  %v5993_v16 = vld [vmem:[#allocation5 + $0x108] sm:$0xff] }
 0x23a   :  { %8662 = vst [vmem:[#allocation152_spill] sm:$0xff] %v5948_v48  ;;  %vm1181_vm12 = vweird.f32 %v5674_v21  ;;  %vm1182_vm13 = vweird.f32 %v5756_v20  ;;  %v1311_v43 = vmul.f32 %v4202_v8, %v1260_v1  ;;  %v1197_v41 = vmul.f32 %v5907_v46, %v1196_v39  ;;  %v5997_v39 = vpop.xlane.xlu1 %1451 }
 0x23b   :  { %8663 = vst [vmem:[#allocation45_spill] sm:$0xff] %v5958_v47  ;;  %v5972_v15 = vmul.f32 0.0078125, %v4811_v49  ;;  %v1551_v53 = vmul.f32 %v5974_v33, %v5974_v33  ;;  %v5979_v35 = vadd.f32 %v4213_v37, %v1309_v17  ;;  %v5988_v1 = vmul.f32 0.0078125, %v4813_v11  ;;  %vm6001_vm15 = vmor %vm1181_vm12, %vm1182_vm13  ;;  %v6014_v47 = vpop.xlane.xlu0 %1449 }
 0x23c   :  { %v5991_v49 = vmul.f32 0.0078125, %v4830_v2  ;;  %8668 = vst [vmem:[#allocation49_spill] sm:$0xff] %v5993_v16  ;;  %v1550_v40 = vmul.f32 %v5993_v16, %v5993_v16  ;;  %v1208_v17 = vmul.f32 0.5, %v1207_v25  ;;  %v6007_v11 = vmul.f32 %v5963_v32, %v5963_v32 }
 0x23d   :  { %8664 = vst [vmem:[#allocation78_spill] sm:$0xff] %v5972_v15  ;;  %v6012_v45 = vmul.f32 0.0078125, %v4907_v61  ;;  %v1194_v21 = vsel %vm5983_vm14, %v5737_v58, %v1190_v28  ;;  %v1184_v25 = vsel %vm6001_vm15, %v5756_v20, %v1180_v55  ;;  %v6023_v48 = vmul.f32 0.0078125, %v4909_v9  ;;  %1635 = vadd.xlane.f32.xlu1 %v1551_v53  ;;  %v8677_v58 = vld [vmem:[#allocation60_spill] sm:$0xff] }
 0x23e   :  { %8665 = vst [vmem:[#allocation156_spill] sm:$0xff] %v5979_v35  ;;  %v1552_v2 = vmul.f32 %v6025_v7, %v6025_v7  ;;  %v6030_v61 = vadd.f32 %v4213_v37, %v1311_v43  ;;  %v1198_v35 = vmul.f32 0.5, %v1197_v41  ;;  %v6034_v51 = vmul.f32 %v5972_v15, %v5972_v15  ;;  %v6038_v20 = vpop.xlane.xlu2 %1453  ;;  %1633 = vadd.xlane.f32.xlu0 %v1550_v40  ;;  %v8674_v43 = vld [vmem:[#allocation59_spill] sm:$0xff]  ;;  %v8675_v41 = vld [vmem:[#allocation89_spill] sm:$0xff]  ;;  %v8695_v15 = vld [vmem:[#allocation64_spill] sm:$0xff] }
 0x23f   :  { %8671 = vst [vmem:[#allocation81_spill] sm:$0xff] %v6012_v45  ;;  %vm1211_vm0 = vweird.f32 %v5778_v27  ;;  %v6043_v9 = vmul.f32 %v5988_v1, %v5988_v1  ;;  %v6049_v55 = vmul.f32 %v5991_v49, %v5991_v49  ;;  %v8676_v26 = vsub.f32 %v8674_v43, %v8675_v41  ;;  %v8685_v41 = vld [vmem:[#allocation115_spill] sm:$0xff] }
 0x240   :  { %8672 = vst [vmem:[#allocation47_spill] sm:$0xff] %v6023_v48  ;;  %v1209_v50 = vsub.f32 1.5, %v1208_v17  ;;  %v6058_v57 = vmul.f32 0.0078125, %v4915_v10  ;;  %v6064_v38 = vmul.f32 %v6012_v45, %v6012_v45  ;;  %vm1212_vm1 = vweird.f32 %v5882_v36  ;;  %v8687_v40 = vld [vmem:[#allocation63_spill] sm:$0xff] }
 0x241   :  { %8673 = vst [vmem:[#allocation131_spill] sm:$0xff] %v6030_v61  ;;  %v1262_v53 = vmul.f32 %v1194_v21, %v8676_v26  ;;  %v8678_v61 = vld [vmem:[#allocation90_spill] sm:$0xff]  ;;  %v6070_v21 = vmul.f32 %v6023_v48, %v6023_v48  ;;  %1637 = vadd.xlane.f32.xlu2 %v1552_v2  ;;  %v6083_v26 = vmul.f32 0.0078125, %v8685_v41  ;;  %v6086_v28 = vmul.f32 0.0078125, %v8687_v40  ;;  %v8693_v48 = vld [vmem:[#allocation23_spill] sm:$0xff]  ;;  %vm6135_vm2 = vmor %vm1211_vm0, %vm1212_vm1 }
 0x242   :  { %v8679_v22 = vsub.f32 %v8677_v58, %v8678_v61  ;;  %8680 = vst [vmem:[#allocation154_spill] sm:$0xff] %v6058_v57  ;;  %v6077_v58 = vld [vmem:[#allocation5 + $0x128] sm:$0xff]  ;;  %v6097_v45 = vmul.f32 %v5882_v36, %v1209_v50  ;;  %v6101_v41 = vmul.f32 %v6058_v57, %v6058_v57  ;;  %v6106_v17 = vmul.f32 0.0078125, %v8693_v48  ;;  %v6115_v50 = vpop.xlane.xlu1 %1457  ;;  %v8702_v57 = vld [vmem:[#allocation111_spill] sm:$0xff] }
 0x243   :  { %8684 = vst [vmem:[#allocation48_spill] sm:$0xff] %v6077_v58  ;;  %v1554_v43 = vmul.f32 %v6077_v58, %v6077_v58  ;;  %v6109_v62 = vmul.f32 0.0078125, %v8695_v15  ;;  %v6127_v15 = vmul.f32 0.0078125, %v8702_v57  ;;  %v6129_v40 = vpop.xlane.xlu0 %1455  ;;  %v6147_v57 = vmul.f32 %v6086_v28, %v6086_v28 }
 0x244   :  { %v1261_v19 = vmul.f32 %v1184_v25, %v8679_v22  ;;  %v1199_v22 = vsub.f32 1.5, %v1198_v35  ;;  %v8682_v25 = vld [vmem:[#allocation21_spill] sm:$0xff]  ;;  %8686 = vst [vmem:[#allocation80_spill] sm:$0xff] %v6083_v26  ;;  %v6088_v35 = vld [vmem:[#allocation5 + $0x120] sm:$0xff]  ;;  %v6382_v6 = vmul.f32 0.0078125, %v5780_v5  ;;  %v6402_v16 = vmul.f32 0.0078125, %v5886_v30 }
 0x245   :  { %v6075_v61 = vmul.f32 0.0078125, %v8682_v25  ;;  %8688 = vst [vmem:[#allocation52_spill] sm:$0xff] %v6086_v28  ;;  %v1553_v2 = vmul.f32 %v6088_v35, %v6088_v35  ;;  %v6093_v25 = vmul.f32 %v4202_v8, %v1262_v53  ;;  %v6111_v53 = vld [vmem:[#allocation5 + $0x130] sm:$0xff]  ;;  %1641 = vadd.xlane.f32.xlu1 %v1554_v43  ;;  %v6200_v28 = vld [vmem:[#allocation5 + $0x138] sm:$0xff]  ;;  %v8749_v43 = vld [vmem:[#allocation137_spill] sm:$0xff] }
 0x246   :  { %8689 = vst [vmem:[#allocation83_spill] sm:$0xff] %v6088_v35  ;;  %v1312_v10 = vmul.f32 %v4202_v8, %v1261_v19  ;;  %v1555_v19 = vmul.f32 %v6111_v53, %v6111_v53  ;;  %v6164_v59 = vpop.xlane.xlu2 %1459 }
 0x247   :  { %8683 = vst [vmem:[#allocation155_spill] sm:$0xff] %v6075_v61  ;;  %v6122_v8 = vmul.f32 %v6075_v61, %v6075_v61  ;;  %1639 = vadd.xlane.f32.xlu0 %v1553_v2  ;;  %v8712_v61 = vld [vmem:[#allocation116_spill] sm:$0xff] }
 0x248   :  { %8690 = vst [vmem:[#allocation110_spill] sm:$0xff] %v6093_v25  ;;  %v6118_v25 = vmul.f32 %v5907_v46, %v1199_v22  ;;  %v8705_v22 = vmov 0  ;;  %v6152_v27 = vadd.f32 %v4213_v37, %v1312_v10  ;;  %v6159_v48 = vmul.f32 0.0078125, %v8712_v61  ;;  %v8714_v46 = vld [vmem:[#allocation118_spill] sm:$0xff] }
 0x249   :  { %8691 = vst [vmem:[#allocation50_spill] sm:$0xff] %v6097_v45  ;;  %v8706_v22 = vsel %vm6135_vm2, 4294967295, %v8705_v22  ;;  %v6174_v37 = vmul.f32 %v6109_v62, %v6109_v62  ;;  %1643 = vadd.xlane.f32.xlu2 %v1555_v19  ;;  %v8722_v45 = vld [vmem:[#allocation119_spill] sm:$0xff]  ;;  %v8728_v61 = vld [vmem:[#allocation26_spill] sm:$0xff] }
 0x24a   :  { %8694 = vst [vmem:[#allocation136_spill] sm:$0xff] %v6106_v17  ;;  %v6183_v36 = vmul.f32 0.0078125, %v8722_v45  ;;  %v6195_v19 = vmul.f32 0.0078125, %v8728_v61  ;;  %v1556_v45 = vmul.f32 %v6200_v28, %v6200_v28  ;;  %v8736_v61 = vld [vmem:[#allocation29_spill] sm:$0xff] }
 0x24b   :  { %8696 = vst [vmem:[#allocation109_spill] sm:$0xff] %v6109_v62  ;;  %v8730_v62 = vld [vmem:[#allocation27_spill] sm:$0xff] }
 0x24c   :  { %8697 = vst [vmem:[#allocation51_spill] sm:$0xff] %v6111_v53 }
 0x24d   :  { %8698 = vst [vmem:[#allocation82_spill] sm:$0xff] %v6115_v50  ;;  %v6198_v50 = vmul.f32 0.0078125, %v8730_v62  ;;  %v6267_v62 = vpop.xlane.xlu0 %1461 }
 0x24e   :  { %8699 = vst [vmem:[#allocation55_spill] sm:$0xff] %v6118_v25  ;;  %v6141_v25 = vmul.f32 %v6083_v26, %v6083_v26  ;;  %v6162_v26 = vmul.f32 0.0078125, %v8714_v46  ;;  %v6180_v46 = vmul.f32 %v6127_v15, %v6127_v15 }
 0x24f   :  { %8700 = vst [vmem:[#allocation85_spill] sm:$0xff] %v6122_v8  ;;  %v8741_v8 = vld [vmem:[#allocation68_spill] sm:$0xff]  ;;  %1645 = vadd.xlane.f32.xlu0 %v1556_v45 }
 0x250   :  { %8703 = vst [vmem:[#allocation53_spill] sm:$0xff] %v6127_v15  ;;  %v6212_v10 = vmul.f32 %v6162_v26, %v6162_v26  ;;  %v6215_v15 = vmul.f32 0.0078125, %v8736_v61  ;;  %v6254_v61 = vpop.xlane.xlu1 %1463  ;;  %v8772_v45 = vld [vmem:[#allocation72_spill] sm:$0xff] }
 0x251   :  { %8704 = vst [vmem:[#allocation142_spill] sm:$0xff] %v6129_v40  ;;  %v6168_v40 = vmul.f32 %v6106_v17, %v6106_v17 }
 0x252   :  { %8707 = vst [vmem:[#allocation54_spill] sm:$0xff] %v8706_v22  ;;  %v8724_v22 = vld [vmem:[#allocation66_spill] sm:$0xff] }
 0x253   :  { %8709 = vst [vmem:[#allocation84_spill] sm:$0xff] %v6147_v57  ;;  %v6223_v57 = vmul.f32 0.0078125, %v8741_v8 }
 0x254   :  { %8711 = vst [vmem:[#allocation58_spill] sm:$0xff] %v6152_v27  ;;  %v6186_v27 = vmul.f32 0.0078125, %v8724_v22  ;;  %v6206_v22 = vmul.f32 %v6159_v48, %v6159_v48 }
 0x255   :  { %8713 = vst [vmem:[#allocation88_spill] sm:$0xff] %v6159_v48  ;;  %v6231_v48 = vmul.f32 %v6183_v36, %v6183_v36 }
 0x256   :  { %8715 = vst [vmem:[#allocation56_spill] sm:$0xff] %v6162_v26  ;;  %v6237_v17 = vmul.f32 %v6186_v27, %v6186_v27  ;;  %v6243_v26 = vmul.f32 %v6195_v19, %v6195_v19 }
 0x257   :  { %8716 = vst [vmem:[#allocation86_spill] sm:$0xff] %v6164_v59  ;;  %v6188_v59 = vld [vmem:[#allocation5 + $0x140] sm:$0xff] }
 0x258   :  { %8717 = vst [vmem:[#allocation57_spill] sm:$0xff] %v6168_v40  ;;  %v1557_v2 = vmul.f32 %v6188_v59, %v6188_v59 }
 0x259   :  { %8719 = vst [vmem:[#allocation87_spill] sm:$0xff] %v6174_v37 }
 0x25a   :  { %8721 = vst [vmem:[#allocation61_spill] sm:$0xff] %v6180_v46  ;;  %v8739_v46 = vld [vmem:[#allocation120_spill] sm:$0xff]  ;;  %1647 = vadd.xlane.f32.xlu1 %v1557_v2  ;;  %v6277_v2 = vmul.f32 %v6223_v57, %v6223_v57 }
 0x25b   :  { %8723 = vst [vmem:[#allocation97_spill] sm:$0xff] %v6183_v36  ;;  %v6220_v37 = vmul.f32 0.0078125, %v8739_v46  ;;  %v6252_v36 = vmul.f32 0.0078125, %v8749_v43  ;;  %v8754_v46 = vld [vmem:[#allocation135_spill] sm:$0xff] }
 0x25c   :  { %8725 = vst [vmem:[#allocation59_spill] sm:$0xff] %v6186_v27  ;;  %v6260_v27 = vmul.f32 %v6215_v15, %v6215_v15 }
 0x25d   :  { %8726 = vst [vmem:[#allocation89_spill] sm:$0xff] %v6188_v59  ;;  %v6271_v43 = vmul.f32 %v6220_v37, %v6220_v37 }
 0x25e   :  { %8729 = vst [vmem:[#allocation60_spill] sm:$0xff] %v6195_v19  ;;  %v6265_v19 = vmul.f32 0.0078125, %v8754_v46  ;;  %v8768_v46 = vld [vmem:[#allocation35_spill] sm:$0xff] }
 0x25f   :  { %8731 = vst [vmem:[#allocation90_spill] sm:$0xff] %v6198_v50 }
 0x260   :  { %8732 = vst [vmem:[#allocation21_spill] sm:$0xff] %v6200_v28  ;;  %v6467_v28 = vmul.f32 0.0078125, %v6014_v47 }
 0x261   :  { %8733 = vst [vmem:[#allocation115_spill] sm:$0xff] %v6206_v22  ;;  %v6225_v22 = vld [vmem:[#allocation5 + $0x148] sm:$0xff] }
 0x262   :  { %8735 = vst [vmem:[#allocation63_spill] sm:$0xff] %v6212_v10  ;;  %v1558_v40 = vmul.f32 %v6225_v22, %v6225_v22  ;;  %v8762_v10 = vld [vmem:[#allocation130_spill] sm:$0xff] }
 0x263   :  { %8737 = vst [vmem:[#allocation23_spill] sm:$0xff] %v6215_v15  ;;  %v8764_v15 = vld [vmem:[#allocation37_spill] sm:$0xff] }
 0x264   :  { %8740 = vst [vmem:[#allocation64_spill] sm:$0xff] %v6220_v37  ;;  %1649 = vadd.xlane.f32.xlu2 %v1558_v40  ;;  %v6288_v24 = vmul.f32 0.0078125, %v8764_v15 }
 0x265   :  { %8742 = vst [vmem:[#allocation111_spill] sm:$0xff] %v6223_v57  ;;  %v6305_v57 = vld [vmem:[#allocation5 + $0x150] sm:$0xff] }
 0x266   :  { %8743 = vst [vmem:[#allocation116_spill] sm:$0xff] %v6231_v48  ;;  %v6249_v48 = vmul.f32 %v6198_v50, %v6198_v50  ;;  %v8760_v50 = vld [vmem:[#allocation70_spill] sm:$0xff]  ;;  %v1559_v15 = vmul.f32 %v6305_v57, %v6305_v57  ;;  %v6341_v56 = vmul.f32 %v6288_v24, %v6288_v24 }
 0x267   :  { %8745 = vst [vmem:[#allocation118_spill] sm:$0xff] %v6237_v17  ;;  %v6280_v8 = vmul.f32 0.0078125, %v8760_v50  ;;  %v6298_v50 = vmul.f32 %v6252_v36, %v6252_v36 }
 0x268   :  { %8748 = vst [vmem:[#allocation119_spill] sm:$0xff] %v6249_v48  ;;  %1651 = vadd.xlane.f32.xlu0 %v1559_v15  ;;  %v8786_v15 = vld [vmem:[#allocation93_spill] sm:$0xff] }
 0x269   :  { %8750 = vst [vmem:[#allocation66_spill] sm:$0xff] %v6252_v36  ;;  %v8776_v36 = vld [vmem:[#allocation75_spill] sm:$0xff] }
 0x26a   :  { %8751 = vst [vmem:[#allocation26_spill] sm:$0xff] %v6254_v61  ;;  %v6292_v61 = vld [vmem:[#allocation5 + $0x158] sm:$0xff]  ;;  %v6326_v31 = vmul.f32 0.0078125, %v8776_v36 }
 0x26b   :  { %8753 = vst [vmem:[#allocation27_spill] sm:$0xff] %v6260_v27  ;;  %v6290_v27 = vpop.xlane.xlu2 %1465  ;;  %v1560_v37 = vmul.f32 %v6292_v61, %v6292_v61 }
 0x26c   :  { %8755 = vst [vmem:[#allocation29_spill] sm:$0xff] %v6265_v19 }
 0x26d   :  { %8756 = vst [vmem:[#allocation120_spill] sm:$0xff] %v6267_v62  ;;  %v6285_v62 = vmul.f32 0.0078125, %v8762_v10  ;;  %v6303_v10 = vmul.f32 0.0078125, %v8768_v46  ;;  %v6323_v46 = vmul.f32 %v6280_v8, %v6280_v8  ;;  %1653 = vadd.xlane.f32.xlu1 %v1560_v37 }
 0x26e   :  { %8757 = vst [vmem:[#allocation68_spill] sm:$0xff] %v6271_v43  ;;  %v8778_v43 = vld [vmem:[#allocation74_spill] sm:$0xff] }
 0x26f   :  { %8759 = vst [vmem:[#allocation137_spill] sm:$0xff] %v6277_v2  ;;  %v8774_v2 = vld [vmem:[#allocation153_spill] sm:$0xff]  ;;  %v6329_v17 = vmul.f32 0.0078125, %v8778_v43 }
 0x270   :  { %8761 = vst [vmem:[#allocation135_spill] sm:$0xff] %v6280_v8  ;;  %v6319_v40 = vmul.f32 0.0078125, %v8774_v2 }
 0x271   :  { %8763 = vst [vmem:[#allocation70_spill] sm:$0xff] %v6285_v62  ;;  %v6377_v37 = vmul.f32 %v6329_v17, %v6329_v17 }
 0x272   :  { %8765 = vst [vmem:[#allocation130_spill] sm:$0xff] %v6288_v24  ;;  %v6362_v36 = vmul.f32 %v6319_v40, %v6319_v40 }
 0x273   :  { %8766 = vst [vmem:[#allocation37_spill] sm:$0xff] %v6290_v27  ;;  %v6311_v27 = vmul.f32 %v6265_v19, %v6265_v19  ;;  %v8781_v19 = vld [vmem:[#allocation43_spill] sm:$0xff] }
 0x274   :  { %8767 = vst [vmem:[#allocation159_spill] sm:$0xff] %v6298_v50  ;;  %v6316_v50 = vmul.f32 0.0078125, %v8772_v45  ;;  %v6335_v45 = vmul.f32 %v6285_v62, %v6285_v62  ;;  %v6352_v8 = vmul.f32 0.0078125, %v8781_v19  ;;  %v8783_v62 = vld [vmem:[#allocation77_spill] sm:$0xff]  ;;  %v6371_v19 = vmul.f32 %v6326_v31, %v6326_v31 }
 0x275   :  { %8769 = vst [vmem:[#allocation35_spill] sm:$0xff] %v6303_v10  ;;  %v6365_v3 = vmul.f32 0.0078125, %v8783_v62 }
 0x276   :  { %8770 = vst [vmem:[#allocation160_spill] sm:$0xff] %v6305_v57  ;;  %v6356_v2 = vmul.f32 %v6316_v50, %v6316_v50  ;;  %v6386_v63 = vmul.f32 %v6352_v8, %v6352_v8 }
 0x277   :  { %8771 = vst [vmem:[#allocation161_spill] sm:$0xff] %v6311_v27  ;;  %v3113_v27 = vld [vmem:[#allocation5 + $0x160] sm:$0xff]  ;;  %v6395_v5 = vmul.f32 %v6365_v3, %v6365_v3 }
 0x278   :  { %8773 = vst [vmem:[#allocation72_spill] sm:$0xff] %v6316_v50  ;;  %v1561_v48 = vmul.f32 %v3113_v27, %v3113_v27  ;;  %v6347_v27 = vmul.f32 %v6303_v10, %v6303_v10  ;;  %v1570_v50 = vpop.xlane.xlu1 %1569  ;;  %v1563_v10 = vmul.f32 %v3114_v23, %v3114_v23 }
 0x279   :  { %8775 = vst [vmem:[#allocation153_spill] sm:$0xff] %v6319_v40  ;;  %v1668_v43 = vmul.f32 0.0078125, %v1570_v50  ;;  %v1568_v40 = vpop.xlane.xlu0 %1567  ;;  %v6398_v50 = vmul.f32 0.0078125, %v5821_v42 }
 0x27a   :  { %8777 = vst [vmem:[#allocation75_spill] sm:$0xff] %v6326_v31  ;;  %1655 = vadd.xlane.f32.xlu2 %v1561_v48  ;;  %v6389_v31 = vmul.f32 0.0078125, %v8786_v15  ;;  %v3115_v48 = vld [vmem:[#allocation5 + $0x168] sm:$0xff]  ;;  %1659 = vadd.xlane.f32.xlu1 %v1563_v10  ;;  %v6431_v10 = vmul.f32 0.0078125, %v5905_v18  ;;  %v3117_v18 = vld [vmem:[#allocation7] sm:$0xff] }
 0x27b   :  { %8779 = vst [vmem:[#allocation74_spill] sm:$0xff] %v6329_v17  ;;  %v1562_v34 = vmul.f32 %v3115_v48, %v3115_v48  ;;  %v1768_v23 = vsub.f32 %v1668_v43, %v6007_v11  ;;  %v1572_v17 = vpop.xlane.xlu2 %1571  ;;  %v3116_v48 = vld [vmem:[#allocation5 + $0x178] sm:$0xff]  ;;  %vm164_vm3 = vcmp.gt.f32.partialorder %v3117_v18, 0.5 }
 0x27c   :  { %8782 = vst [vmem:[#allocation41_spill] sm:$0xff] %v6352_v8  ;;  %v1669_v15 = vmul.f32 0.0078125, %v1572_v17  ;;  %v1564_v24 = vmul.f32 %v3116_v48, %v3116_v48  ;;  %v6409_v8 = vmul.f32 %v6382_v6, %v6382_v6  ;;  %v6417_v30 = vmul.f32 %v6389_v31, %v6389_v31 }
 0x27d   :  { %8784 = vst [vmem:[#allocation43_spill] sm:$0xff] %v6377_v37  ;;  %v1667_v37 = vmul.f32 0.0078125, %v1568_v40  ;;  %v6413_v11 = vadd.f32 1e-05, %v1768_v23  ;;  %1657 = vadd.xlane.f32.xlu0 %v1562_v34  ;;  %v6436_v48 = vmul.f32 %v6402_v16, %v6402_v16 }
 0x27e   :  { %8785 = vst [vmem:[#allocation77_spill] sm:$0xff] %v6382_v6  ;;  %v1769_v43 = vsub.f32 %v1669_v15, %v6043_v9  ;;  %v6445_v15 = vmul.f32 0.0078125, %v5997_v39  ;;  %v6470_v39 = vmul.f32 0.0078125, %v6038_v20 }
 0x27f   :  { %8787 = vst [vmem:[#allocation93_spill] sm:$0xff] %v6389_v31  ;;  %v1767_v40 = vsub.f32 %v1667_v37, %v5953_v13  ;;  %v6426_v37 = vmul.f32 %v6398_v50, %v6398_v50  ;;  %2968 = vrsqrt.f32 %v6413_v11  ;;  %v3118_v13 = vld [vmem:[#allocation5 + $0x188] sm:$0xff]  ;;  %vm1933_vm4 = vweird.f32 %v6413_v11 }
 0x280   :  { %8788 = vst [vmem:[#allocation162_spill] sm:$0xff] %v6398_v50  ;;  %v6442_v34 = vadd.f32 1e-05, %v1769_v43  ;;  %v1576_v9 = vpop.xlane.xlu1 %1575  ;;  %v1566_v62 = vmul.f32 %v3118_v13, %v3118_v13 }
 0x281   :  { %8789 = vst [vmem:[#allocation163_spill] sm:$0xff] %v6402_v16  ;;  %v6421_v17 = vadd.f32 1e-05, %v1767_v40  ;;  %v6439_v40 = vmul.f32 0.0078125, %v5929_v60  ;;  %v1671_v42 = vmul.f32 0.0078125, %v1576_v9  ;;  %v1574_v23 = vpop.xlane.xlu0 %1573  ;;  %v3119_v60 = vld [vmem:[#allocation5 + $0x180] sm:$0xff] }
 0x282   :  { %8790 = vst [vmem:[#allocation164_spill] sm:$0xff] %v6431_v10  ;;  %1661 = vadd.xlane.f32.xlu2 %v1564_v24  ;;  %v1670_v6 = vmul.f32 0.0078125, %v1574_v23  ;;  %v1565_v35 = vmul.f32 %v3119_v60, %v3119_v60  ;;  %v6452_v24 = vmul.f32 %v6431_v10, %v6431_v10  ;;  %1665 = vadd.xlane.f32.xlu1 %v1566_v62  ;;  %vm1943_vm8 = vweird.f32 %v6442_v34 }
 0x283   :  { %8791 = vst [vmem:[#allocation165_spill] sm:$0xff] %v6439_v40  ;;  %2970 = vrsqrt.f32 %v6421_v17  ;;  %v1771_v9 = vsub.f32 %v1671_v42, %v6049_v55  ;;  %v1578_v50 = vpop.xlane.xlu2 %1577  ;;  %v6459_v13 = vmul.f32 %v6439_v40, %v6439_v40  ;;  %v3354_v55 = vmov 0  }
 0x284   :  { %8792 = vst [vmem:[#allocation166_spill] sm:$0xff] %v6445_v15  ;;  %2972 = vrsqrt.f32 %v6442_v34  ;;  %v1770_v60 = vsub.f32 %v1670_v6, %v6034_v51  ;;  %v1672_v43 = vmul.f32 0.0078125, %v1578_v50  ;;  %v2569_v42 = vsel %vm164_vm3, 1, %v3354_v55 }
 0x285   :  { %v6464_v16 = vpop.eup %2968  ;;  %v6473_v10 = vadd.f32 1e-05, %v1771_v9  ;;  %v6479_v6 = vmul.f32 %v6445_v15, %v6445_v15  ;;  %1663 = vadd.xlane.f32.xlu0 %v1565_v35  ;;  %v6488_v9 = vperm.slane %v3117_v18, 2  ;;  %v2570_v23 = vperm.slane %v2569_v42, 4 }
 0x286   :  { %v1928_v51 = vmul.f32 %v6464_v16, %v6413_v11  ;;  %v6483_v47 = vadd.f32 1e-05, %v1770_v60  ;;  %v1772_v20 = vsub.f32 %v1672_v43, %v6070_v21  ;;  %v6499_v35 = vperm.slane %v3117_v18, 3 }
 0x287   :  { %8793 = vst [vmem:[#allocation167_spill] sm:$0xff] %v6479_v6  ;;  %2974 = vrsqrt.f32 %v6473_v10  ;;  %vm1923_vm5 = vweird.f32 %v6421_v17  ;;  %vm6509_vm6 = vcmp.eq.s32.totalorder %v2570_v23, 1  ;;  %vm1934_vm7 = vweird.f32 %v6464_v16 }
 0x288   :  { %v1929_v6 = vmul.f32 %v6464_v16, %v1928_v51  ;;  %2976 = vrsqrt.f32 %v6483_v47  ;;  %v6497_v60 = vadd.f32 1e-05, %v1772_v20  ;;  %v1582_v21 = vpop.xlane.xlu1 %1581  ;;  %vm1963_vm11 = vweird.f32 %v6473_v10  ;;  %vm1935_vm12 = vmor %vm1933_vm4, %vm1934_vm7 }
 0x289   :  { %v6475_v53 = vpop.eup %2970  ;;  %v1674_v15 = vmul.f32 0.0078125, %v1582_v21  ;;  %v1580_v57 = vpop.xlane.xlu0 %1579  ;;  %vm1953_vm13 = vweird.f32 %v6483_v47  ;;  %v8796_v11 = vsub.f32 %v5118_v52, %v5963_v32 }
 0x28a   :  { %v1918_v62 = vmul.f32 %v6475_v53, %v6421_v17  ;;  %v6493_v55 = vpop.eup %2972  ;;  %v1930_v40 = vmul.f32 0.5, %v1929_v6  ;;  %2978 = vrsqrt.f32 %v6497_v60  ;;  %v1673_v42 = vmul.f32 0.0078125, %v1580_v57 }
 0x28b   :  { %v1938_v50 = vmul.f32 %v6493_v55, %v6442_v34  ;;  %v1774_v18 = vsub.f32 %v1674_v15, %v6101_v41  ;;  %v1584_v59 = vpop.xlane.xlu2 %1583  ;;  %vm1924_vm9 = vweird.f32 %v6475_v53  ;;  %vm1944_vm10 = vweird.f32 %v6493_v55 }
 0x28c   :  { %v1919_v43 = vmul.f32 %v6475_v53, %v1918_v62  ;;  %v1931_v21 = vsub.f32 1.5, %v1930_v40  ;;  %v1773_v6 = vsub.f32 %v1673_v42, %v6064_v38  ;;  %v6528_v38 = vmul.f32 0.0078125, %v1584_v59  ;;  %vm1925_vm14 = vmor %vm1923_vm5, %vm1924_vm9 }
 0x28d   :  { %v1939_v20 = vmul.f32 %v6493_v55, %v1938_v50  ;;  %v6516_v57 = vpop.eup %2974  ;;  %v6519_v58 = vadd.f32 1e-05, %v1774_v18  ;;  %v8797_v17 = vsub.f32 %v5129_v0, %v5899_v44  ;;  %vm1945_vm0 = vmor %vm1943_vm8, %vm1944_vm10  ;;  %v8798_v44 = vsub.f32 %v5151_v14, %v5988_v1 }
 0x28e   :  { %v1920_v51 = vmul.f32 0.5, %v1919_v43  ;;  %v6521_v41 = vpop.eup %2976  ;;  %v1932_v15 = vmul.f32 %v6464_v16, %v1931_v21  ;;  %v1958_v40 = vmul.f32 %v6516_v57, %v6473_v10  ;;  %vm1964_vm15 = vweird.f32 %v6516_v57 }
 0x28f   :  { %v1940_v50 = vmul.f32 0.5, %v1939_v20  ;;  %v6536_v20 = vadd.f32 1e-05, %v1773_v6  ;;  %2980 = vrsqrt.f32 %v6519_v58  ;;  %vm1954_vm1 = vweird.f32 %v6521_v41  ;;  %vm6588_vm4 = vmor %vm1963_vm11, %vm1964_vm15 }
 0x290   :  { %v1921_v43 = vsub.f32 1.5, %v1920_v51  ;;  %v1948_v51 = vmul.f32 %v6521_v41, %v6483_v47  ;;  %v6538_v18 = vpop.eup %2978  ;;  %v1936_v21 = vsel %vm1935_vm12, %v6464_v16, %v1932_v15  ;;  %v1959_v59 = vmul.f32 %v6516_v57, %v1958_v40  ;;  %vm1955_vm5 = vmor %vm1953_vm13, %vm1954_vm1 }
 0x291   :  { %v1941_v42 = vsub.f32 1.5, %v1940_v50  ;;  %v2418_v6 = vmul.f32 %v1936_v21, %v8796_v11  ;;  %v1968_v52 = vmul.f32 %v6538_v18, %v6497_v60  ;;  %2982 = vrsqrt.f32 %v6536_v20 }
 0x292   :  { %v1922_v23 = vmul.f32 %v6475_v53, %v1921_v43  ;;  %v1949_v16 = vmul.f32 %v6521_v41, %v1948_v51  ;;  %v1960_v40 = vmul.f32 0.5, %v1959_v59  ;;  %vm1974_vm3 = vweird.f32 %v6538_v18 }
 0x293   :  { %v1942_v50 = vmul.f32 %v6493_v55, %v1941_v42  ;;  %v2469_v32 = vmul.f32 %v6488_v9, %v2418_v6  ;;  %v1969_v51 = vmul.f32 %v6538_v18, %v1968_v52  ;;  %vm1973_vm7 = vweird.f32 %v6497_v60 }
 0x294   :  { %v1926_v43 = vsel %vm1925_vm14, %v6475_v53, %v1922_v23  ;;  %v1950_v23 = vmul.f32 0.5, %v1949_v16  ;;  %v1961_v42 = vsub.f32 1.5, %v1960_v40  ;;  %v8799_v16 = vld [vmem:[#allocation114_spill] sm:$0xff]  ;;  %vm1975_vm8 = vmor %vm1973_vm7, %vm1974_vm3  ;;  %vm1993_vm9 = vweird.f32 %v6519_v58 }
 0x295   :  { %v2417_v15 = vmul.f32 %v1926_v43, %v8797_v17  ;;  %v1946_v53 = vsel %vm1945_vm0, %v6493_v55, %v1942_v50  ;;  %v2520_v21 = vadd.f32 %v6499_v35, %v2469_v32  ;;  %v1775_v55 = vsub.f32 %v6528_v38, %v6141_v25  ;;  %v6576_v11 = vpop.eup %2980  ;;  %v1588_v50 = vpop.xlane.xlu1 %1587 }
 0x296   :  { %v2419_v34 = vmul.f32 %v1946_v53, %v8798_v44  ;;  %v1951_v59 = vsub.f32 1.5, %v1950_v23  ;;  %v1962_v14 = vmul.f32 %v6516_v57, %v1961_v42  ;;  %v1970_v1 = vmul.f32 0.5, %v1969_v51  ;;  %v6595_v32 = vpop.xlane.xlu0 %1585  ;;  %v3121_v53 = vld [vmem:[#allocation2 + $0x8] sm:$0xff] }
 0x297   :  { %v2468_v0 = vmul.f32 %v6488_v9, %v2417_v15  ;;  %v2573_v17 = vsel %vm6509_vm6, %v2520_v21, %v8799_v16  ;;  %v3120_v15 = vld [vmem:[#allocation5 + $0x8] sm:$0xff]  ;;  %v1988_v52 = vmul.f32 %v6576_v11, %v6519_v58  ;;  %v6605_v51 = vpop.eup %2982  ;;  %v6631_v60 = vadd.f32 1e-05, %v1775_v55 }
 0x298   :  { %v2470_v43 = vmul.f32 %v6488_v9, %v2419_v34  ;;  %v2723_v40 = vadd.f32 %v3120_v15, %v2520_v21  ;;  %v1952_v38 = vmul.f32 %v6521_v41, %v1951_v59  ;;  %v2623_v23 = vadd.f32 %v3121_v53, %v2573_v17  ;;  %v3122_v34 = vld [vmem:[#allocation5] sm:$0xff]  ;;  %v3123_v21 = vld [vmem:[#allocation2] sm:$0xff] }
 0x299   :  { %v2519_v6 = vadd.f32 %v6499_v35, %v2468_v0  ;;  %v8802_v0 = vld [vmem:[#allocation158_spill] sm:$0xff]  ;;  %v1966_v16 = vsel %vm6588_vm4, %v6516_v57, %v1962_v14  ;;  %v1971_v15 = vsub.f32 1.5, %v1970_v1  ;;  %v3125_v57 = vld [vmem:[#allocation2 + $0x10] sm:$0xff]  ;;  %v1989_v1 = vmul.f32 %v6576_v11, %v1988_v52 }
 0x29a   :  { %v2521_v10 = vadd.f32 %v6499_v35, %v2470_v43  ;;  %2773 = vst [vmem:[#allocation9 + $0x8] sm:$0xff] %v2723_v40  ;;  %v1956_v17 = vsel %vm1955_vm5, %v6521_v41, %v1952_v38  ;;  %v3124_v53 = vld [vmem:[#allocation5 + $0x10] sm:$0xff]  ;;  %v1677_v52 = vmul.f32 0.0078125, %v1588_v50  ;;  %vm1983_vm10 = vweird.f32 %v6536_v20  ;;  %v8812_v50 = vld [vmem:[#allocation100_spill] sm:$0xff] }
 0x29b   :  { %v2572_v44 = vsel %vm6509_vm6, %v2519_v6, %v8802_v0  ;;  %v2722_v42 = vadd.f32 %v3122_v34, %v2519_v6  ;;  %2673 = vst [vmem:[#allocation8 + $0x8] sm:$0xff] %v2623_v23  ;;  %v8803_v6 = vld [vmem:[#allocation20_spill] sm:$0xff]  ;;  %v8804_v0 = vsub.f32 %v5186_v4, %v5991_v49  ;;  %v1972_v41 = vmul.f32 %v6538_v18, %v1971_v15 }
 0x29c   :  { %v2622_v59 = vadd.f32 %v3123_v21, %v2572_v44  ;;  %v2574_v43 = vsel %vm6509_vm6, %v2521_v10, %v8803_v6  ;;  %v2724_v47 = vadd.f32 %v3124_v53, %v2521_v10  ;;  %v8805_v34 = vld [vmem:[#allocation28_spill] sm:$0xff]  ;;  %v8806_v44 = vld [vmem:[#allocation78_spill] sm:$0xff]  ;;  %v1978_v4 = vmul.f32 %v6605_v51, %v6536_v20 }
 0x29d   :  { %v2421_v40 = vmul.f32 %v1966_v16, %v8804_v0  ;;  %v8807_v21 = vsub.f32 %v8805_v34, %v8806_v44  ;;  %v2624_v14 = vadd.f32 %v3125_v57, %v2574_v43  ;;  %2772 = vst [vmem:[#allocation9] sm:$0xff] %v2722_v42  ;;  %v1976_v49 = vsel %vm1975_vm8, %v6538_v18, %v1972_v41  ;;  %v1590_v42 = vpop.xlane.xlu2 %1589  ;;  %v8809_v16 = vld [vmem:[#allocation47_spill] sm:$0xff]  ;;  %v8811_v18 = vld [vmem:[#allocation84_spill] sm:$0xff]  ;;  %v1594_v57 = vpop.xlane.xlu1 %1593 }
 0x29e   :  { %2672 = vst [vmem:[#allocation8] sm:$0xff] %v2622_v59  ;;  %v1990_v23 = vmul.f32 0.5, %v1989_v1  ;;  %v8808_v59 = vld [vmem:[#allocation117_spill] sm:$0xff]  ;;  %v1979_v6 = vmul.f32 %v6605_v51, %v1978_v4  ;;  %vm1994_vm11 = vweird.f32 %v6576_v11  ;;  %2984 = vrsqrt.f32 %v6631_v60  ;;  %v3127_v44 = vld [vmem:[#allocation5 + $0x18] sm:$0xff] }
 0x29f   :  { %v2420_v31 = vmul.f32 %v1956_v17, %v8807_v21  ;;  %v2472_v25 = vmul.f32 %v6488_v9, %v2421_v40  ;;  %2674 = vst [vmem:[#allocation8 + $0x10] sm:$0xff] %v2624_v14  ;;  %v8810_v17 = vsub.f32 %v8808_v59, %v8809_v16  ;;  %v1777_v55 = vsub.f32 %v1677_v52, %v8811_v18  ;;  %v8813_v40 = vld [vmem:[#allocation19_spill] sm:$0xff]  ;;  %v3128_v14 = vld [vmem:[#allocation2 + $0x20] sm:$0xff]  ;;  %v3129_v1 = vld [vmem:[#allocation2 + $0x18] sm:$0xff] }
 0x2a0   :  { %2774 = vst [vmem:[#allocation9 + $0x10] sm:$0xff] %v2724_v47  ;;  %v1991_v43 = vsub.f32 1.5, %v1990_v23  ;;  %v3126_v47 = vld [vmem:[#allocation5 + $0x20] sm:$0xff]  ;;  %vm1995_vm12 = vmor %vm1993_vm9, %vm1994_vm11  ;;  %v1980_v23 = vmul.f32 0.5, %v1979_v6  ;;  %vm1984_vm13 = vweird.f32 %v6605_v51  ;;  %vm2003_vm0 = vweird.f32 %v6631_v60 }
 0x2a1   :  { %v2471_v38 = vmul.f32 %v6488_v9, %v2420_v31  ;;  %v2523_v10 = vadd.f32 %v6499_v35, %v2472_v25  ;;  %v2422_v15 = vmul.f32 %v1976_v49, %v8810_v17  ;;  %v1592_v49 = vpop.xlane.xlu0 %1591  ;;  %v6655_v52 = vadd.f32 1e-05, %v1777_v55  ;;  %vm1985_vm14 = vmor %vm1983_vm10, %vm1984_vm13 }
 0x2a2   :  { %v1992_v4 = vmul.f32 %v6576_v11, %v1991_v43  ;;  %v1680_v17 = vmul.f32 0.0078125, %v1594_v57  ;;  %v8815_v43 = vld [vmem:[#allocation154_spill] sm:$0xff]  ;;  %v1679_v6 = vmul.f32 0.0078125, %v1592_v49 }
 0x2a3   :  { %v2522_v31 = vadd.f32 %v6499_v35, %v2471_v38  ;;  %v2576_v53 = vsel %vm6509_vm6, %v2523_v10, %v8812_v50  ;;  %v2726_v0 = vadd.f32 %v3126_v47, %v2523_v10  ;;  %v2473_v38 = vmul.f32 %v6488_v9, %v2422_v15  ;;  %v8814_v15 = vld [vmem:[#allocation133_spill] sm:$0xff] }
 0x2a4   :  { %v2626_v41 = vadd.f32 %v3128_v14, %v2576_v53  ;;  %v1676_v10 = vmul.f32 0.0078125, %v6595_v32  ;;  %v1996_v16 = vsel %vm1995_vm12, %v6576_v11, %v1992_v4  ;;  %v8816_v18 = vsub.f32 %v8814_v15, %v8815_v43  ;;  %v6665_v55 = vpop.eup %2984  ;;  %v8817_v32 = vld [vmem:[#allocation113_spill] sm:$0xff] }
 0x2a5   :  { %v2575_v34 = vsel %vm6509_vm6, %v2522_v31, %v8813_v40  ;;  %v2725_v21 = vadd.f32 %v3127_v44, %v2522_v31  ;;  %2776 = vst [vmem:[#allocation9 + $0x20] sm:$0xff] %v2726_v0  ;;  %v1678_v31 = vmul.f32 0.0078125, %v1590_v42  ;;  %v2524_v59 = vadd.f32 %v6499_v35, %v2473_v38  ;;  %v3130_v11 = vld [vmem:[#allocation5 + $0x28] sm:$0xff]  ;;  %v8819_v40 = vld [vmem:[#allocation87_spill] sm:$0xff] }
 0x2a6   :  { %v2625_v25 = vadd.f32 %v3129_v1, %v2575_v34  ;;  %2676 = vst [vmem:[#allocation8 + $0x20] sm:$0xff] %v2626_v41  ;;  %v2424_v58 = vmul.f32 %v1996_v16, %v8816_v18  ;;  %v1981_v50 = vsub.f32 1.5, %v1980_v23  ;;  %2986 = vrsqrt.f32 %v6655_v52  ;;  %v8818_v47 = vld [vmem:[#allocation85_spill] sm:$0xff]  ;;  %v3131_v44 = vld [vmem:[#allocation2 + $0x28] sm:$0xff]  ;;  %v1596_v23 = vpop.xlane.xlu2 %1595 }
 0x2a7   :  { %2775 = vst [vmem:[#allocation9 + $0x18] sm:$0xff] %v2725_v21  ;;  %v2577_v42 = vsel %vm6509_vm6, %v2524_v59, %v8817_v32  ;;  %v2727_v53 = vadd.f32 %v3130_v11, %v2524_v59  ;;  %v1776_v0 = vsub.f32 %v1676_v10, %v8818_v47  ;;  %v1778_v34 = vsub.f32 %v1678_v31, %v8819_v40  ;;  %v8820_v4 = vld [vmem:[#allocation61_spill] sm:$0xff]  ;;  %v8822_v18 = vld [vmem:[#allocation31_spill] sm:$0xff]  ;;  %v3137_v47 = vld [vmem:[#allocation2 + $0x40] sm:$0xff] }
 0x2a8   :  { %2675 = vst [vmem:[#allocation8 + $0x18] sm:$0xff] %v2625_v25  ;;  %v2627_v57 = vadd.f32 %v3131_v44, %v2577_v42  ;;  %v2475_v14 = vmul.f32 %v6488_v9, %v2424_v58  ;;  %v1982_v41 = vmul.f32 %v6605_v51, %v1981_v50  ;;  %v1998_v1 = vmul.f32 %v6665_v55, %v6631_v60  ;;  %v8821_v16 = vld [vmem:[#allocation57_spill] sm:$0xff] }
 0x2a9   :  { %v6678_v21 = vmul.f32 %v6467_v28, %v6467_v28  ;;  %2777 = vst [vmem:[#allocation9 + $0x28] sm:$0xff] %v2727_v53  ;;  %v6684_v25 = vadd.f32 1e-05, %v1776_v0  ;;  %v6686_v38 = vadd.f32 1e-05, %v1778_v34  ;;  %v1780_v49 = vsub.f32 %v1680_v17, %v8820_v4  ;;  %v8823_v58 = vld [vmem:[#allocation81_spill] sm:$0xff] }
 0x2aa   :  { %2677 = vst [vmem:[#allocation8 + $0x28] sm:$0xff] %v2627_v57  ;;  %v2526_v10 = vadd.f32 %v6499_v35, %v2475_v14  ;;  %v1986_v31 = vsel %vm1985_vm14, %v6605_v51, %v1982_v41  ;;  %v1999_v59 = vmul.f32 %v6665_v55, %v1998_v1  ;;  %v1779_v15 = vsub.f32 %v1679_v6, %v8821_v16  ;;  %v8825_v51 = vld [vmem:[#allocation103_spill] sm:$0xff]  ;;  %v3133_v0 = vld [vmem:[#allocation2 + $0x38] sm:$0xff]  ;;  %v1600_v57 = vpop.xlane.xlu1 %1599 }
 0x2ab   :  { %v6697_v43 = vmul.f32 %v6470_v39, %v6470_v39  ;;  %v8824_v17 = vsub.f32 %v8822_v18, %v8823_v58  ;;  %2988 = vrsqrt.f32 %v6684_v25  ;;  %v3132_v6 = vld [vmem:[#allocation5 + $0x38] sm:$0xff]  ;;  %vm2004_vm15 = vweird.f32 %v6665_v55  ;;  %v3134_v58 = vld [vmem:[#allocation5 + $0x30] sm:$0xff] }
 0x2ac   :  { %v6703_v32 = vpop.eup %2986  ;;  %v2579_v42 = vsel %vm6509_vm6, %v2526_v10, %v8825_v51  ;;  %v2729_v11 = vadd.f32 %v3132_v6, %v2526_v10  ;;  %v2000_v53 = vmul.f32 0.5, %v1999_v59  ;;  %2990 = vrsqrt.f32 %v6686_v38  ;;  %vm2005_vm3 = vmor %vm2003_vm0, %vm2004_vm15 }
 0x2ad   :  { %v2423_v50 = vmul.f32 %v1986_v31, %v8824_v17  ;;  %v2629_v40 = vadd.f32 %v3133_v0, %v2579_v42  ;;  %v2018_v44 = vmul.f32 %v6703_v32, %v6655_v52  ;;  %v6715_v41 = vadd.f32 1e-05, %v1780_v49  ;;  %v8826_v49 = vld [vmem:[#allocation101_spill] sm:$0xff]  ;;  %v3135_v42 = vld [vmem:[#allocation2 + $0x30] sm:$0xff] }
 0x2ae   :  { %2779 = vst [vmem:[#allocation9 + $0x38] sm:$0xff] %v2729_v11  ;;  %v2001_v14 = vsub.f32 1.5, %v2000_v53  ;;  %v6717_v1 = vadd.f32 1e-05, %v1779_v15  ;;  %vm2023_vm1 = vweird.f32 %v6655_v52  ;;  %v1681_v59 = vmul.f32 0.0078125, %v1596_v23  ;;  %v8827_v53 = vld [vmem:[#allocation127_spill] sm:$0xff] }
 0x2af   :  { %v2474_v34 = vmul.f32 %v6488_v9, %v2423_v50  ;;  %2679 = vst [vmem:[#allocation8 + $0x38] sm:$0xff] %v2629_v40  ;;  %v2019_v10 = vmul.f32 %v6703_v32, %v2018_v44  ;;  %2992 = vrsqrt.f32 %v6715_v41  ;;  %v1683_v16 = vmul.f32 0.0078125, %v1600_v57  ;;  %v1598_v50 = vpop.xlane.xlu0 %1597  ;;  %v8828_v0 = vld [vmem:[#allocation80_spill] sm:$0xff] }
 0x2b0   :  { %v2002_v31 = vmul.f32 %v6665_v55, %v2001_v14  ;;  %2994 = vrsqrt.f32 %v6717_v1  ;;  %vm2024_vm4 = vweird.f32 %v6703_v32  ;;  %vm2013_vm5 = vweird.f32 %v6684_v25  ;;  %v8833_v52 = vld [vmem:[#allocation52_spill] sm:$0xff] }
 0x2b1   :  { %v2525_v4 = vadd.f32 %v6499_v35, %v2474_v34  ;;  %v6725_v18 = vpop.eup %2988  ;;  %v2020_v60 = vmul.f32 0.5, %v2019_v10  ;;  %v8829_v40 = vsub.f32 %v8827_v53, %v8828_v0  ;;  %vm2033_vm8 = vweird.f32 %v6686_v38  ;;  %vm2025_vm10 = vmor %vm2023_vm1, %vm2024_vm4 }
 0x2b2   :  { %v6733_v51 = vpop.eup %2990  ;;  %v2006_v6 = vsel %vm2005_vm3, %v6665_v55, %v2002_v31  ;;  %v2008_v11 = vmul.f32 %v6725_v18, %v6684_v25  ;;  %vm2014_vm7 = vweird.f32 %v6725_v18  ;;  %v1602_v55 = vpop.xlane.xlu2 %1601  ;;  %v8831_v31 = vld [vmem:[#allocation116_spill] sm:$0xff]  ;;  %v8837_v25 = vld [vmem:[#allocation71_spill] sm:$0xff]  ;;  %vm2053_vm15 = vweird.f32 %v6715_v41 }
 0x2b3   :  { %v2578_v15 = vsel %vm6509_vm6, %v2525_v4, %v8826_v49  ;;  %v2728_v17 = vadd.f32 %v3134_v58, %v2525_v4  ;;  %v2425_v34 = vmul.f32 %v2006_v6, %v8829_v40  ;;  %v2021_v44 = vsub.f32 1.5, %v2020_v60  ;;  %v8830_v4 = vld [vmem:[#allocation63_spill] sm:$0xff]  ;;  %vm2015_vm11 = vmor %vm2013_vm5, %vm2014_vm7 }
 0x2b4   :  { %v2628_v23 = vadd.f32 %v3135_v42, %v2578_v15  ;;  %v2028_v57 = vmul.f32 %v6733_v51, %v6686_v38  ;;  %v2009_v14 = vmul.f32 %v6725_v18, %v2008_v11  ;;  %v1781_v10 = vsub.f32 %v1681_v59, %v8830_v4  ;;  %v8841_v38 = vld [vmem:[#allocation32_spill] sm:$0xff] }
 0x2b5   :  { %2778 = vst [vmem:[#allocation9 + $0x30] sm:$0xff] %v2728_v17  ;;  %v1783_v49 = vsub.f32 %v1683_v16, %v8831_v31  ;;  %v6750_v15 = vmul.f32 0.0078125, %v1598_v50  ;;  %v2476_v58 = vmul.f32 %v6488_v9, %v2425_v34  ;;  %v2022_v17 = vmul.f32 %v6703_v32, %v2021_v44  ;;  %v6756_v42 = vpop.eup %2992  ;;  %v8832_v34 = vld [vmem:[#allocation34_spill] sm:$0xff] }
 0x2b6   :  { %2678 = vst [vmem:[#allocation8 + $0x30] sm:$0xff] %v2628_v23  ;;  %v2029_v60 = vmul.f32 %v6733_v51, %v2028_v57  ;;  %vm2034_vm9 = vweird.f32 %v6733_v51  ;;  %v2010_v59 = vmul.f32 0.5, %v2009_v14  ;;  %v6762_v23 = vadd.f32 1e-05, %v1781_v10  ;;  %v6768_v6 = vpop.eup %2994  ;;  %v8836_v31 = vld [vmem:[#allocation102_spill] sm:$0xff] }
 0x2b7   :  { %v6764_v16 = vadd.f32 1e-05, %v1783_v49  ;;  %v6766_v50 = vmul.f32 0.0078125, %v1602_v55  ;;  %v2527_v11 = vadd.f32 %v6499_v35, %v2476_v58  ;;  %v2026_v53 = vsel %vm2025_vm10, %v6703_v32, %v2022_v17  ;;  %v8835_v55 = vld [vmem:[#allocation115_spill] sm:$0xff]  ;;  %v3136_v32 = vld [vmem:[#allocation5 + $0x40] sm:$0xff]  ;;  %vm2035_vm13 = vmor %vm2033_vm8, %vm2034_vm9 }
 0x2b8   :  { %v2030_v0 = vmul.f32 0.5, %v2029_v60  ;;  %v2048_v40 = vmul.f32 %v6756_v42, %v6715_v41  ;;  %v8834_v44 = vsub.f32 %v8832_v34, %v8833_v52  ;;  %v2011_v14 = vsub.f32 1.5, %v2010_v59  ;;  %v8838_v52 = vld [vmem:[#allocation155_spill] sm:$0xff] }
 0x2b9   :  { %v2038_v4 = vmul.f32 %v6768_v6, %v6717_v1  ;;  %v1782_v10 = vsub.f32 %v6750_v15, %v8835_v55  ;;  %v2580_v49 = vsel %vm6509_vm6, %v2527_v11, %v8836_v31  ;;  %v2730_v58 = vadd.f32 %v3136_v32, %v2527_v11  ;;  %v3138_v55 = vld [vmem:[#allocation5 + $0x50] sm:$0xff] }
 0x2ba   :  { %v2427_v57 = vmul.f32 %v2026_v53, %v8834_v44  ;;  %v2031_v17 = vsub.f32 1.5, %v2030_v0  ;;  %v2049_v60 = vmul.f32 %v6756_v42, %v2048_v40  ;;  %v2630_v20 = vadd.f32 %v3137_v47, %v2580_v49  ;;  %v8842_v49 = vld [vmem:[#allocation109_spill] sm:$0xff] }
 0x2bb   :  { %v2012_v59 = vmul.f32 %v6725_v18, %v2011_v14  ;;  %v2039_v34 = vmul.f32 %v6768_v6, %v2038_v4  ;;  %2780 = vst [vmem:[#allocation9 + $0x40] sm:$0xff] %v2730_v58  ;;  %vm2054_vm12 = vweird.f32 %v6756_v42  ;;  %2996 = vrsqrt.f32 %v6762_v23 }
 0x2bc   :  { %v2478_v53 = vmul.f32 %v6488_v9, %v2427_v57  ;;  %v2032_v15 = vmul.f32 %v6733_v51, %v2031_v17  ;;  %v2050_v11 = vmul.f32 0.5, %v2049_v60  ;;  %2680 = vst [vmem:[#allocation8 + $0x40] sm:$0xff] %v2630_v20  ;;  %vm2044_vm14 = vweird.f32 %v6768_v6  ;;  %v8840_v20 = vld [vmem:[#allocation112_spill] sm:$0xff]  ;;  %v1606_v60 = vpop.xlane.xlu1 %1605  ;;  %vm2055_vm0 = vmor %vm2053_vm15, %vm2054_vm12 }
 0x2bd   :  { %v2016_v0 = vsel %vm2015_vm11, %v6725_v18, %v2012_v59  ;;  %v2040_v40 = vmul.f32 0.5, %v2039_v34  ;;  %v8839_v44 = vsub.f32 %v8837_v25, %v8838_v52  ;;  %2998 = vrsqrt.f32 %v6764_v16 }
 0x2be   :  { %v2529_v47 = vadd.f32 %v6499_v35, %v2478_v53  ;;  %v2036_v14 = vsel %vm2035_vm13, %v6733_v51, %v2032_v15  ;;  %v2051_v4 = vsub.f32 1.5, %v2050_v11  ;;  %v8843_v32 = vsub.f32 %v8841_v38, %v8842_v49  ;;  %v3139_v53 = vld [vmem:[#allocation2 + $0x50] sm:$0xff]  ;;  %v1604_v15 = vpop.xlane.xlu0 %1603 }
 0x2bf   :  { %v2426_v57 = vmul.f32 %v2016_v0, %v8839_v44  ;;  %v2041_v17 = vsub.f32 1.5, %v2040_v40  ;;  %vm2043_vm1 = vweird.f32 %v6717_v1  ;;  %v6821_v0 = vadd.f32 1e-05, %v1782_v10  ;;  %v8844_v1 = vld [vmem:[#allocation33_spill] sm:$0xff]  ;;  %v8848_v49 = vld [vmem:[#allocation148_spill] sm:$0xff] }
 0x2c0   :  { %v2582_v18 = vsel %vm6509_vm6, %v2529_v47, %v8840_v20  ;;  %v2732_v31 = vadd.f32 %v3138_v55, %v2529_v47  ;;  %v2428_v58 = vmul.f32 %v2036_v14, %v8843_v32  ;;  %v2052_v51 = vmul.f32 %v6756_v42, %v2051_v4  ;;  %vm2045_vm3 = vmor %vm2043_vm1, %vm2044_vm14  ;;  %v8845_v10 = vld [vmem:[#allocation53_spill] sm:$0xff]  ;;  %v8849_v32 = vld [vmem:[#allocation136_spill] sm:$0xff] }
 0x2c1   :  { %v2632_v59 = vadd.f32 %v3139_v53, %v2582_v18  ;;  %v2477_v34 = vmul.f32 %v6488_v9, %v2426_v57  ;;  %v2042_v47 = vmul.f32 %v6768_v6, %v2041_v17  ;;  %v6823_v40 = vpop.eup %2996  ;;  %v1784_v52 = vsub.f32 %v6766_v50, %v6243_v26  ;;  %v1608_v57 = vpop.xlane.xlu2 %1607  ;;  %v3140_v26 = vld [vmem:[#allocation5 + $0x48] sm:$0xff]  ;;  %v3141_v53 = vld [vmem:[#allocation2 + $0x48] sm:$0xff] }
 0x2c2   :  { %2782 = vst [vmem:[#allocation9 + $0x50] sm:$0xff] %v2732_v31  ;;  %v2479_v11 = vmul.f32 %v6488_v9, %v2428_v58  ;;  %v2056_v41 = vsel %vm2055_vm0, %v6756_v42, %v2052_v51  ;;  %v1686_v44 = vmul.f32 0.0078125, %v1606_v60  ;;  %v8846_v4 = vsub.f32 %v8844_v1, %v8845_v10  ;;  %v8847_v31 = vld [vmem:[#allocation104_spill] sm:$0xff]  ;;  %v3142_v51 = vld [vmem:[#allocation5 + $0x58] sm:$0xff] }
 0x2c3   :  { %2682 = vst [vmem:[#allocation8 + $0x50] sm:$0xff] %v2632_v59  ;;  %v2528_v25 = vadd.f32 %v6499_v35, %v2477_v34  ;;  %v2046_v18 = vsel %vm2045_vm3, %v6768_v6, %v2042_v47  ;;  %v2058_v55 = vmul.f32 %v6823_v40, %v6762_v23  ;;  %v6838_v42 = vpop.eup %2998  ;;  %v8850_v58 = vsub.f32 %v8848_v49, %v8849_v32  ;;  %v8851_v34 = vld [vmem:[#allocation18_spill] sm:$0xff]  ;;  %v3144_v49 = vld [vmem:[#allocation5 + $0x68] sm:$0xff] }
 0x2c4   :  { %v2530_v14 = vadd.f32 %v6499_v35, %v2479_v11  ;;  %v2430_v20 = vmul.f32 %v2056_v41, %v8846_v4  ;;  %v1685_v60 = vmul.f32 0.0078125, %v1604_v15  ;;  %v3143_v41 = vld [vmem:[#allocation2 + $0x58] sm:$0xff]  ;;  %v2078_v15 = vmul.f32 %v6838_v42, %v6764_v16  ;;  %v8852_v4 = vld [vmem:[#allocation82_spill] sm:$0xff] }
 0x2c5   :  { %v2581_v38 = vsel %vm6509_vm6, %v2528_v25, %v8847_v31  ;;  %v2731_v50 = vadd.f32 %v3140_v26, %v2528_v25  ;;  %v2429_v17 = vmul.f32 %v2046_v18, %v8850_v58  ;;  %v2059_v10 = vmul.f32 %v6823_v40, %v2058_v55  ;;  %v8853_v26 = vld [vmem:[#allocation105_spill] sm:$0xff]  ;;  %v8854_v58 = vld [vmem:[#allocation119_spill] sm:$0xff] }
 0x2c6   :  { %v2631_v59 = vadd.f32 %v3141_v53, %v2581_v38  ;;  %v2583_v6 = vsel %vm6509_vm6, %v2530_v14, %v8851_v34  ;;  %v2733_v11 = vadd.f32 %v3142_v51, %v2530_v14  ;;  %v2481_v47 = vmul.f32 %v6488_v9, %v2430_v20  ;;  %v8855_v53 = vld [vmem:[#allocation118_spill] sm:$0xff]  ;;  %v3145_v34 = vld [vmem:[#allocation2 + $0x68] sm:$0xff] }
 0x2c7   :  { %2781 = vst [vmem:[#allocation9 + $0x48] sm:$0xff] %v2731_v50  ;;  %v2633_v1 = vadd.f32 %v3143_v41, %v2583_v6  ;;  %v2480_v25 = vmul.f32 %v6488_v9, %v2429_v17  ;;  %v6855_v18 = vmul.f32 0.0078125, %v8852_v4  ;;  %vm2064_vm4 = vweird.f32 %v6823_v40  ;;  %v8856_v51 = vld [vmem:[#allocation15_spill] sm:$0xff]  ;;  %v3146_v41 = vld [vmem:[#allocation5 + $0x60] sm:$0xff] }
 0x2c8   :  { %2681 = vst [vmem:[#allocation8 + $0x48] sm:$0xff] %v2631_v59  ;;  %v2532_v31 = vadd.f32 %v6499_v35, %v2481_v47  ;;  %3000 = vrsqrt.f32 %v6821_v0  ;;  %v2060_v20 = vmul.f32 0.5, %v2059_v10  ;;  %v2079_v38 = vmul.f32 %v6838_v42, %v2078_v15  ;;  %v3147_v10 = vld [vmem:[#allocation2 + $0x60] sm:$0xff] }
 0x2c9   :  { %2683 = vst [vmem:[#allocation8 + $0x58] sm:$0xff] %v2633_v1  ;;  %v2531_v14 = vadd.f32 %v6499_v35, %v2480_v25  ;;  %v6862_v55 = vadd.f32 1e-05, %v1784_v52  ;;  %v1786_v17 = vsub.f32 %v1686_v44, %v8854_v58  ;;  %v1785_v59 = vsub.f32 %v1685_v60, %v8855_v53  ;;  %v1610_v25 = vpop.xlane.xlu0 %1609  ;;  %v8858_v58 = vld [vmem:[#allocation56_spill] sm:$0xff] }
 0x2ca   :  { %2783 = vst [vmem:[#allocation9 + $0x58] sm:$0xff] %v2733_v11  ;;  %v2585_v50 = vsel %vm6509_vm6, %v2532_v31, %v8853_v26  ;;  %v2735_v32 = vadd.f32 %v3144_v49, %v2532_v31  ;;  %v2061_v1 = vsub.f32 1.5, %v2060_v20  ;;  %v1612_v11 = vpop.xlane.xlu1 %1611  ;;  %vm2063_vm5 = vweird.f32 %v6762_v23 }
 0x2cb   :  { %v2635_v6 = vadd.f32 %v3145_v34, %v2585_v50  ;;  %v2584_v47 = vsel %vm6509_vm6, %v2531_v14, %v8856_v51  ;;  %v2734_v52 = vadd.f32 %v3146_v41, %v2531_v14  ;;  %v2080_v4 = vmul.f32 0.5, %v2079_v38  ;;  %v1614_v14 = vpop.xlane.xlu2 %1613  ;;  %vm2065_vm7 = vmor %vm2063_vm5, %vm2064_vm4  ;;  %v8862_v41 = vld [vmem:[#allocation137_spill] sm:$0xff] }
 0x2cc   :  { %2785 = vst [vmem:[#allocation9 + $0x68] sm:$0xff] %v2735_v32  ;;  %v2634_v15 = vadd.f32 %v3147_v10, %v2584_v47  ;;  %3002 = vrsqrt.f32 %v6862_v55  ;;  %v2062_v44 = vmul.f32 %v6823_v40, %v2061_v1  ;;  %v6875_v60 = vadd.f32 1e-05, %v1786_v17  ;;  %v8857_v32 = vld [vmem:[#allocation149_spill] sm:$0xff]  ;;  %v8863_v10 = vld [vmem:[#allocation27_spill] sm:$0xff] }
 0x2cd   :  { %2685 = vst [vmem:[#allocation8 + $0x68] sm:$0xff] %v2635_v6  ;;  %v6877_v31 = vadd.f32 1e-05, %v1785_v59  ;;  %v1687_v26 = vmul.f32 0.0078125, %v1608_v57  ;;  %v2081_v50 = vsub.f32 1.5, %v2080_v4  ;;  %vm2084_vm8 = vweird.f32 %v6838_v42  ;;  %v8860_v6 = vld [vmem:[#allocation142_spill] sm:$0xff] }
 0x2ce   :  { %v6879_v20 = vpop.eup %3000  ;;  %2684 = vst [vmem:[#allocation8 + $0x60] sm:$0xff] %v2634_v15  ;;  %v1689_v23 = vmul.f32 0.0078125, %v1612_v11  ;;  %v1688_v38 = vmul.f32 0.0078125, %v1610_v25  ;;  %v2066_v49 = vsel %vm2065_vm7, %v6823_v40, %v2062_v44  ;;  %vm2083_vm9 = vweird.f32 %v6764_v16  ;;  %v8861_v40 = vld [vmem:[#allocation68_spill] sm:$0xff]  ;;  %v8864_v4 = vld [vmem:[#allocation94_spill] sm:$0xff]  ;;  %v8865_v44 = vld [vmem:[#allocation97_spill] sm:$0xff] }
 0x2cf   :  { %2784 = vst [vmem:[#allocation9 + $0x60] sm:$0xff] %v2734_v52  ;;  %v2068_v57 = vmul.f32 %v6879_v20, %v6821_v0  ;;  %3004 = vrsqrt.f32 %v6875_v60  ;;  %v8859_v17 = vsub.f32 %v8857_v32, %v8858_v58  ;;  %v2082_v59 = vmul.f32 %v6838_v42, %v2081_v50  ;;  %vm2085_vm10 = vmor %vm2083_vm9, %vm2084_vm8 }
 0x2d0   :  { %3006 = vrsqrt.f32 %v6877_v31  ;;  %v1690_v34 = vmul.f32 0.0078125, %v1614_v14  ;;  %v6895_v51 = vmul.f32 0.0078125, %v8860_v6  ;;  %v1787_v47 = vsub.f32 %v1687_v26, %v8861_v40 }
 0x2d1   :  { %v2431_v53 = vmul.f32 %v2066_v49, %v8859_v17  ;;  %v2069_v16 = vmul.f32 %v6879_v20, %v2068_v57  ;;  %v1789_v52 = vsub.f32 %v1689_v23, %v8862_v41  ;;  %v2086_v25 = vsel %vm2085_vm10, %v6838_v42, %v2082_v59  ;;  %v8867_v57 = vld [vmem:[#allocation161_spill] sm:$0xff]  ;;  %v3148_v41 = vld [vmem:[#allocation5 + $0x70] sm:$0xff] }
 0x2d2   :  { %v6900_v1 = vpop.eup %3002  ;;  %vm2073_vm11 = vweird.f32 %v6821_v0  ;;  %v1788_v15 = vsub.f32 %v1688_v38, %v8863_v10  ;;  %v8866_v14 = vsub.f32 %v8864_v4, %v8865_v44  ;;  %vm2074_vm12 = vweird.f32 %v6879_v20 }
 0x2d3   :  { %v2482_v11 = vmul.f32 %v6488_v9, %v2431_v53  ;;  %v2070_v49 = vmul.f32 0.5, %v2069_v16  ;;  %v2088_v26 = vmul.f32 %v6900_v1, %v6862_v55  ;;  %vm2093_vm13 = vweird.f32 %v6862_v55  ;;  %v8868_v16 = vld [vmem:[#allocation106_spill] sm:$0xff]  ;;  %vm2075_vm15 = vmor %vm2073_vm11, %vm2074_vm12  ;;  %v8874_v55 = vld [vmem:[#allocation60_spill] sm:$0xff] }
 0x2d4   :  { %v2433_v50 = vmul.f32 %v2086_v25, %v8866_v14  ;;  %vm2094_vm14 = vweird.f32 %v6900_v1  ;;  %v6915_v42 = vadd.f32 1e-05, %v1787_v47  ;;  %v1790_v38 = vsub.f32 %v1690_v34, %v8867_v57  ;;  %v3149_v25 = vld [vmem:[#allocation2 + $0x70] sm:$0xff] }
 0x2d5   :  { %v2533_v23 = vadd.f32 %v6499_v35, %v2482_v11  ;;  %v6918_v32 = vpop.eup %3004  ;;  %v2071_v17 = vsub.f32 1.5, %v2070_v49  ;;  %v2089_v53 = vmul.f32 %v6900_v1, %v2088_v26  ;;  %v6922_v59 = vadd.f32 1e-05, %v1789_v52  ;;  %v8869_v49 = vld [vmem:[#allocation25_spill] sm:$0xff]  ;;  %vm2095_vm3 = vmor %vm2093_vm13, %vm2094_vm14 }
 0x2d6   :  { %v2484_v58 = vmul.f32 %v6488_v9, %v2433_v50  ;;  %v6924_v6 = vpop.eup %3006  ;;  %v2108_v34 = vmul.f32 %v6918_v32, %v6875_v60  ;;  %v6931_v11 = vadd.f32 1e-05, %v1788_v15  ;;  %3008 = vrsqrt.f32 %v6915_v42 }
 0x2d7   :  { %v2586_v40 = vsel %vm6509_vm6, %v2533_v23, %v8868_v16  ;;  %v2736_v47 = vadd.f32 %v3148_v41, %v2533_v23  ;;  %v2072_v52 = vmul.f32 %v6879_v20, %v2071_v17  ;;  %v2090_v44 = vmul.f32 0.5, %v2089_v53  ;;  %v3150_v23 = vld [vmem:[#allocation5 + $0x80] sm:$0xff]  ;;  %v3151_v17 = vld [vmem:[#allocation2 + $0x80] sm:$0xff]  ;;  %v8870_v16 = vld [vmem:[#allocation73_spill] sm:$0xff] }
 0x2d8   :  { %v2636_v10 = vadd.f32 %v3149_v25, %v2586_v40  ;;  %v2535_v4 = vadd.f32 %v6499_v35, %v2484_v58  ;;  %v2109_v14 = vmul.f32 %v6918_v32, %v2108_v34  ;;  %v2098_v50 = vmul.f32 %v6924_v6, %v6877_v31  ;;  %v8871_v40 = vld [vmem:[#allocation88_spill] sm:$0xff] }
 0x2d9   :  { %2786 = vst [vmem:[#allocation9 + $0x70] sm:$0xff] %v2736_v47  ;;  %v6943_v15 = vadd.f32 1e-05, %v1790_v38  ;;  %v2076_v58 = vsel %vm2075_vm15, %v6879_v20, %v2072_v52  ;;  %v2091_v0 = vsub.f32 1.5, %v2090_v44  ;;  %v8872_v41 = vsub.f32 %v8870_v16, %v8871_v40  ;;  %v1618_v52 = vpop.xlane.xlu1 %1617  ;;  %v3152_v40 = vld [vmem:[#allocation5 + $0x78] sm:$0xff] }
 0x2da   :  { %2686 = vst [vmem:[#allocation8 + $0x70] sm:$0xff] %v2636_v10  ;;  %v2588_v26 = vsel %vm6509_vm6, %v2535_v4, %v8869_v49  ;;  %v2738_v57 = vadd.f32 %v3150_v23, %v2535_v4  ;;  %v2110_v34 = vmul.f32 0.5, %v2109_v14  ;;  %v2099_v38 = vmul.f32 %v6924_v6, %v2098_v50  ;;  %v8873_v49 = vld [vmem:[#allocation122_spill] sm:$0xff] }
 0x2db   :  { %v2638_v53 = vadd.f32 %v3151_v17, %v2588_v26  ;;  %v2432_v47 = vmul.f32 %v2076_v58, %v8872_v41  ;;  %v2092_v25 = vmul.f32 %v6900_v1, %v2091_v0  ;;  %vm2113_vm0 = vweird.f32 %v6875_v60  ;;  %v1616_v17 = vpop.xlane.xlu0 %1615 }
 0x2dc   :  { %2788 = vst [vmem:[#allocation9 + $0x80] sm:$0xff] %v2738_v57  ;;  %vm2114_vm1 = vweird.f32 %v6918_v32  ;;  %3010 = vrsqrt.f32 %v6922_v59  ;;  %v2111_v10 = vsub.f32 1.5, %v2110_v34  ;;  %v2100_v4 = vmul.f32 0.5, %v2099_v38  ;;  %v6967_v14 = vpop.eup %3008  ;;  %v3153_v38 = vld [vmem:[#allocation2 + $0x78] sm:$0xff] }
 0x2dd   :  { %2688 = vst [vmem:[#allocation8 + $0x80] sm:$0xff] %v2638_v53  ;;  %v2483_v20 = vmul.f32 %v6488_v9, %v2432_v47  ;;  %3012 = vrsqrt.f32 %v6931_v11  ;;  %v2096_v44 = vsel %vm2095_vm3, %v6900_v1, %v2092_v25  ;;  %vm2103_vm4 = vweird.f32 %v6877_v31  ;;  %vm2115_vm7 = vmor %vm2113_vm0, %vm2114_vm1  ;;  %v8876_v53 = vld [vmem:[#allocation107_spill] sm:$0xff] }
 0x2de   :  { %vm2104_vm5 = vweird.f32 %v6924_v6  ;;  %3014 = vrsqrt.f32 %v6943_v15  ;;  %v8875_v26 = vsub.f32 %v8873_v49, %v8874_v55  ;;  %v2112_v57 = vmul.f32 %v6918_v32, %v2111_v10  ;;  %v8878_v10 = vld [vmem:[#allocation90_spill] sm:$0xff] }
 0x2df   :  { %v2534_v50 = vadd.f32 %v6499_v35, %v2483_v20  ;;  %v2101_v58 = vsub.f32 1.5, %v2100_v4  ;;  %v2118_v1 = vmul.f32 %v6967_v14, %v6915_v42  ;;  %vm2123_vm8 = vweird.f32 %v6915_v42  ;;  %v8877_v20 = vld [vmem:[#allocation140_spill] sm:$0xff]  ;;  %vm2105_vm10 = vmor %vm2103_vm4, %vm2104_vm5 }
 0x2e0   :  { %v2434_v23 = vmul.f32 %v2096_v44, %v8875_v26  ;;  %vm2124_vm9 = vweird.f32 %v6967_v14  ;;  %v1692_v0 = vmul.f32 0.0078125, %v1618_v52  ;;  %v2116_v60 = vsel %vm2115_vm7, %v6918_v32, %v2112_v57  ;;  %v8886_v42 = vld [vmem:[#allocation40_spill] sm:$0xff] }
 0x2e1   :  { %v2587_v16 = vsel %vm6509_vm6, %v2534_v50, %v8876_v53  ;;  %v2737_v41 = vadd.f32 %v3152_v40, %v2534_v50  ;;  %v8879_v4 = vsub.f32 %v8877_v20, %v8878_v10  ;;  %v2102_v52 = vmul.f32 %v6924_v6, %v2101_v58  ;;  %vm2125_vm14 = vmor %vm2123_vm8, %vm2124_vm9 }
 0x2e2   :  { %v2485_v47 = vmul.f32 %v6488_v9, %v2434_v23  ;;  %v6987_v34 = vpop.eup %3010  ;;  %v2637_v25 = vadd.f32 %v3153_v38, %v2587_v16  ;;  %v2119_v49 = vmul.f32 %v6967_v14, %v2118_v1  ;;  %vm2143_vm11 = vweird.f32 %v6922_v59  ;;  %v8880_v16 = vld [vmem:[#allocation108_spill] sm:$0xff] }
 0x2e3   :  { %v2436_v44 = vmul.f32 %v2116_v60, %v8879_v4  ;;  %v6994_v55 = vpop.eup %3012  ;;  %2787 = vst [vmem:[#allocation9 + $0x78] sm:$0xff] %v2737_v41  ;;  %v2138_v32 = vmul.f32 %v6987_v34, %v6922_v59  ;;  %v1792_v26 = vsub.f32 %v1692_v0, %v6323_v46  ;;  %v7005_v23 = vmul.f32 0.0078125, %v1616_v17  ;;  %v3154_v46 = vld [vmem:[#allocation5 + $0x88] sm:$0xff]  ;;  %v8881_v17 = vld [vmem:[#allocation36_spill] sm:$0xff]  ;;  %v8882_v41 = vld [vmem:[#allocation59_spill] sm:$0xff] }
 0x2e4   :  { %v2536_v50 = vadd.f32 %v6499_v35, %v2485_v47  ;;  %v7007_v57 = vpop.eup %3014  ;;  %2687 = vst [vmem:[#allocation8 + $0x78] sm:$0xff] %v2637_v25  ;;  %v2106_v1 = vsel %vm2105_vm10, %v6924_v6, %v2102_v52  ;;  %v2120_v53 = vmul.f32 0.5, %v2119_v49  ;;  %v2128_v31 = vmul.f32 %v6994_v55, %v6931_v11  ;;  %v1620_v25 = vpop.xlane.xlu2 %1619  ;;  %v3155_v6 = vld [vmem:[#allocation2 + $0x88] sm:$0xff] }
 0x2e5   :  { %v2487_v58 = vmul.f32 %v6488_v9, %v2436_v44  ;;  %vm2133_vm12 = vweird.f32 %v6931_v11  ;;  %v8883_v47 = vsub.f32 %v8881_v17, %v8882_v41  ;;  %v2139_v38 = vmul.f32 %v6987_v34, %v2138_v32  ;;  %v8894_v11 = vld [vmem:[#allocation23_spill] sm:$0xff] }
 0x2e6   :  { %v2589_v40 = vsel %vm6509_vm6, %v2536_v50, %v8880_v16  ;;  %v2739_v0 = vadd.f32 %v3154_v46, %v2536_v50  ;;  %v2121_v4 = vsub.f32 1.5, %v2120_v53  ;;  %v2129_v44 = vmul.f32 %v6994_v55, %v2128_v31  ;;  %v3156_v16 = vld [vmem:[#allocation5 + $0x98] sm:$0xff]  ;;  %v3157_v31 = vld [vmem:[#allocation2 + $0x98] sm:$0xff] }
 0x2e7   :  { %v2435_v60 = vmul.f32 %v2106_v1, %v8883_v47  ;;  %v2639_v20 = vadd.f32 %v3155_v6, %v2589_v40  ;;  %v2538_v10 = vadd.f32 %v6499_v35, %v2487_v58  ;;  %v2140_v49 = vmul.f32 0.5, %v2139_v38  ;;  %v8884_v1 = vld [vmem:[#allocation24_spill] sm:$0xff]  ;;  %v8885_v6 = vld [vmem:[#allocation65_spill] sm:$0xff] }
 0x2e8   :  { %2789 = vst [vmem:[#allocation9 + $0x88] sm:$0xff] %v2739_v0  ;;  %vm2144_vm13 = vweird.f32 %v6987_v34  ;;  %v2148_v50 = vmul.f32 %v7007_v57, %v6943_v15  ;;  %v2122_v58 = vmul.f32 %v6967_v14, %v2121_v4  ;;  %v2130_v53 = vmul.f32 0.5, %v2129_v44  ;;  %v8887_v44 = vld [vmem:[#allocation64_spill] sm:$0xff] }
 0x2e9   :  { %v2486_v52 = vmul.f32 %v6488_v9, %v2435_v60  ;;  %2689 = vst [vmem:[#allocation8 + $0x88] sm:$0xff] %v2639_v20  ;;  %v2591_v32 = vsel %vm6509_vm6, %v2538_v10, %v8884_v1  ;;  %v2741_v40 = vadd.f32 %v3156_v16, %v2538_v10  ;;  %v2141_v17 = vsub.f32 1.5, %v2140_v49  ;;  %v3158_v10 = vld [vmem:[#allocation5 + $0x90] sm:$0xff]  ;;  %v1624_v1 = vpop.xlane.xlu1 %1623  ;;  %vm2145_vm0 = vmor %vm2143_vm11, %vm2144_vm13 }
 0x2ea   :  { %v2641_v46 = vadd.f32 %v3157_v31, %v2591_v32  ;;  %v2149_v41 = vmul.f32 %v7007_v57, %v2148_v50  ;;  %v2126_v47 = vsel %vm2125_vm14, %v6967_v14, %v2122_v58  ;;  %v2131_v60 = vsub.f32 1.5, %v2130_v53  ;;  %v3159_v14 = vld [vmem:[#allocation2 + $0x90] sm:$0xff]  ;;  %v8889_v53 = vld [vmem:[#allocation159_spill] sm:$0xff] }
 0x2eb   :  { %v2537_v0 = vadd.f32 %v6499_v35, %v2486_v52  ;;  %2791 = vst [vmem:[#allocation9 + $0x98] sm:$0xff] %v2741_v40  ;;  %vm2134_vm15 = vweird.f32 %v6994_v55  ;;  %v7039_v38 = vadd.f32 1e-05, %v1792_v26  ;;  %v8888_v52 = vsub.f32 %v8886_v42, %v8887_v44  ;;  %v8890_v31 = vld [vmem:[#allocation139_spill] sm:$0xff] }
 0x2ec   :  { %2691 = vst [vmem:[#allocation8 + $0x98] sm:$0xff] %v2641_v46  ;;  %v2142_v50 = vmul.f32 %v6987_v34, %v2141_v17  ;;  %v2132_v26 = vmul.f32 %v6994_v55, %v2131_v60  ;;  %v2150_v16 = vmul.f32 0.5, %v2149_v41  ;;  %vm2135_vm1 = vmor %vm2133_vm12, %vm2134_vm15  ;;  %vm2154_vm3 = vweird.f32 %v7007_v57  ;;  %v8891_v46 = vld [vmem:[#allocation111_spill] sm:$0xff] }
 0x2ed   :  { %v2590_v20 = vsel %vm6509_vm6, %v2537_v0, %v8885_v6  ;;  %v2740_v4 = vadd.f32 %v3158_v10, %v2537_v0  ;;  %v2437_v49 = vmul.f32 %v2126_v47, %v8888_v52  ;;  %3016 = vrsqrt.f32 %v7039_v38 }
 0x2ee   :  { %v2640_v32 = vadd.f32 %v3159_v14, %v2590_v20  ;;  %v2146_v58 = vsel %vm2145_vm0, %v6987_v34, %v2142_v50  ;;  %v1791_v59 = vsub.f32 %v7005_v23, %v8889_v53  ;;  %v8892_v0 = vsub.f32 %v8890_v31, %v8891_v46  ;;  %v1622_v34 = vpop.xlane.xlu0 %1621  ;;  %v8893_v20 = vld [vmem:[#allocation144_spill] sm:$0xff]  ;;  %v1626_v23 = vpop.xlane.xlu2 %1625  ;;  %v8898_v31 = vld [vmem:[#allocation39_spill] sm:$0xff]  ;;  %v8899_v46 = vld [vmem:[#allocation29_spill] sm:$0xff] }
 0x2ef   :  { %2790 = vst [vmem:[#allocation9 + $0x90] sm:$0xff] %v2740_v4  ;;  %v2488_v40 = vmul.f32 %v6488_v9, %v2437_v49  ;;  %v2136_v41 = vsel %vm2135_vm1, %v6994_v55, %v2132_v26  ;;  %v2151_v47 = vsub.f32 1.5, %v2150_v16  ;;  %v1693_v60 = vmul.f32 0.0078125, %v1620_v25  ;;  %v8896_v25 = vld [vmem:[#allocation67_spill] sm:$0xff]  ;;  %v3160_v14 = vld [vmem:[#allocation5 + $0xa0] sm:$0xff]  ;;  %v8897_v16 = vld [vmem:[#allocation86_spill] sm:$0xff] }
 0x2f0   :  { %2690 = vst [vmem:[#allocation8 + $0x90] sm:$0xff] %v2640_v32  ;;  %v2439_v17 = vmul.f32 %v2146_v58, %v8892_v0  ;;  %v8895_v10 = vsub.f32 %v8893_v20, %v8894_v11  ;;  %vm2153_vm4 = vweird.f32 %v6943_v15  ;;  %v7072_v42 = vadd.f32 1e-05, %v1791_v59  ;;  %v3162_v20 = vld [vmem:[#allocation5 + $0xb0] sm:$0xff] }
 0x2f1   :  { %v2539_v6 = vadd.f32 %v6499_v35, %v2488_v40  ;;  %v2152_v52 = vmul.f32 %v7007_v57, %v2151_v47  ;;  %v1793_v55 = vsub.f32 %v1693_v60, %v6341_v56  ;;  %v1695_v49 = vmul.f32 0.0078125, %v1624_v1  ;;  %vm2155_vm5 = vmor %vm2153_vm4, %vm2154_vm3  ;;  %v3161_v56 = vld [vmem:[#allocation2 + $0xa0] sm:$0xff]  ;;  %v8901_v60 = vld [vmem:[#allocation69_spill] sm:$0xff] }
 0x2f2   :  { %v2438_v4 = vmul.f32 %v2136_v41, %v8895_v10  ;;  %v2490_v44 = vmul.f32 %v6488_v9, %v2439_v17  ;;  %3018 = vrsqrt.f32 %v7072_v42  ;;  %v7087_v40 = vmul.f32 0.0078125, %v8897_v16 }
 0x2f3   :  { %v2592_v50 = vsel %vm6509_vm6, %v2539_v6, %v8896_v25  ;;  %v2742_v32 = vadd.f32 %v3160_v14, %v2539_v6  ;;  %v7084_v15 = vpop.eup %3016  ;;  %v2156_v53 = vsel %vm2155_vm5, %v7007_v57, %v2152_v52  ;;  %v8900_v0 = vsub.f32 %v8898_v31, %v8899_v46  ;;  %v8902_v52 = vld [vmem:[#allocation22_spill] sm:$0xff] }
 0x2f4   :  { %v2489_v26 = vmul.f32 %v6488_v9, %v2438_v4  ;;  %v2642_v1 = vadd.f32 %v3161_v56, %v2592_v50  ;;  %v2541_v58 = vadd.f32 %v6499_v35, %v2490_v44  ;;  %v2168_v41 = vmul.f32 %v7084_v15, %v7039_v38  ;;  %v3163_v4 = vld [vmem:[#allocation2 + $0xb0] sm:$0xff]  ;;  %v3164_v50 = vld [vmem:[#allocation5 + $0xa8] sm:$0xff] }
 0x2f5   :  { %2792 = vst [vmem:[#allocation9 + $0xa0] sm:$0xff] %v2742_v32  ;;  %v2440_v17 = vmul.f32 %v2156_v53, %v8900_v0  ;;  %v1694_v47 = vmul.f32 0.0078125, %v1622_v34  ;;  %v7100_v10 = vadd.f32 1e-05, %v1793_v55  ;;  %v1795_v57 = vsub.f32 %v1695_v49, %v6347_v27  ;;  %v1630_v32 = vpop.xlane.xlu1 %1629  ;;  %v3165_v55 = vld [vmem:[#allocation2 + $0xa8] sm:$0xff] }
 0x2f6   :  { %v2540_v59 = vadd.f32 %v6499_v35, %v2489_v26  ;;  %2692 = vst [vmem:[#allocation8 + $0xa0] sm:$0xff] %v2642_v1  ;;  %v2594_v6 = vsel %vm6509_vm6, %v2541_v58, %v8901_v60  ;;  %v2744_v11 = vadd.f32 %v3162_v20, %v2541_v58  ;;  %v7109_v26 = vmul.f32 %v6855_v18, %v6855_v18  ;;  %v8903_v60 = vld [vmem:[#allocation125_spill] sm:$0xff]  ;;  %v3167_v20 = vld [vmem:[#allocation5 + $0xb8] sm:$0xff] }
 0x2f7   :  { %v2644_v44 = vadd.f32 %v3163_v4, %v2594_v6  ;;  %v2491_v34 = vmul.f32 %v6488_v9, %v2440_v17  ;;  %v2169_v27 = vmul.f32 %v7084_v15, %v2168_v41  ;;  %3020 = vrsqrt.f32 %v7100_v10  ;;  %v1628_v41 = vpop.xlane.xlu0 %1627 }
 0x2f8   :  { %v2593_v25 = vsel %vm6509_vm6, %v2540_v59, %v8902_v52  ;;  %v2743_v14 = vadd.f32 %v3164_v50, %v2540_v59  ;;  %2794 = vst [vmem:[#allocation9 + $0xb0] sm:$0xff] %v2744_v11  ;;  %v7113_v49 = vpop.eup %3018  ;;  %v7116_v1 = vadd.f32 1e-05, %v1795_v57  ;;  %v1794_v58 = vsub.f32 %v1694_v47, %v6335_v45  ;;  %v7119_v59 = vld [vmem:[#allocation5 + $0x168] sm:$0xff] }
 0x2f9   :  { %v2643_v16 = vadd.f32 %v3165_v55, %v2593_v25  ;;  %2694 = vst [vmem:[#allocation8 + $0xb0] sm:$0xff] %v2644_v44  ;;  %v2542_v56 = vadd.f32 %v6499_v35, %v2491_v34  ;;  %v1696_v53 = vmul.f32 0.0078125, %v1626_v23  ;;  %v1862_v31 = vsub.f32 %v7119_v59, %v6855_v18  ;;  %v1632_v23 = vpop.xlane.xlu2 %1631  ;;  %v3168_v47 = vld [vmem:[#allocation2 + $0xb8] sm:$0xff] }
 0x2fa   :  { %v2170_v46 = vmul.f32 0.5, %v2169_v27  ;;  %v2158_v0 = vmul.f32 %v7113_v49, %v7072_v42  ;;  %v1698_v17 = vmul.f32 0.0078125, %v1630_v32  ;;  %2793 = vst [vmem:[#allocation9 + $0xa8] sm:$0xff] %v2743_v14  ;;  %vm2174_vm7 = vweird.f32 %v7084_v15 }
 0x2fb   :  { %2693 = vst [vmem:[#allocation8 + $0xa8] sm:$0xff] %v2643_v16  ;;  %v2595_v6 = vsel %vm6509_vm6, %v2542_v56, %v8903_v60  ;;  %v2745_v45 = vadd.f32 %v3167_v20, %v2542_v56  ;;  %3022 = vrsqrt.f32 %v7116_v1  ;;  %v7131_v44 = vadd.f32 1e-05, %v1794_v58 }
 0x2fc   :  { %v2645_v11 = vadd.f32 %v3168_v47, %v2595_v6  ;;  %v2171_v57 = vsub.f32 1.5, %v2170_v46  ;;  %v2159_v4 = vmul.f32 %v7113_v49, %v2158_v0  ;;  %vm2173_vm8 = vweird.f32 %v7039_v38 }
 0x2fd   :  { %2795 = vst [vmem:[#allocation9 + $0xb8] sm:$0xff] %v2745_v45  ;;  %v1796_v52 = vsub.f32 %v1696_v53, %v6362_v36  ;;  %v1798_v25 = vsub.f32 %v1698_v17, %v6371_v19  ;;  %v1697_v50 = vmul.f32 0.0078125, %v1628_v41  ;;  %v7136_v14 = vpop.eup %3020  ;;  %3024 = vrsqrt.f32 %v7131_v44  ;;  %vm2175_vm9 = vmor %vm2173_vm8, %vm2174_vm7  ;;  %v8904_v53 = vld [vmem:[#allocation135_spill] sm:$0xff]  ;;  %v1636_v20 = vpop.xlane.xlu1 %1635 }
 0x2fe   :  { %2695 = vst [vmem:[#allocation8 + $0xb8] sm:$0xff] %v2645_v11  ;;  %v2172_v34 = vmul.f32 %v7084_v15, %v2171_v57  ;;  %v2160_v32 = vmul.f32 0.5, %v2159_v4  ;;  %v1699_v55 = vmul.f32 0.0078125, %v1632_v23  ;;  %vm2163_vm10 = vweird.f32 %v7072_v42  ;;  %v8906_v42 = vld [vmem:[#allocation124_spill] sm:$0xff]  ;;  %v8907_v11 = vld [vmem:[#allocation66_spill] sm:$0xff] }
 0x2ff   :  { %v2178_v36 = vmul.f32 %v7136_v14, %v7100_v10  ;;  %v7145_v38 = vadd.f32 1e-05, %v1796_v52  ;;  %v7147_v19 = vadd.f32 1e-05, %v1798_v25  ;;  %vm2164_vm11 = vweird.f32 %v7113_v49 }
 0x300   :  { %v2176_v16 = vsel %vm2175_vm9, %v7084_v15, %v2172_v34  ;;  %v2161_v27 = vsub.f32 1.5, %v2160_v32  ;;  %v1797_v56 = vsub.f32 %v1697_v50, %v6356_v2  ;;  %v8905_v46 = vsub.f32 %v8780_v29, %v8904_v53  ;;  %vm2165_vm13 = vmor %vm2163_vm10, %vm2164_vm11 }
 0x301   :  { %v7152_v58 = vpop.eup %3022  ;;  %v2179_v17 = vmul.f32 %v7136_v14, %v2178_v36  ;;  %vm2183_vm12 = vweird.f32 %v7100_v10  ;;  %3026 = vrsqrt.f32 %v7145_v38  ;;  %v1799_v2 = vsub.f32 %v1699_v55, %v6386_v63  ;;  %v8909_v55 = vld [vmem:[#allocation134_spill] sm:$0xff] }
 0x302   :  { %v2442_v0 = vmul.f32 %v2176_v16, %v8905_v46  ;;  %v2162_v41 = vmul.f32 %v7113_v49, %v2161_v27  ;;  %v2198_v15 = vmul.f32 %v7152_v58, %v7116_v1  ;;  %3028 = vrsqrt.f32 %v7147_v19  ;;  %v3169_v16 = vld [vmem:[#allocation5 + $0xc8] sm:$0xff]  ;;  %v8910_v10 = vld [vmem:[#allocation130_spill] sm:$0xff] }
 0x303   :  { %v2180_v29 = vmul.f32 0.5, %v2179_v17  ;;  %vm2203_vm14 = vweird.f32 %v7116_v1  ;;  %v7169_v6 = vadd.f32 1e-05, %v1797_v56  ;;  %v7171_v45 = vpop.eup %3024  ;;  %vm2184_vm15 = vweird.f32 %v7136_v14 }
 0x304   :  { %v2493_v60 = vmul.f32 %v6488_v9, %v2442_v0  ;;  %v2166_v23 = vsel %vm2165_vm13, %v7113_v49, %v2162_v41  ;;  %v2199_v47 = vmul.f32 %v7152_v58, %v2198_v15  ;;  %vm2204_vm0 = vweird.f32 %v7152_v58  ;;  %v3170_v0 = vld [vmem:[#allocation2 + $0xc8] sm:$0xff]  ;;  %vm2185_vm3 = vmor %vm2183_vm12, %vm2184_vm15 }
 0x305   :  { %v8908_v57 = vsub.f32 %v8906_v42, %v8907_v11  ;;  %v2181_v52 = vsub.f32 1.5, %v2180_v29  ;;  %v2188_v25 = vmul.f32 %v7171_v45, %v7131_v44  ;;  %vm2193_vm1 = vweird.f32 %v7131_v44  ;;  %vm2205_vm8 = vmor %vm2203_vm14, %vm2204_vm0  ;;  %v8917_v44 = vld [vmem:[#allocation16_spill] sm:$0xff] }
 0x306   :  { %v2544_v63 = vadd.f32 %v6499_v35, %v2493_v60  ;;  %v2200_v50 = vmul.f32 0.5, %v2199_v47  ;;  %3030 = vrsqrt.f32 %v7169_v6  ;;  %v7185_v49 = vadd.f32 1e-05, %v1799_v2 }
 0x307   :  { %v2441_v4 = vmul.f32 %v2166_v23, %v8908_v57  ;;  %v7187_v34 = vmul.f32 0.0078125, %v1636_v20  ;;  %v7189_v32 = vpop.eup %3026  ;;  %v2182_v53 = vmul.f32 %v7136_v14, %v2181_v52  ;;  %v2189_v15 = vmul.f32 %v7171_v45, %v2188_v25  ;;  %v1634_v25 = vpop.xlane.xlu0 %1633 }
 0x308   :  { %v2597_v36 = vsel %vm6509_vm6, %v2544_v63, %v8909_v55  ;;  %v2747_v27 = vadd.f32 %v3169_v16, %v2544_v63  ;;  %v7196_v46 = vpop.eup %3028  ;;  %v2201_v41 = vsub.f32 1.5, %v2200_v50  ;;  %v2208_v2 = vmul.f32 %v7189_v32, %v7145_v38  ;;  %v3172_v55 = vld [vmem:[#allocation2 + $0xc0] sm:$0xff] }
 0x309   :  { %v2492_v56 = vmul.f32 %v6488_v9, %v2441_v4  ;;  %v2647_v17 = vadd.f32 %v3170_v0, %v2597_v36  ;;  %v2186_v29 = vsel %vm2185_vm3, %v7136_v14, %v2182_v53  ;;  %vm2194_vm4 = vweird.f32 %v7171_v45  ;;  %v8912_v14 = vld [vmem:[#allocation129_spill] sm:$0xff]  ;;  %v3171_v4 = vld [vmem:[#allocation5 + $0xc0] sm:$0xff]  ;;  %v8914_v0 = vld [vmem:[#allocation35_spill] sm:$0xff] }
 0x30a   :  { %2797 = vst [vmem:[#allocation9 + $0xc8] sm:$0xff] %v2747_v27  ;;  %vm2213_vm5 = vweird.f32 %v7145_v38  ;;  %v2228_v20 = vmul.f32 %v7196_v46, %v7147_v19  ;;  %v8911_v23 = vsub.f32 %v5752_v54, %v8910_v10  ;;  %v2202_v63 = vmul.f32 %v7152_v58, %v2201_v41  ;;  %v8913_v53 = vld [vmem:[#allocation141_spill] sm:$0xff]  ;;  %vm2195_vm11 = vmor %vm2193_vm1, %vm2194_vm4 }
 0x30b   :  { %v2543_v60 = vadd.f32 %v6499_v35, %v2492_v56  ;;  %2697 = vst [vmem:[#allocation8 + $0xc8] sm:$0xff] %v2647_v17  ;;  %v2190_v42 = vmul.f32 0.5, %v2189_v15  ;;  %v2209_v11 = vmul.f32 %v7189_v32, %v2208_v2  ;;  %vm2233_vm7 = vweird.f32 %v7147_v19 }
 0x30c   :  { %v2443_v47 = vmul.f32 %v2186_v29, %v8911_v23  ;;  %vm2214_vm9 = vweird.f32 %v7189_v32  ;;  %v2229_v54 = vmul.f32 %v7196_v46, %v2228_v20  ;;  %v7226_v50 = vpop.eup %3030  ;;  %v2206_v27 = vsel %vm2205_vm8, %v7152_v58, %v2202_v63 }
 0x30d   :  { %v2596_v57 = vsel %vm6509_vm6, %v2543_v60, %v8912_v14  ;;  %v2746_v52 = vadd.f32 %v3171_v4, %v2543_v60  ;;  %v2191_v56 = vsub.f32 1.5, %v2190_v42  ;;  %v8915_v17 = vsub.f32 %v8913_v53, %v8914_v0  ;;  %v3173_v42 = vld [vmem:[#allocation5 + $0xd0] sm:$0xff]  ;;  %vm2215_vm13 = vmor %vm2213_vm5, %vm2214_vm9 }
 0x30e   :  { %v2646_v36 = vadd.f32 %v3172_v55, %v2596_v57  ;;  %v2494_v16 = vmul.f32 %v6488_v9, %v2443_v47  ;;  %v2210_v41 = vmul.f32 0.5, %v2209_v11  ;;  %v2230_v15 = vmul.f32 0.5, %v2229_v54  ;;  %v8916_v47 = vld [vmem:[#allocation30_spill] sm:$0xff]  ;;  %v3174_v57 = vld [vmem:[#allocation2 + $0xd0] sm:$0xff] }
 0x30f   :  { %2796 = vst [vmem:[#allocation9 + $0xc0] sm:$0xff] %v2746_v52  ;;  %v2445_v1 = vmul.f32 %v2206_v27, %v8915_v17  ;;  %v2218_v2 = vmul.f32 %v7226_v50, %v7169_v6  ;;  %v2192_v29 = vmul.f32 %v7171_v45, %v2191_v56  ;;  %vm2234_vm10 = vweird.f32 %v7196_v46  ;;  %v8918_v54 = vld [vmem:[#allocation70_spill] sm:$0xff]  ;;  %v1638_v27 = vpop.xlane.xlu2 %1637  ;;  %v7255_v56 = vpop.xlane.xlu1 %1641 }
 0x310   :  { %2696 = vst [vmem:[#allocation8 + $0xc0] sm:$0xff] %v2646_v36  ;;  %v2545_v60 = vadd.f32 %v6499_v35, %v2494_v16  ;;  %3032 = vrsqrt.f32 %v7185_v49  ;;  %v2211_v20 = vsub.f32 1.5, %v2210_v41  ;;  %v2231_v10 = vsub.f32 1.5, %v2230_v15  ;;  %v3175_v15 = vld [vmem:[#allocation5 + $0xe0] sm:$0xff]  ;;  %vm2235_vm14 = vmor %vm2233_vm7, %vm2234_vm10 }
 0x311   :  { %v2496_v58 = vmul.f32 %v6488_v9, %v2445_v1  ;;  %v2219_v23 = vmul.f32 %v7226_v50, %v2218_v2  ;;  %v2196_v14 = vsel %vm2195_vm11, %v7171_v45, %v2192_v29  ;;  %vm2224_vm12 = vweird.f32 %v7226_v50  ;;  %v8920_v1 = vld [vmem:[#allocation91_spill] sm:$0xff] }
 0x312   :  { %v2598_v63 = vsel %vm6509_vm6, %v2545_v60, %v8916_v47  ;;  %v2748_v11 = vadd.f32 %v3173_v42, %v2545_v60  ;;  %v8919_v55 = vsub.f32 %v8917_v44, %v8918_v54  ;;  %v2212_v16 = vmul.f32 %v7189_v32, %v2211_v20  ;;  %v8925_v42 = vld [vmem:[#allocation75_spill] sm:$0xff] }
 0x313   :  { %v2648_v4 = vadd.f32 %v3174_v57, %v2598_v63  ;;  %v2547_v52 = vadd.f32 %v6499_v35, %v2496_v58  ;;  %v2232_v45 = vmul.f32 %v7196_v46, %v2231_v10  ;;  %v2220_v53 = vmul.f32 0.5, %v2219_v23  ;;  %v8922_v58 = vld [vmem:[#allocation153_spill] sm:$0xff]  ;;  %v1640_v57 = vpop.xlane.xlu0 %1639  ;;  %v8927_v44 = vld [vmem:[#allocation43_spill] sm:$0xff] }
 0x314   :  { %v2444_v36 = vmul.f32 %v2196_v14, %v8919_v55  ;;  %2798 = vst [vmem:[#allocation9 + $0xd0] sm:$0xff] %v2748_v11  ;;  %v1801_v0 = vsub.f32 %v7187_v34, %v6395_v5  ;;  %v1700_v17 = vmul.f32 0.0078125, %v1634_v25  ;;  %v2216_v29 = vsel %vm2215_vm13, %v7189_v32, %v2212_v16  ;;  %v3176_v5 = vld [vmem:[#allocation2 + $0xe0] sm:$0xff]  ;;  %v8928_v55 = vld [vmem:[#allocation128_spill] sm:$0xff]  ;;  %v3177_v16 = vld [vmem:[#allocation5 + $0xd8] sm:$0xff] }
 0x315   :  { %2698 = vst [vmem:[#allocation8 + $0xd0] sm:$0xff] %v2648_v4  ;;  %v2600_v41 = vsel %vm6509_vm6, %v2547_v52, %v8920_v1  ;;  %v2750_v2 = vadd.f32 %v3175_v15, %v2547_v52  ;;  %v8921_v25 = vld [vmem:[#allocation42_spill] sm:$0xff]  ;;  %v2236_v23 = vsel %vm2235_vm14, %v7196_v46, %v2232_v45  ;;  %v2221_v47 = vsub.f32 1.5, %v2220_v53  ;;  %v3178_v1 = vld [vmem:[#allocation2 + $0xd8] sm:$0xff] }
 0x316   :  { %v2495_v60 = vmul.f32 %v6488_v9, %v2444_v36  ;;  %v7273_v38 = vpop.eup %3032  ;;  %v2650_v34 = vadd.f32 %v3176_v5, %v2600_v41  ;;  %v8923_v20 = vsub.f32 %v8921_v25, %v8922_v58  ;;  %v8924_v32 = vld [vmem:[#allocation46_spill] sm:$0xff]  ;;  %vm2223_vm15 = vweird.f32 %v7169_v6  ;;  %v8932_v58 = vld [vmem:[#allocation121_spill] sm:$0xff] }
 0x317   :  { %2800 = vst [vmem:[#allocation9 + $0xe0] sm:$0xff] %v2750_v2  ;;  %v8926_v11 = vsub.f32 %v8924_v32, %v8925_v42  ;;  %v2238_v19 = vmul.f32 %v7273_v38, %v7185_v49  ;;  %v2222_v52 = vmul.f32 %v7226_v50, %v2221_v47  ;;  %v7288_v46 = vadd.f32 1e-05, %v1801_v0  ;;  %vm2225_vm0 = vmor %vm2223_vm15, %vm2224_vm12  ;;  %v8933_v42 = vld [vmem:[#allocation99_spill] sm:$0xff] }
 0x318   :  { %v2446_v10 = vmul.f32 %v2216_v29, %v8923_v20  ;;  %v2546_v63 = vadd.f32 %v6499_v35, %v2495_v60  ;;  %2700 = vst [vmem:[#allocation8 + $0xe0] sm:$0xff] %v2650_v34  ;;  %v1800_v54 = vsub.f32 %v1700_v17, %v8927_v44  ;;  %v7303_v17 = vmul.f32 %v6895_v51, %v6895_v51  ;;  %v8929_v60 = vld [vmem:[#allocation150_spill] sm:$0xff]  ;;  %v8930_v29 = vld [vmem:[#allocation72_spill] sm:$0xff]  ;;  %v1648_v44 = vpop.xlane.xlu1 %1647 }
 0x319   :  { %v2448_v14 = vmul.f32 %v2236_v23, %v8926_v11  ;;  %v2239_v53 = vmul.f32 %v7273_v38, %v2238_v19  ;;  %v2226_v15 = vsel %vm2225_vm0, %v7226_v50, %v2222_v52  ;;  %3034 = vrsqrt.f32 %v7288_v46  ;;  %v3179_v50 = vld [vmem:[#allocation5 + $0xe8] sm:$0xff]  ;;  %v1644_v52 = vpop.xlane.xlu2 %1643 }
 0x31a   :  { %v2497_v4 = vmul.f32 %v6488_v9, %v2446_v10  ;;  %v2599_v36 = vsel %vm6509_vm6, %v2546_v63, %v8928_v55  ;;  %v2749_v45 = vadd.f32 %v3177_v16, %v2546_v63  ;;  %v8931_v5 = vsub.f32 %v8929_v60, %v8930_v29  ;;  %v3180_v63 = vld [vmem:[#allocation2 + $0xe8] sm:$0xff]  ;;  %v3182_v55 = vld [vmem:[#allocation2 + $0xf8] sm:$0xff]  ;;  %v8934_v60 = vld [vmem:[#allocation132_spill] sm:$0xff] }
 0x31b   :  { %v2499_v6 = vmul.f32 %v6488_v9, %v2448_v14  ;;  %v2649_v41 = vadd.f32 %v3178_v1, %v2599_v36  ;;  %v2240_v25 = vmul.f32 0.5, %v2239_v53  ;;  %v7312_v23 = vadd.f32 1e-05, %v1800_v54  ;;  %v3181_v14 = vld [vmem:[#allocation5 + $0xf8] sm:$0xff]  ;;  %v1646_v29 = vpop.xlane.xlu0 %1645 }
 0x31c   :  { %v2548_v0 = vadd.f32 %v6499_v35, %v2497_v4  ;;  %2799 = vst [vmem:[#allocation9 + $0xd8] sm:$0xff] %v2749_v45  ;;  %v2447_v34 = vmul.f32 %v2226_v15, %v8931_v5  ;;  %v1702_v47 = vmul.f32 0.0078125, %v1638_v27  ;;  %vm2244_vm1 = vweird.f32 %v7273_v38  ;;  %v7327_v15 = vld [vmem:[#allocation5 + $0x160] sm:$0xff] }
 0x31d   :  { %v2550_v2 = vadd.f32 %v6499_v35, %v2499_v6  ;;  %2699 = vst [vmem:[#allocation8 + $0xd8] sm:$0xff] %v2649_v41  ;;  %v2241_v16 = vsub.f32 1.5, %v2240_v25  ;;  %3036 = vrsqrt.f32 %v7312_v23  ;;  %v1704_v45 = vmul.f32 0.0078125, %v7255_v56  ;;  %v3184_v56 = vld [vmem:[#allocation5 + $0xf0] sm:$0xff]  ;;  %v3185_v5 = vld [vmem:[#allocation2 + $0xf0] sm:$0xff] }
 0x31e   :  { %v2601_v20 = vsel %vm6509_vm6, %v2548_v0, %v8932_v58  ;;  %v2751_v10 = vadd.f32 %v3179_v50, %v2548_v0  ;;  %v2498_v4 = vmul.f32 %v6488_v9, %v2447_v34  ;;  %v1802_v54 = vsub.f32 %v1702_v47, %v6417_v30  ;;  %v8935_v50 = vld [vmem:[#allocation41_spill] sm:$0xff] }
 0x31f   :  { %v2651_v32 = vadd.f32 %v3180_v63, %v2601_v20  ;;  %v2603_v11 = vsel %vm6509_vm6, %v2550_v2, %v8933_v42  ;;  %v2753_v19 = vadd.f32 %v3181_v14, %v2550_v2  ;;  %v1703_v6 = vmul.f32 0.0078125, %v1640_v57  ;;  %v7323_v53 = vpop.eup %3034 }
 0x320   :  { %2801 = vst [vmem:[#allocation9 + $0xe8] sm:$0xff] %v2751_v10  ;;  %v2653_v36 = vadd.f32 %v3182_v55, %v2603_v11  ;;  %v2549_v27 = vadd.f32 %v6499_v35, %v2498_v4  ;;  %v2242_v1 = vmul.f32 %v7273_v38, %v2241_v16  ;;  %vm2243_vm3 = vweird.f32 %v7185_v49 }
 0x321   :  { %2701 = vst [vmem:[#allocation8 + $0xe8] sm:$0xff] %v2651_v32  ;;  %v1705_v41 = vmul.f32 0.0078125, %v1644_v52  ;;  %v1707_v0 = vmul.f32 0.0078125, %v1648_v44  ;;  %v1861_v2 = vsub.f32 %v7327_v15, %v6895_v51  ;;  %vm2245_vm4 = vmor %vm2243_vm3, %vm2244_vm1  ;;  %v2258_v49 = vmul.f32 %v7323_v53, %v7288_v46 }
 0x322   :  { %2703 = vst [vmem:[#allocation8 + $0xf8] sm:$0xff] %v2653_v36  ;;  %v2602_v30 = vsel %vm6509_vm6, %v2549_v27, %v8934_v60  ;;  %v2752_v57 = vadd.f32 %v3184_v56, %v2549_v27  ;;  %v2246_v25 = vsel %vm2245_vm4, %v7273_v38, %v2242_v1  ;;  %v7339_v58 = vadd.f32 1e-05, %v1802_v54  ;;  %v3186_v1 = vld [vmem:[#allocation5 + $0x100] sm:$0xff] }
 0x323   :  { %2803 = vst [vmem:[#allocation9 + $0xf8] sm:$0xff] %v2753_v19  ;;  %v2652_v34 = vadd.f32 %v3185_v5, %v2602_v30  ;;  %v1804_v20 = vsub.f32 %v1704_v45, %v6426_v37  ;;  %v8936_v10 = vsub.f32 %v5934_v12, %v8935_v50  ;;  %v2259_v63 = vmul.f32 %v7323_v53, %v2258_v49  ;;  %v7348_v11 = vpop.eup %3036  ;;  %v8938_v45 = vld [vmem:[#allocation138_spill] sm:$0xff]  ;;  %v1650_v30 = vpop.xlane.xlu2 %1649 }
 0x324   :  { %2802 = vst [vmem:[#allocation9 + $0xf0] sm:$0xff] %v2752_v57  ;;  %v1803_v32 = vsub.f32 %v1703_v6, %v6409_v8  ;;  %v1805_v42 = vsub.f32 %v1705_v41, %v6452_v24  ;;  %3038 = vrsqrt.f32 %v7339_v58  ;;  %v1807_v37 = vsub.f32 %v1707_v0, %v6459_v13  ;;  %v8937_v24 = vld [vmem:[#allocation120_spill] sm:$0xff]  ;;  %v3187_v57 = vld [vmem:[#allocation2 + $0x100] sm:$0xff] }
 0x325   :  { %v2449_v47 = vmul.f32 %v2246_v25, %v8936_v10  ;;  %2702 = vst [vmem:[#allocation8 + $0xf0] sm:$0xff] %v2652_v34  ;;  %v7351_v38 = vadd.f32 1e-05, %v1804_v20  ;;  %v1706_v14 = vmul.f32 0.0078125, %v1646_v29  ;;  %v7356_v12 = vmul.f32 %v7087_v40, %v7087_v40 }
 0x326   :  { %v2260_v4 = vmul.f32 0.5, %v2259_v63  ;;  %v2248_v8 = vmul.f32 %v7348_v11, %v7312_v23  ;;  %v7362_v52 = vmul.f32 0.0078125, %v8937_v24  ;;  %v7365_v44 = vadd.f32 1e-05, %v1803_v32  ;;  %v1654_v63 = vpop.xlane.xlu1 %1653  ;;  %v8941_v24 = vld [vmem:[#allocation74_spill] sm:$0xff] }
 0x327   :  { %v2500_v19 = vmul.f32 %v6488_v9, %v2449_v47  ;;  %3040 = vrsqrt.f32 %v7351_v38  ;;  %v7367_v55 = vadd.f32 1e-05, %v1805_v42  ;;  %vm2264_vm5 = vweird.f32 %v7323_v53 }
 0x328   :  { %v2261_v36 = vsub.f32 1.5, %v2260_v4  ;;  %v2249_v16 = vmul.f32 %v7348_v11, %v2248_v8  ;;  %vm2263_vm7 = vweird.f32 %v7288_v46  ;;  %3042 = vrsqrt.f32 %v7365_v44  ;;  %v8940_v8 = vld [vmem:[#allocation49_spill] sm:$0xff] }
 0x329   :  { %v2551_v13 = vadd.f32 %v6499_v35, %v2500_v19  ;;  %v7374_v27 = vadd.f32 1e-05, %v1807_v37  ;;  %v1806_v54 = vsub.f32 %v1706_v14, %v6436_v48  ;;  %vm2265_vm8 = vmor %vm2263_vm7, %vm2264_vm5  ;;  %vm2253_vm9 = vweird.f32 %v7312_v23 }
 0x32a   :  { %v2262_v0 = vmul.f32 %v7323_v53, %v2261_v36  ;;  %v2250_v60 = vmul.f32 0.5, %v2249_v16  ;;  %v7381_v56 = vpop.eup %3038  ;;  %3044 = vrsqrt.f32 %v7367_v55  ;;  %vm2254_vm10 = vweird.f32 %v7348_v11 }
 0x32b   :  { %v2604_v6 = vsel %vm6509_vm6, %v2551_v13, %v8938_v45  ;;  %v2754_v41 = vadd.f32 %v3186_v1, %v2551_v13  ;;  %v7387_v48 = vadd.f32 1e-05, %v1806_v54  ;;  %v2268_v5 = vmul.f32 %v7381_v56, %v7339_v58  ;;  %vm2255_vm14 = vmor %vm2253_vm9, %vm2254_vm10  ;;  %v8943_v1 = vld [vmem:[#allocation76_spill] sm:$0xff] }
 0x32c   :  { %v2654_v46 = vadd.f32 %v3187_v57, %v2604_v6  ;;  %v2266_v49 = vsel %vm2265_vm8, %v7323_v53, %v2262_v0  ;;  %v2251_v29 = vsub.f32 1.5, %v2250_v60  ;;  %v8939_v25 = vsub.f32 %v5974_v33, %v6365_v3  ;;  %v3188_v0 = vld [vmem:[#allocation5 + $0x110] sm:$0xff] }
 0x32d   :  { %2804 = vst [vmem:[#allocation9 + $0x100] sm:$0xff] %v2754_v41  ;;  %v7393_v34 = vpop.eup %3040  ;;  %vm2273_vm11 = vweird.f32 %v7339_v58  ;;  %3046 = vrsqrt.f32 %v7374_v27  ;;  %v1708_v50 = vmul.f32 0.0078125, %v1650_v30  ;;  %v2269_v10 = vmul.f32 %v7381_v56, %v2268_v5  ;;  %v8944_v58 = vld [vmem:[#allocation38_spill] sm:$0xff] }
 0x32e   :  { %2704 = vst [vmem:[#allocation8 + $0x100] sm:$0xff] %v2654_v46  ;;  %v2451_v20 = vmul.f32 %v2266_v49, %v8939_v25  ;;  %v2252_v53 = vmul.f32 %v7348_v11, %v2251_v29  ;;  %vm2274_vm12 = vweird.f32 %v7381_v56  ;;  %v2288_v47 = vmul.f32 %v7393_v34, %v7351_v38  ;;  %v7406_v32 = vpop.eup %3042  ;;  %v3189_v46 = vld [vmem:[#allocation2 + $0x110] sm:$0xff] }
 0x32f   :  { %vm2293_vm13 = vweird.f32 %v7351_v38  ;;  %vm2294_vm15 = vweird.f32 %v7393_v34  ;;  %3048 = vrsqrt.f32 %v7387_v48  ;;  %v1808_v33 = vsub.f32 %v1708_v50, %v6678_v21  ;;  %vm2275_vm4 = vmor %vm2273_vm11, %vm2274_vm12 }
 0x330   :  { %v2502_v3 = vmul.f32 %v6488_v9, %v2451_v20  ;;  %v2256_v42 = vsel %vm2255_vm14, %v7348_v11, %v2252_v53  ;;  %v2270_v37 = vmul.f32 0.5, %v2269_v10  ;;  %v2289_v14 = vmul.f32 %v7393_v34, %v2288_v47  ;;  %v7421_v4 = vpop.eup %3044  ;;  %vm2295_vm8 = vmor %vm2293_vm13, %vm2294_vm15 }
 0x331   :  { %v2278_v19 = vmul.f32 %v7406_v32, %v7365_v44  ;;  %vm2283_vm0 = vweird.f32 %v7365_v44  ;;  %v8942_v13 = vsub.f32 %v8940_v8, %v8941_v24  ;;  %vm2284_vm1 = vweird.f32 %v7406_v32  ;;  %v3191_v24 = vld [vmem:[#allocation2 + $0x108] sm:$0xff] }
 0x332   :  { %v2553_v23 = vadd.f32 %v6499_v35, %v2502_v3  ;;  %v7428_v21 = vmul.f32 0.0078125, %v1654_v63  ;;  %v2271_v11 = vsub.f32 1.5, %v2270_v37  ;;  %v2290_v16 = vmul.f32 0.5, %v2289_v14  ;;  %v3190_v37 = vld [vmem:[#allocation5 + $0x108] sm:$0xff]  ;;  %vm2285_vm10 = vmor %vm2283_vm0, %vm2284_vm1 }
 0x333   :  { %v2450_v36 = vmul.f32 %v2256_v42, %v8942_v13  ;;  %v2279_v54 = vmul.f32 %v7406_v32, %v2278_v19  ;;  %v2298_v45 = vmul.f32 %v7421_v4, %v7367_v55  ;;  %v7433_v6 = vpop.eup %3046  ;;  %v7439_v57 = vadd.f32 1e-05, %v1808_v33  ;;  %v8945_v19 = vld [vmem:[#allocation93_spill] sm:$0xff] }
 0x334   :  { %v2606_v41 = vsel %vm6509_vm6, %v2553_v23, %v8943_v1  ;;  %v2756_v60 = vadd.f32 %v3188_v0, %v2553_v23  ;;  %v2272_v29 = vmul.f32 %v7381_v56, %v2271_v11  ;;  %v2291_v5 = vsub.f32 1.5, %v2290_v16  ;;  %v8948_v1 = vld [vmem:[#allocation162_spill] sm:$0xff] }
 0x335   :  { %v2501_v30 = vmul.f32 %v6488_v9, %v2450_v36  ;;  %v2656_v49 = vadd.f32 %v3189_v46, %v2606_v41  ;;  %v2280_v25 = vmul.f32 0.5, %v2279_v54  ;;  %vm2303_vm3 = vweird.f32 %v7367_v55  ;;  %v7443_v20 = vpop.eup %3048  ;;  %v7473_v54 = vpop.xlane.xlu0 %1651 }
 0x336   :  { %2806 = vst [vmem:[#allocation9 + $0x110] sm:$0xff] %v2756_v60  ;;  %v2299_v53 = vmul.f32 %v7421_v4, %v2298_v45  ;;  %vm2304_vm5 = vweird.f32 %v7421_v4  ;;  %v2318_v10 = vmul.f32 %v7433_v6, %v7374_v27  ;;  %v2276_v47 = vsel %vm2275_vm4, %v7381_v56, %v2272_v29  ;;  %v8947_v45 = vld [vmem:[#allocation48_spill] sm:$0xff]  ;;  %v8950_v29 = vld [vmem:[#allocation83_spill] sm:$0xff] }
 0x337   :  { %v2552_v50 = vadd.f32 %v6499_v35, %v2501_v30  ;;  %2706 = vst [vmem:[#allocation8 + $0x110] sm:$0xff] %v2656_v49  ;;  %v2292_v63 = vmul.f32 %v7393_v34, %v2291_v5  ;;  %v2281_v3 = vsub.f32 1.5, %v2280_v25  ;;  %vm2323_vm7 = vweird.f32 %v7374_v27  ;;  %v8951_v5 = vld [vmem:[#allocation77_spill] sm:$0xff]  ;;  %vm2305_vm13 = vmor %vm2303_vm3, %vm2304_vm5 }
 0x338   :  { %v2308_v33 = vmul.f32 %v7443_v20, %v7387_v48  ;;  %v8946_v23 = vsub.f32 %v6025_v7, %v8945_v19  ;;  %v2300_v56 = vmul.f32 0.5, %v2299_v53  ;;  %v2319_v16 = vmul.f32 %v7433_v6, %v2318_v10 }
 0x339   :  { %v2605_v42 = vsel %vm6509_vm6, %v2552_v50, %v8944_v58  ;;  %v2755_v14 = vadd.f32 %v3190_v37, %v2552_v50  ;;  %v2296_v36 = vsel %vm2295_vm8, %v7393_v34, %v2292_v63  ;;  %v2282_v11 = vmul.f32 %v7406_v32, %v2281_v3  ;;  %v3192_v3 = vld [vmem:[#allocation5 + $0x118] sm:$0xff]  ;;  %v3193_v37 = vld [vmem:[#allocation2 + $0x118] sm:$0xff] }
 0x33a   :  { %v2452_v8 = vmul.f32 %v2276_v47, %v8946_v23  ;;  %v2655_v13 = vadd.f32 %v3191_v24, %v2605_v42  ;;  %vm2313_vm9 = vweird.f32 %v7387_v48  ;;  %v8949_v38 = vsub.f32 %v8947_v45, %v8948_v1  ;;  %v8953_v47 = vld [vmem:[#allocation123_spill] sm:$0xff]  ;;  %v8963_v48 = vld [vmem:[#allocation21_spill] sm:$0xff] }
 0x33b   :  { %2805 = vst [vmem:[#allocation9 + $0x108] sm:$0xff] %v2755_v14  ;;  %v2301_v34 = vsub.f32 1.5, %v2300_v56  ;;  %v2309_v0 = vmul.f32 %v7443_v20, %v2308_v33  ;;  %v2286_v60 = vsel %vm2285_vm10, %v7406_v32, %v2282_v11  ;;  %v2320_v30 = vmul.f32 0.5, %v2319_v16  ;;  %v8954_v23 = vld [vmem:[#allocation95_spill] sm:$0xff]  ;;  %v3194_v56 = vld [vmem:[#allocation5 + $0x128] sm:$0xff]  ;;  %v8956_v11 = vld [vmem:[#allocation164_spill] sm:$0xff] }
 0x33c   :  { %v2503_v7 = vmul.f32 %v6488_v9, %v2452_v8  ;;  %v2454_v41 = vmul.f32 %v2296_v36, %v8949_v38  ;;  %2705 = vst [vmem:[#allocation8 + $0x108] sm:$0xff] %v2655_v13  ;;  %vm2324_vm11 = vweird.f32 %v7433_v6  ;;  %3050 = vrsqrt.f32 %v7439_v57  ;;  %v8955_v36 = vld [vmem:[#allocation51_spill] sm:$0xff] }
 0x33d   :  { %v8952_v25 = vsub.f32 %v8950_v29, %v8951_v5  ;;  %v2302_v50 = vmul.f32 %v7421_v4, %v2301_v34  ;;  %v2321_v53 = vsub.f32 1.5, %v2320_v30  ;;  %v2310_v10 = vmul.f32 0.5, %v2309_v0  ;;  %vm2325_vm14 = vmor %vm2323_vm7, %vm2324_vm11  ;;  %v1656_v34 = vpop.xlane.xlu2 %1655  ;;  %v8958_v0 = vld [vmem:[#allocation143_spill] sm:$0xff]  ;;  %v3196_v30 = vld [vmem:[#allocation5 + $0x120] sm:$0xff] }
 0x33e   :  { %v2554_v46 = vadd.f32 %v6499_v35, %v2503_v7  ;;  %v2505_v49 = vmul.f32 %v6488_v9, %v2454_v41  ;;  %vm2314_vm12 = vweird.f32 %v7443_v20  ;;  %v1810_v32 = vsub.f32 %v7428_v21, %v6697_v43  ;;  %v3195_v7 = vld [vmem:[#allocation2 + $0x128] sm:$0xff]  ;;  %v8960_v29 = vld [vmem:[#allocation165_spill] sm:$0xff] }
 0x33f   :  { %v2453_v44 = vmul.f32 %v2286_v60, %v8952_v25  ;;  %v2306_v19 = vsel %vm2305_vm13, %v7421_v4, %v2302_v50  ;;  %v2322_v43 = vmul.f32 %v7433_v6, %v2321_v53  ;;  %v2311_v21 = vsub.f32 1.5, %v2310_v10  ;;  %vm2315_vm15 = vmor %vm2313_vm9, %vm2314_vm12  ;;  %v3197_v53 = vld [vmem:[#allocation2 + $0x120] sm:$0xff] }
 0x340   :  { %v2607_v63 = vsel %vm6509_vm6, %v2554_v46, %v8953_v47  ;;  %v2757_v33 = vadd.f32 %v3192_v3, %v2554_v46  ;;  %v2556_v58 = vadd.f32 %v6499_v35, %v2505_v49  ;;  %v8957_v55 = vsub.f32 %v8955_v36, %v8956_v11  ;;  %v8959_v49 = vld [vmem:[#allocation89_spill] sm:$0xff] }
 0x341   :  { %v2504_v42 = vmul.f32 %v6488_v9, %v2453_v44  ;;  %v2657_v14 = vadd.f32 %v3193_v37, %v2607_v63  ;;  %v2326_v1 = vsel %vm2325_vm14, %v7433_v6, %v2322_v43  ;;  %v2312_v38 = vmul.f32 %v7443_v20, %v2311_v21  ;;  %v1660_v6 = vpop.xlane.xlu1 %1659  ;;  %v8962_v44 = vld [vmem:[#allocation37_spill] sm:$0xff]  ;;  %v1658_v63 = vpop.xlane.xlu0 %1657  ;;  %v8966_v43 = vld [vmem:[#allocation146_spill] sm:$0xff] }
 0x342   :  { %2807 = vst [vmem:[#allocation9 + $0x118] sm:$0xff] %v2757_v33  ;;  %v2609_v8 = vsel %vm6509_vm6, %v2556_v58, %v8954_v23  ;;  %v2759_v24 = vadd.f32 %v3194_v56, %v2556_v58  ;;  %v2455_v16 = vmul.f32 %v2306_v19, %v8957_v55  ;;  %v7518_v4 = vpop.eup %3050  ;;  %v7522_v41 = vadd.f32 1e-05, %v1810_v32  ;;  %v8964_v58 = vld [vmem:[#allocation163_spill] sm:$0xff]  ;;  %v3198_v23 = vld [vmem:[#allocation5 + $0x130] sm:$0xff] }
 0x343   :  { %v2555_v13 = vadd.f32 %v6499_v35, %v2504_v42  ;;  %2707 = vst [vmem:[#allocation8 + $0x118] sm:$0xff] %v2657_v14  ;;  %v2659_v45 = vadd.f32 %v3195_v7, %v2609_v8  ;;  %v8961_v5 = vsub.f32 %v8959_v49, %v8960_v29  ;;  %v7536_v50 = vmul.f32 0.0078125, %v8962_v44  ;;  %v8967_v55 = vld [vmem:[#allocation167_spill] sm:$0xff] }
 0x344   :  { %2809 = vst [vmem:[#allocation9 + $0x128] sm:$0xff] %v2759_v24  ;;  %v2506_v46 = vmul.f32 %v6488_v9, %v2455_v16  ;;  %v2316_v32 = vsel %vm2315_vm15, %v7443_v20, %v2312_v38  ;;  %v2328_v47 = vmul.f32 %v7518_v4, %v7439_v57  ;;  %v8965_v42 = vsub.f32 %v8963_v48, %v8964_v58  ;;  %v7575_v48 = vld [vmem:[#allocation5 + $0x170] sm:$0xff] }
 0x345   :  { %v2608_v60 = vsel %vm6509_vm6, %v2555_v13, %v8958_v0  ;;  %v2758_v27 = vadd.f32 %v3196_v30, %v2555_v13  ;;  %v2457_v25 = vmul.f32 %v2326_v1, %v8961_v5  ;;  %2709 = vst [vmem:[#allocation8 + $0x128] sm:$0xff] %v2659_v45  ;;  %3052 = vrsqrt.f32 %v7522_v41  ;;  %v3199_v13 = vld [vmem:[#allocation2 + $0x130] sm:$0xff] }
 0x346   :  { %v2658_v10 = vadd.f32 %v3197_v53, %v2608_v60  ;;  %v2557_v3 = vadd.f32 %v6499_v35, %v2506_v46  ;;  %v2456_v37 = vmul.f32 %v2316_v32, %v8965_v42  ;;  %v2329_v14 = vmul.f32 %v7518_v4, %v2328_v47  ;;  %v3200_v1 = vld [vmem:[#allocation5 + $0x140] sm:$0xff]  ;;  %v3201_v60 = vld [vmem:[#allocation2 + $0x140] sm:$0xff] }
 0x347   :  { %2808 = vst [vmem:[#allocation9 + $0x120] sm:$0xff] %v2758_v27  ;;  %v2508_v33 = vmul.f32 %v6488_v9, %v2457_v25  ;;  %vm2334_vm0 = vweird.f32 %v7518_v4  ;;  %v1709_v20 = vmul.f32 0.0078125, %v7473_v54  ;;  %v1711_v19 = vmul.f32 0.0078125, %v1656_v34  ;;  %v8968_v54 = vld [vmem:[#allocation126_spill] sm:$0xff]  ;;  %v3202_v25 = vld [vmem:[#allocation5 + $0x138] sm:$0xff] }
 0x348   :  { %2708 = vst [vmem:[#allocation8 + $0x120] sm:$0xff] %v2658_v10  ;;  %v2610_v21 = vsel %vm6509_vm6, %v2557_v3, %v8966_v43  ;;  %v2760_v8 = vadd.f32 %v3198_v23, %v2557_v3  ;;  %v2507_v24 = vmul.f32 %v6488_v9, %v2456_v37  ;;  %v2330_v11 = vmul.f32 0.5, %v2329_v14  ;;  %v3203_v10 = vld [vmem:[#allocation2 + $0x138] sm:$0xff]  ;;  %v8970_v42 = vld [vmem:[#allocation26_spill] sm:$0xff] }
 0x349   :  { %v2559_v56 = vadd.f32 %v6499_v35, %v2508_v33  ;;  %v2660_v36 = vadd.f32 %v3199_v13, %v2610_v21  ;;  %v1809_v16 = vsub.f32 %v1709_v20, %v8967_v55  ;;  %v1811_v7 = vsub.f32 %v1711_v19, %v7303_v17  ;;  %v8969_v17 = vld [vmem:[#allocation151_spill] sm:$0xff]  ;;  %v1662_v33 = vpop.xlane.xlu2 %1661  ;;  %v1664_v19 = vpop.xlane.xlu0 %1663 }
 0x34a   :  { %2810 = vst [vmem:[#allocation9 + $0x130] sm:$0xff] %v2760_v8  ;;  %v2558_v34 = vadd.f32 %v6499_v35, %v2507_v24  ;;  %v1713_v0 = vmul.f32 0.0078125, %v1660_v6  ;;  %v2331_v27 = vsub.f32 1.5, %v2330_v11  ;;  %v1712_v6 = vmul.f32 0.0078125, %v1658_v63 }
 0x34b   :  { %v2612_v45 = vsel %vm6509_vm6, %v2559_v56, %v8968_v54  ;;  %v2762_v38 = vadd.f32 %v3200_v1, %v2559_v56  ;;  %2710 = vst [vmem:[#allocation8 + $0x130] sm:$0xff] %v2660_v36  ;;  %v7561_v46 = vadd.f32 1e-05, %v1809_v16  ;;  %v7563_v49 = vadd.f32 1e-05, %v1811_v7  ;;  %v7565_v29 = vpop.eup %3052  ;;  %v7608_v7 = vld [vmem:[#allocation5 + $0x178] sm:$0xff] }
 0x34c   :  { %v2662_v30 = vadd.f32 %v3201_v60, %v2612_v45  ;;  %v2611_v5 = vsel %vm6509_vm6, %v2558_v34, %v8969_v17  ;;  %v2761_v44 = vadd.f32 %v3202_v25, %v2558_v34  ;;  %v1813_v53 = vsub.f32 %v1713_v0, %v7356_v12 }
 0x34d   :  { %2812 = vst [vmem:[#allocation9 + $0x140] sm:$0xff] %v2762_v38  ;;  %v2661_v32 = vadd.f32 %v3203_v10, %v2611_v5  ;;  %v2332_v47 = vmul.f32 %v7518_v4, %v2331_v27  ;;  %vm2333_vm1 = vweird.f32 %v7439_v57  ;;  %v2348_v3 = vmul.f32 %v7565_v29, %v7522_v41  ;;  %v1666_v57 = vpop.xlane.xlu1 %1665  ;;  %v8972_v27 = vld [vmem:[#allocation44_spill] sm:$0xff] }
 0x34e   :  { %2712 = vst [vmem:[#allocation8 + $0x140] sm:$0xff] %v2662_v30  ;;  %v1863_v58 = vsub.f32 %v7575_v48, %v7087_v40  ;;  %v7580_v37 = vmul.f32 0.0078125, %v8970_v42  ;;  %vm2335_vm3 = vmor %vm2333_vm1, %vm2334_vm0  ;;  %3054 = vrsqrt.f32 %v7561_v46  ;;  %v7585_v12 = vadd.f32 1e-05, %v1813_v53  ;;  %v3207_v53 = vld [vmem:[#allocation2 + $0x148] sm:$0xff] }
 0x34f   :  { %2811 = vst [vmem:[#allocation9 + $0x138] sm:$0xff] %v2761_v44  ;;  %v2336_v63 = vsel %vm2335_vm3, %v7518_v4, %v2332_v47  ;;  %v2349_v14 = vmul.f32 %v7565_v29, %v2348_v3  ;;  %3056 = vrsqrt.f32 %v7563_v49  ;;  %v1812_v20 = vsub.f32 %v1712_v6, %v7109_v26 }
 0x350   :  { %2711 = vst [vmem:[#allocation8 + $0x138] sm:$0xff] %v2661_v32  ;;  %v1764_v43 = vmul.f32 %v7362_v52, %v7362_v52  ;;  %v8971_v21 = vsub.f32 %v6225_v22, %v6467_v28  ;;  %3058 = vrsqrt.f32 %v7585_v12  ;;  %v1714_v8 = vmul.f32 0.0078125, %v1662_v33 }
 0x351   :  { %v1766_v4 = vmul.f32 %v7536_v50, %v7536_v50  ;;  %v2350_v56 = vmul.f32 0.5, %v2349_v14  ;;  %v7599_v24 = vadd.f32 1e-05, %v1812_v20  ;;  %v1716_v13 = vmul.f32 0.0078125, %v1666_v57 }
 0x352   :  { %v2458_v23 = vmul.f32 %v2336_v63, %v8971_v21  ;;  %v1765_v26 = vmul.f32 %v7580_v37, %v7580_v37  ;;  %v1814_v11 = vsub.f32 %v1714_v8, %v1764_v43  ;;  %v1715_v55 = vmul.f32 0.0078125, %v1664_v19 }
 0x353   :  { %v2351_v16 = vsub.f32 1.5, %v2350_v56  ;;  %vm2354_vm4 = vweird.f32 %v7565_v29  ;;  %3060 = vrsqrt.f32 %v7599_v24  ;;  %v1816_v28 = vsub.f32 %v1716_v13, %v1766_v4  ;;  %v8974_v4 = vld [vmem:[#allocation79_spill] sm:$0xff] }
 0x354   :  { %v2509_v36 = vmul.f32 %v6488_v9, %v2458_v23  ;;  %v7606_v22 = vpop.eup %3054  ;;  %v1864_v54 = vsub.f32 %v7608_v7, %v7362_v52  ;;  %vm2353_vm5 = vweird.f32 %v7522_v41  ;;  %v7614_v1 = vadd.f32 1e-05, %v1814_v11  ;;  %v3206_v41 = vld [vmem:[#allocation5 + $0x148] sm:$0xff] }
 0x355   :  { %v7616_v38 = vpop.eup %3056  ;;  %v2352_v34 = vmul.f32 %v7565_v29, %v2351_v16  ;;  %v2338_v0 = vmul.f32 %v7606_v22, %v7561_v46  ;;  %vm2343_vm7 = vweird.f32 %v7561_v46  ;;  %v7622_v60 = vadd.f32 1e-05, %v1816_v28  ;;  %vm2355_vm8 = vmor %vm2353_vm5, %vm2354_vm4 }
 0x356   :  { %v2560_v45 = vadd.f32 %v6499_v35, %v2509_v36  ;;  %v7624_v30 = vpop.eup %3058  ;;  %v2358_v25 = vmul.f32 %v7616_v38, %v7563_v49  ;;  %v1815_v44 = vsub.f32 %v1715_v55, %v1765_v26  ;;  %v8973_v3 = vsub.f32 %v6292_v61, %v6470_v39  ;;  %v8975_v36 = vld [vmem:[#allocation156_spill] sm:$0xff]  ;;  %v3208_v55 = vld [vmem:[#allocation5 + $0x158] sm:$0xff] }
 0x357   :  { %v2356_v10 = vsel %vm2355_vm8, %v7565_v29, %v2352_v34  ;;  %v2339_v32 = vmul.f32 %v7606_v22, %v2338_v0  ;;  %v2378_v47 = vmul.f32 %v7624_v30, %v7585_v12  ;;  %vm2363_vm9 = vweird.f32 %v7563_v49  ;;  %v8976_v0 = vld [vmem:[#allocation98_spill] sm:$0xff] }
 0x358   :  { %v2613_v17 = vsel %vm6509_vm6, %v2560_v45, %v8972_v27  ;;  %v2763_v5 = vadd.f32 %v3206_v41, %v2560_v45  ;;  %v2460_v33 = vmul.f32 %v2356_v10, %v8973_v3  ;;  %v2359_v42 = vmul.f32 %v7616_v38, %v2358_v25  ;;  %v3209_v27 = vld [vmem:[#allocation2 + $0x158] sm:$0xff]  ;;  %v8977_v25 = vld [vmem:[#allocation160_spill] sm:$0xff] }
 0x359   :  { %v2663_v6 = vadd.f32 %v3207_v53, %v2613_v17  ;;  %3062 = vrsqrt.f32 %v7614_v1  ;;  %v7643_v57 = vpop.eup %3060  ;;  %v2340_v29 = vmul.f32 0.5, %v2339_v32  ;;  %v2379_v63 = vmul.f32 %v7624_v30, %v2378_v47 }
 0x35a   :  { %2813 = vst [vmem:[#allocation9 + $0x148] sm:$0xff] %v2763_v5  ;;  %vm2383_vm10 = vweird.f32 %v7585_v12  ;;  %3064 = vrsqrt.f32 %v7622_v60  ;;  %v2511_v14 = vmul.f32 %v6488_v9, %v2460_v33  ;;  %v2360_v61 = vmul.f32 0.5, %v2359_v42 }
 0x35b   :  { %2713 = vst [vmem:[#allocation8 + $0x148] sm:$0xff] %v2663_v6  ;;  %v2368_v39 = vmul.f32 %v7643_v57, %v7599_v24  ;;  %vm2373_vm11 = vweird.f32 %v7599_v24  ;;  %v2341_v20 = vsub.f32 1.5, %v2340_v29  ;;  %vm2344_vm12 = vweird.f32 %v7606_v22 }
 0x35c   :  { %v2380_v19 = vmul.f32 0.5, %v2379_v63  ;;  %v7653_v43 = vadd.f32 1e-05, %v1815_v44  ;;  %v2562_v21 = vadd.f32 %v6499_v35, %v2511_v14  ;;  %v2361_v23 = vsub.f32 1.5, %v2360_v61  ;;  %vm2345_vm0 = vmor %vm2343_vm7, %vm2344_vm12  ;;  %v8978_v44 = vld [vmem:[#allocation166_spill] sm:$0xff] }
 0x35d   :  { %vm2364_vm13 = vweird.f32 %v7616_v38  ;;  %v2369_v8 = vmul.f32 %v7643_v57, %v2368_v39  ;;  %vm1202_vm14 = vweird.f32 %v8974_v4  ;;  %v2342_v56 = vmul.f32 %v7606_v22, %v2341_v20  ;;  %v8980_v20 = vld [vmem:[#allocation152_spill] sm:$0xff] }
 0x35e   :  { %v2381_v13 = vsub.f32 1.5, %v2380_v19  ;;  %vm2384_vm15 = vweird.f32 %v7624_v30  ;;  %3066 = vrsqrt.f32 %v7653_v43  ;;  %v2615_v11 = vsel %vm6509_vm6, %v2562_v21, %v8975_v36  ;;  %vm2365_vm3 = vmor %vm2363_vm9, %vm2364_vm13  ;;  %v8981_v36 = vld [vmem:[#allocation45_spill] sm:$0xff] }
 0x35f   :  { %v7662_v26 = vpop.eup %3062  ;;  %v2765_v16 = vadd.f32 %v3208_v55, %v2562_v21  ;;  %v2362_v28 = vmul.f32 %v7616_v38, %v2361_v23  ;;  %v2370_v45 = vmul.f32 0.5, %v2369_v8  ;;  %vm1201_vm1 = vweird.f32 %v8976_v0  ;;  %vm2385_vm4 = vmor %vm2383_vm10, %vm2384_vm15  ;;  %v3210_v21 = vld [vmem:[#allocation5 + $0x150] sm:$0xff] }
 0x360   :  { %v7672_v34 = vpop.eup %3064  ;;  %v2665_v17 = vadd.f32 %v3209_v27, %v2615_v11  ;;  %v2346_v41 = vsel %vm2345_vm0, %v7606_v22, %v2342_v56  ;;  %v2382_v5 = vmul.f32 %v7624_v30, %v2381_v13  ;;  %v2388_v46 = vmul.f32 %v7662_v26, %v7614_v1  ;;  %v3211_v56 = vld [vmem:[#allocation2 + $0x150] sm:$0xff]  ;;  %v3212_v55 = vld [vmem:[#allocation2 + $0x160] sm:$0xff] }
 0x361   :  { %2815 = vst [vmem:[#allocation9 + $0x158] sm:$0xff] %v2765_v16  ;;  %v8979_v53 = vsub.f32 %v8977_v25, %v8978_v44  ;;  %v2366_v10 = vsel %vm2365_vm3, %v7616_v38, %v2362_v28  ;;  %v2371_v22 = vsub.f32 1.5, %v2370_v45  ;;  %vm2374_vm5 = vweird.f32 %v7643_v57  ;;  %v8984_v28 = vld [vmem:[#allocation58_spill] sm:$0xff]  ;;  %v8985_v25 = vld [vmem:[#allocation55_spill] sm:$0xff] }
 0x362   :  { %vm2393_vm7 = vweird.f32 %v7614_v1  ;;  %2715 = vst [vmem:[#allocation8 + $0x158] sm:$0xff] %v2665_v17  ;;  %v2461_v49 = vmul.f32 %v2366_v10, %v1861_v2  ;;  %v2386_v32 = vsel %vm2385_vm4, %v7624_v30, %v2382_v5  ;;  %v2389_v47 = vmul.f32 %v7662_v26, %v2388_v46  ;;  %vm2375_vm9 = vmor %vm2373_vm11, %vm2374_vm5  ;;  %v3213_v17 = vld [vmem:[#allocation2 + $0x170] sm:$0xff] }
 0x363   :  { %v2459_v6 = vmul.f32 %v2346_v41, %v8979_v53  ;;  %v2408_v38 = vmul.f32 %v7672_v34, %v7622_v60  ;;  %v2463_v3 = vmul.f32 %v2386_v32, %v1863_v58  ;;  %v2372_v33 = vmul.f32 %v7643_v57, %v2371_v22  ;;  %vm7736_vm11 = vmor %vm1201_vm1, %vm1202_vm14  ;;  %v8987_v53 = vld [vmem:[#allocation92_spill] sm:$0xff] }
 0x364   :  { %vm2394_vm8 = vweird.f32 %v7662_v26  ;;  %v7706_v42 = vpop.eup %3066  ;;  %v2512_v51 = vmul.f32 %v6488_v9, %v2461_v49  ;;  %v2390_v2 = vmul.f32 0.5, %v2389_v47  ;;  %vm2414_vm10 = vweird.f32 %v7672_v34  ;;  %v8990_v22 = vld [vmem:[#allocation96_spill] sm:$0xff]  ;;  %v8991_v49 = vld [vmem:[#allocation50_spill] sm:$0xff] }
 0x365   :  { %v2510_v12 = vmul.f32 %v6488_v9, %v2459_v6  ;;  %v2409_v30 = vmul.f32 %v7672_v34, %v2408_v38  ;;  %v2514_v40 = vmul.f32 %v6488_v9, %v2463_v3  ;;  %v2376_v58 = vsel %vm2375_vm9, %v7643_v57, %v2372_v33  ;;  %vm2395_vm12 = vmor %vm2393_vm7, %vm2394_vm8  ;;  %v8993_v38 = vld [vmem:[#allocation131_spill] sm:$0xff] }
 0x366   :  { %v2398_v63 = vmul.f32 %v7706_v42, %v7653_v43  ;;  %v2563_v14 = vadd.f32 %v6499_v35, %v2512_v51  ;;  %v2462_v24 = vmul.f32 %v2376_v58, %v1862_v31  ;;  %v2391_v61 = vsub.f32 1.5, %v2390_v2  ;;  %v3215_v2 = vld [vmem:[#allocation5 + $0x188] sm:$0xff] }
 0x367   :  { %v2561_v29 = vadd.f32 %v6499_v35, %v2510_v12  ;;  %v2410_v39 = vmul.f32 0.5, %v2409_v30  ;;  %v2565_v8 = vadd.f32 %v6499_v35, %v2514_v40  ;;  %v1204_v44 = vsel %vm7736_vm11, %v8974_v4, %v8985_v25  ;;  %v3214_v4 = vld [vmem:[#allocation5 + $0x168] sm:$0xff] }
 0x368   :  { %v2399_v57 = vmul.f32 %v7706_v42, %v2398_v63  ;;  %v2616_v11 = vsel %vm6509_vm6, %v2563_v14, %v8981_v36  ;;  %v2766_v18 = vadd.f32 %v7327_v15, %v2563_v14  ;;  %v2513_v59 = vmul.f32 %v6488_v9, %v2462_v24  ;;  %v8994_v40 = vld [vmem:[#allocation157_spill] sm:$0xff] }
 0x369   :  { %v2614_v19 = vsel %vm6509_vm6, %v2561_v29, %v8980_v20  ;;  %v2764_v23 = vadd.f32 %v3210_v21, %v2561_v29  ;;  %v2666_v16 = vadd.f32 %v3212_v55, %v2616_v11  ;;  %v2618_v45 = vsel %vm6509_vm6, %v2565_v8, %v8984_v28  ;;  %v8995_v58 = vld [vmem:[#allocation17_spill] sm:$0xff]  ;;  %v8998_v20 = vld [vmem:[#allocation110_spill] sm:$0xff]  ;;  %v3219_v28 = vld [vmem:[#allocation2 + $0x188] sm:$0xff] }
 0x36a   :  { %v2664_v13 = vadd.f32 %v3211_v56, %v2614_v19  ;;  %v2768_v27 = vadd.f32 %v7575_v48, %v2565_v8  ;;  %v2392_v15 = vmul.f32 %v7662_v26, %v2391_v61  ;;  %v2668_v41 = vadd.f32 %v3213_v17, %v2618_v45  ;;  %v8986_v48 = vld [vmem:[#allocation62_spill] sm:$0xff]  ;;  %2816 = vst [vmem:[#allocation9 + $0x160] sm:$0xff] %v2766_v18  ;;  %v8997_v24 = vld [vmem:[#allocation145_spill] sm:$0xff]  ;;  %v8999_v19 = vld [vmem:[#allocation147_spill] sm:$0xff] }
 0x36b   :  { %2814 = vst [vmem:[#allocation9 + $0x150] sm:$0xff] %v2764_v23  ;;  %v2564_v0 = vadd.f32 %v6499_v35, %v2513_v59  ;;  %v2411_v5 = vsub.f32 1.5, %v2410_v39  ;;  %v2400_v46 = vmul.f32 0.5, %v2399_v57  ;;  %v8988_v6 = vsub.f32 %v8986_v48, %v8987_v53  ;;  %v3217_v23 = vld [vmem:[#allocation5 + $0x180] sm:$0xff]  ;;  %v3218_v18 = vld [vmem:[#allocation2 + $0x178] sm:$0xff]  ;;  %v3220_v17 = vld [vmem:[#allocation2 + $0x180] sm:$0xff] }
 0x36c   :  { %2714 = vst [vmem:[#allocation8 + $0x150] sm:$0xff] %v2664_v13  ;;  %v8992_v32 = vsel %vm6135_vm2, %v8990_v22, %v8991_v49  ;;  %v2396_v1 = vsel %vm2395_vm12, %v7662_v26, %v2392_v15  ;;  %vm2413_vm13 = vweird.f32 %v7622_v60  ;;  %v1866_v30 = vsub.f32 %v3215_v2, %v7536_v50  ;;  %v3216_v26 = vld [vmem:[#allocation2 + $0x168] sm:$0xff] }
 0x36d   :  { %v1264_v47 = vmul.f32 %v8992_v32, %v8988_v6  ;;  %2716 = vst [vmem:[#allocation8 + $0x160] sm:$0xff] %v2666_v16  ;;  %v2617_v12 = vsel %vm6509_vm6, %v2564_v0, %v8993_v38  ;;  %v2767_v3 = vadd.f32 %v3214_v4, %v2564_v0  ;;  %v2464_v33 = vmul.f32 %v2396_v1, %v1864_v54  ;;  %vm2415_vm2 = vmor %vm2413_vm13, %vm2414_vm10 }
 0x36e   :  { %v2412_v51 = vmul.f32 %v7672_v34, %v2411_v5  ;;  %2718 = vst [vmem:[#allocation8 + $0x170] sm:$0xff] %v2668_v41  ;;  %v2667_v29 = vadd.f32 %v3216_v26, %v2617_v12  ;;  %v2401_v60 = vsub.f32 1.5, %v2400_v46  ;;  %vm2404_vm14 = vweird.f32 %v7706_v42 }
 0x36f   :  { %v8996_v63 = vsub.f32 %v8994_v40, %v8995_v58  ;;  %2818 = vst [vmem:[#allocation9 + $0x170] sm:$0xff] %v2768_v27  ;;  %v2515_v52 = vmul.f32 %v6488_v9, %v2464_v33  ;;  %v1315_v50 = vmul.f32 %v8997_v24, %v1264_v47  ;;  %vm2403_vm15 = vweird.f32 %v7653_v43 }
 0x370   :  { %v2416_v54 = vsel %vm2415_vm2, %v7672_v34, %v2412_v51  ;;  %2717 = vst [vmem:[#allocation8 + $0x168] sm:$0xff] %v2667_v29  ;;  %v2402_v39 = vmul.f32 %v7706_v42, %v2401_v60  ;;  %v1364_v21 = vadd.f32 %v8999_v19, %v8998_v20  ;;  %v1865_v8 = vsub.f32 %v3217_v23, %v7580_v37  ;;  %vm2405_vm0 = vmor %vm2403_vm15, %vm2404_vm14 }
 0x371   :  { %v1263_v14 = vmul.f32 %v1204_v44, %v8996_v63  ;;  %v2466_v61 = vmul.f32 %v2416_v54, %v1866_v30  ;;  %2817 = vst [vmem:[#allocation9 + $0x168] sm:$0xff] %v2767_v3  ;;  %v2566_v57 = vadd.f32 %v6499_v35, %v2515_v52  ;;  %v1366_v37 = vadd.f32 %v8999_v19, %v1315_v50 }
 0x372   :  { %v2406_v56 = vsel %vm2405_vm0, %v7706_v42, %v2402_v39 }
 0x373   :  { %v2517_v34 = vmul.f32 %v6488_v9, %v2466_v61  ;;  %v1314_v13 = vmul.f32 %v8997_v24, %v1263_v14  ;;  %v2619_v43 = vsel %vm6509_vm6, %v2566_v57, %v1364_v21  ;;  %v2769_v36 = vadd.f32 %v7608_v7, %v2566_v57 }
 0x374   :  { %v2465_v11 = vmul.f32 %v2406_v56, %v1865_v8  ;;  %v2669_v59 = vadd.f32 %v3218_v18, %v2619_v43 }
 0x375   :  { %v2568_v31 = vadd.f32 %v6499_v35, %v2517_v34  ;;  %2819 = vst [vmem:[#allocation9 + $0x178] sm:$0xff] %v2769_v36  ;;  %v1365_v7 = vadd.f32 %v8999_v19, %v1314_v13 }
 0x376   :  { %v2516_v55 = vmul.f32 %v6488_v9, %v2465_v11  ;;  %2719 = vst [vmem:[#allocation8 + $0x178] sm:$0xff] %v2669_v59 }
 0x377   :  { %v2621_v42 = vsel %vm6509_vm6, %v2568_v31, %v1366_v37  ;;  %v2771_v16 = vadd.f32 %v3215_v2, %v2568_v31 }
 0x378   :  { %v2671_v45 = vadd.f32 %v3219_v28, %v2621_v42  ;;  %v2567_v27 = vadd.f32 %v6499_v35, %v2516_v55 }
 0x379   :  { %2821 = vst [vmem:[#allocation9 + $0x188] sm:$0xff] %v2771_v16 }
 0x37a   :  { %2721 = vst [vmem:[#allocation8 + $0x188] sm:$0xff] %v2671_v45  ;;  %v2620_v9 = vsel %vm6509_vm6, %v2567_v27, %v1365_v7  ;;  %v2770_v15 = vadd.f32 %v3217_v23, %v2567_v27 }
 0x37b   :  { %v2670_v41 = vadd.f32 %v3220_v17, %v2620_v9 }
 0x37c   :  { %2820 = vst [vmem:[#allocation9 + $0x180] sm:$0xff] %v2770_v15 }
 0x37d   :  { %2720 = vst [vmem:[#allocation8 + $0x180] sm:$0xff] %v2670_v41  ;;  %2847 = dma.vmem_to_hbm [thread:$0]  %s2840_s30, 6400, %s2842_s7, [#allocation10], %s3350_s23, %s3350_s23, %s3351_s24  }
 0x37e   :  { %2834 = dma.vmem_to_hbm [thread:$0]  %s2827_s9, 6400, %s2829_s12, [#allocation4], %s3350_s23, %s3350_s23, %s3351_s24  }
 0x37f   :  { %3345 = dma.done.wait [#allocation4], 6400  }
 0x380   :  { %3346 = vsyncadd [#allocation4], 4294960896 }
 0x381   :  { %3347 = dma.done.wait [#allocation10], 6400  }
 0x382   :  { %3348 = vsyncadd [#allocation10], 4294960896 }
 0x383   :  { %2856 = vsyncpa [#allocation3], 1 }
 0x384   :  { %2857 = vsyncpa [#allocation6], 1 }
 0x385   :  { %2858 = vsyncpa [#allocation4], 1 }
 0x386   :  { %2859 = vsyncpa [#allocation10], 1 }

</bundles_post_ra>
